<compile_context>
chip_gen: v6e
topology: v6e:2x2x1
jax: 0.10.0
libtpu: 0.0.40
codegen_flags: <defaults>
</compile_context>

<pallas_src>
import math

import jax
import jax.numpy as jnp
from jax import lax
from jax.experimental import pallas as pl
from jax.experimental.pallas import tpu as pltpu

# ---- small synthetic DistilBERT config (scaled down from 768/12/6) ----------
VOCAB = 100
MAX_POS = 16
D_MODEL = 32          # hidden size
N_HEADS = 4
HEAD_DIM = D_MODEL // N_HEADS
FFN_DIM = 64
N_LAYERS = 2
LN_EPS = 1e-12        # matches DistilBERT config (below f32 precision, harmless here)
NEG_INF = -1e9
INV_SQRT_HD = 1.0 / math.sqrt(HEAD_DIM)
GELU_C = math.sqrt(2.0 / math.pi)


# ----------------------------- kernel -----------------------------------------
def _ln(x, gamma, beta):
    mu = jnp.mean(x, axis=-1, keepdims=True)
    var = jnp.mean((x - mu) ** 2, axis=-1, keepdims=True)
    return (x - mu) * lax.rsqrt(var + LN_EPS) * gamma + beta


def fused_text_encoder_kernel(*refs):
    """Embedding LN + all encoder layers + CLS extraction for one batch block.

    refs = (emb, mask, emb_ln_g, emb_ln_b, <16 refs per layer>..., out)
    """
    n_layers = (len(refs) - 5) // 16
    x_ref, mask_ref, eg_ref, eb_ref = refs[:4]
    lrefs = refs[4:4 + 16 * n_layers]
    o_ref = refs[-1]

    BB, S, D = x_ref.shape
    N = BB * S

    # Embedding LayerNorm on the flattened (rows, hidden) view (f32).
    x = _ln(x_ref[...].reshape(N, D), eg_ref[...], eb_ref[...])

    # Additive attention-mask bias built in-kernel: (BB, 1, S),
    # 0 where attended, -1e9 where padded.
    bias = (1.0 - mask_ref[...].astype(jnp.float32)) * NEG_INF

    for l in range(n_layers):
        (wq, bq, wk, bk, wv, bv, wo, bo,
         g1, be1, w1, b1, w2, b2, g2, be2) = lrefs[16 * l:16 * (l + 1)]

        # Full-width QKV projections on the MXU (bf16 operands, f32 accumulate);
        # 1/sqrt(hd) folded into q once.
        xb = x.astype(jnp.bfloat16)
        q = (jnp.dot(xb, wq[...], preferred_element_type=jnp.float32)
             + bq[...]) * INV_SQRT_HD
        k = jnp.dot(xb, wk[...], preferred_element_type=jnp.float32) + bk[...]
        v = jnp.dot(xb, wv[...], preferred_element_type=jnp.float32) + bv[...]
        q3 = q.reshape(BB, S, D)
        k3 = k.reshape(BB, S, D)
        v3 = v.reshape(BB, S, D)

        # Per-head masked softmax attention (statically unrolled). Scores
        # contract last dims directly (no materialized K transpose). Per-head
        # contexts are concatenated back to full hidden width so the output
        # projection is a SINGLE full-width MXU matmul.
        # TODO(synk): fold (batch, head) into one einsum batch dim (bshe,bthe->bhst)
        # once the Mosaic multi-batch-dim dot_general / rank-4 transpose path is
        # safe to rely on; today that lowering is the risk, so heads stay unrolled.
        ctx_heads = []
        for h in range(N_HEADS):
            sl = slice(h * HEAD_DIM, (h + 1) * HEAD_DIM)
            qh = q3[:, :, sl].astype(jnp.bfloat16)                      # (BB,S,hd)
            kh = k3[:, :, sl].astype(jnp.bfloat16)
            vh = v3[:, :, sl].astype(jnp.bfloat16)
            s = jnp.einsum('bsd,btd->bst', qh, kh,
                           preferred_element_type=jnp.float32) + bias   # (BB,S,S)
            s = s - jnp.max(s, axis=-1, keepdims=True)
            p = jnp.exp(s)
            # Normalize via the EUP reciprocal (frees VALU issue slots).
            p = p * pl.reciprocal(jnp.sum(p, axis=-1, keepdims=True), approx=True)
            ctx_heads.append(
                jnp.einsum('bst,btd->bsd', p.astype(jnp.bfloat16), vh,
                           preferred_element_type=jnp.float32))         # (BB,S,hd)

        ctx = jnp.concatenate(ctx_heads, axis=-1).reshape(N, D)
        attn = jnp.dot(ctx.astype(jnp.bfloat16), wo[...],
                       preferred_element_type=jnp.float32) + bo[...]

        x = _ln(x + attn, g1[...], be1[...])

        # FFN with GELU (elementwise math in f32).
        # TODO(synk): DistilBERT uses the exact erf GELU; tanh approximation
        # is used here (sub-1e-3 relative difference vs the PyTorch reference).
        h1 = jnp.dot(x.astype(jnp.bfloat16), w1[...],
                     preferred_element_type=jnp.float32) + b1[...]
        h1 = 0.5 * h1 * (1.0 + jnp.tanh(GELU_C * (h1 + 0.044715 * h1 ** 3)))
        ffn = jnp.dot(h1.astype(jnp.bfloat16), w2[...],
                      preferred_element_type=jnp.float32) + b2[...]
        x = _ln(x + ffn, g2[...], be2[...])

    # Only the CLS row (position 0) of each sequence is written back to HBM.
    # TODO(synk): if the output ever grows (per-token outputs / larger D),
    # present a lane-dense (multiple-of-128) output slab instead.
    o_ref[...] = x.reshape(BB, S, D)[:, 0:1, :]


# ----------------------------- wrapper -----------------------------------------
_LAYER_KEYS = ("wq", "bq", "wk", "bk", "wv", "bv", "wo", "bo",
               "ln1_g", "ln1_b", "w1", "b1", "w2", "b2", "ln2_g", "ln2_b")
_MXU_WEIGHT_KEYS = frozenset({"wq", "wk", "wv", "wo", "w1", "w2"})


def _replicated_spec(shape):
    """Full-extent weight block; index_map is constant across the grid, so it is
    single-buffered (nothing to double-buffer)."""
    zeros = (0,) * len(shape)
    idx = lambda b, _z=zeros: _z
    if hasattr(pl, "Buffered"):
        try:
            return pl.BlockSpec(shape, idx, pipeline_mode=pl.Buffered(1))
        except TypeError:   # older jax without the pipeline_mode kwarg
            pass
    return pl.BlockSpec(shape, idx)


def _num_tensorcores_per_chip():
    """2 on v7x (two TensorCores share a chip), else 1 (v2-v6)."""
    try:
        kind = (jax.devices()[0].device_kind or "").lower()
    except Exception:
        return 1
    return 2 if ("v7" in kind or "7x" in kind) else 1


@jax.jit
def text_encoder_forward(params, input_ids, attention_mask):
    """Equivalent of TextEncoder.forward: DistilBERT encoder, return CLS token."""
    B, S = input_ids.shape
    D = D_MODEL

    # Embedding gather (plain JAX glue) -- everything after this is one kernel.
    # TODO(synk): at production shapes, pull the gather in-kernel via
    # PrefetchScalarGridSpec (input_ids as scalar prefetch driving a row-gather
    # index_map on word_emb) to save one HBM write+read of the (B,S,D) tensor.
    pos_ids = jnp.arange(S, dtype=jnp.int32)
    emb = (params["word_emb"][input_ids]
           + params["pos_emb"][pos_ids][None, :, :]).astype(jnp.float32)
    mask3 = attention_mask.astype(jnp.int32)[:, None, :]        # (B, 1, S)

    # Generation-aware grid: single block on 1-TC chips (v5e/v6e); split into
    # 2 parallel batch blocks only on v7x AND only if each half keeps a
    # reasonable matmul M dimension.
    split_ok = (_num_tensorcores_per_chip() >= 2
                and B >= 2 and B % 2 == 0 and (B // 2) * S >= 128)
    n_blocks = 2 if split_ok else 1
    BB = B // n_blocks

    # MXU weight matrices go in as bf16 (2x MXU rate on v6e/v7x, half the
    # weight VMEM + DMA bytes); biases / LayerNorm params stay f32.
    weights = [params["emb_ln_g"], params["emb_ln_b"]]
    for lp in params["layers"]:
        for key in _LAYER_KEYS:
            w = lp[key]
            weights.append(w.astype(jnp.bfloat16) if key in _MXU_WEIGHT_KEYS else w)

    in_specs = [pl.BlockSpec((BB, S, D), lambda b: (b, 0, 0)),
                pl.BlockSpec((BB, 1, S), lambda b: (b, 0, 0))]
    in_specs += [_replicated_spec(w.shape) for w in weights]

    # TODO(synk): at real DistilBERT size (D=768, FFN=3072, 6 layers) do NOT keep
    # all layers' weights resident: add a grid axis over layers (weights indexed
    # by layer, activations carried in VMEM scratch) or pltpu.emit_pipeline so
    # layer l+1's weight DMA hides under layer l's compute (v7x VMEM is 64 MiB).
    out = pl.pallas_call(
        fused_text_encoder_kernel,
        out_shape=jax.ShapeDtypeStruct((B, 1, D), jnp.float32),
        grid=(n_blocks,),
        in_specs=in_specs,
        out_specs=pl.BlockSpec((BB, 1, D), lambda b: (b, 0, 0)),
        compiler_params=pltpu.CompilerParams(
            dimension_semantics=("parallel",),
            vmem_limit_bytes=32 * 1024 * 1024),
    )(emb, mask3, *weights)

    # target_token_idx = 0  (CLS position)
    return out[:, 0, :]


# ----------------------------- param init -------------------------------------
def init_params(key):
    std = 0.02
    n_keys = 4 + N_LAYERS * 6
    keys = list(jax.random.split(key, n_keys))
    nk = iter(keys)

    def norm(shape):
        return (std * jax.random.normal(next(nk), shape)).astype(jnp.float32)

    params = {
        "word_emb": norm((VOCAB, D_MODEL)),
        "pos_emb": norm((MAX_POS, D_MODEL)),
        "emb_ln_g": jnp.ones((1, D_MODEL), jnp.float32),
        "emb_ln_b": jnp.zeros((1, D_MODEL), jnp.float32),
        "layers": [],
    }
    for _ in range(N_LAYERS):
        lp = {
            "wq": norm((D_MODEL, D_MODEL)), "bq": jnp.zeros((1, D_MODEL), jnp.float32),
            "wk": norm((D_MODEL, D_MODEL)), "bk": jnp.zeros((1, D_MODEL), jnp.float32),
            "wv": norm((D_MODEL, D_MODEL)), "bv": jnp.zeros((1, D_MODEL), jnp.float32),
            "wo": norm((D_MODEL, D_MODEL)), "bo": jnp.zeros((1, D_MODEL), jnp.float32),
            "ln1_g": jnp.ones((1, D_MODEL), jnp.float32),
            "ln1_b": jnp.zeros((1, D_MODEL), jnp.float32),
            "w1": norm((D_MODEL, FFN_DIM)), "b1": jnp.zeros((1, FFN_DIM), jnp.float32),
            "w2": norm((FFN_DIM, D_MODEL)), "b2": jnp.zeros((1, D_MODEL), jnp.float32),
            "ln2_g": jnp.ones((1, D_MODEL), jnp.float32),
            "ln2_b": jnp.zeros((1, D_MODEL), jnp.float32),
        }
        params["layers"].append(lp)
    return params


# ----------------------------- main --------------------------------------------
if __name__ == "__main__":
    key = jax.random.PRNGKey(0)
    pkey, ikey = jax.random.split(key)
    params = init_params(pkey)

    B, S = 2, 8
    input_ids = jax.random.randint(ikey, (B, S), 0, VOCAB, dtype=jnp.int32)
    attention_mask = jnp.array(
        [[1, 1, 1, 1, 1, 1, 1, 1],
         [1, 1, 1, 1, 1, 0, 0, 0]], dtype=jnp.int32)

    out = text_encoder_forward(params, input_ids, attention_mask)
    out = jax.block_until_ready(out)
    assert out.shape == (B, D_MODEL), out.shape
    assert bool(jnp.all(jnp.isfinite(out)))
    print("KERNEL_OK")
</pallas_src>

<mosaic_0001>
module attributes {stable_mosaic.version = 11 : i64} {
  func.func @fused_text_encoder_kernel(%arg0: i32, %arg1: memref<2x8x32xf32, #tpu.memory_space<vmem>>, %arg2: memref<2x1x8xi32, #tpu.memory_space<vmem>>, %arg3: memref<1x32xf32, #tpu.memory_space<vmem>>, %arg4: memref<1x32xf32, #tpu.memory_space<vmem>>, %arg5: memref<32x32xbf16, #tpu.memory_space<vmem>>, %arg6: memref<1x32xf32, #tpu.memory_space<vmem>>, %arg7: memref<32x32xbf16, #tpu.memory_space<vmem>>, %arg8: memref<1x32xf32, #tpu.memory_space<vmem>>, %arg9: memref<32x32xbf16, #tpu.memory_space<vmem>>, %arg10: memref<1x32xf32, #tpu.memory_space<vmem>>, %arg11: memref<32x32xbf16, #tpu.memory_space<vmem>>, %arg12: memref<1x32xf32, #tpu.memory_space<vmem>>, %arg13: memref<1x32xf32, #tpu.memory_space<vmem>>, %arg14: memref<1x32xf32, #tpu.memory_space<vmem>>, %arg15: memref<32x64xbf16, #tpu.memory_space<vmem>>, %arg16: memref<1x64xf32, #tpu.memory_space<vmem>>, %arg17: memref<64x32xbf16, #tpu.memory_space<vmem>>, %arg18: memref<1x32xf32, #tpu.memory_space<vmem>>, %arg19: memref<1x32xf32, #tpu.memory_space<vmem>>, %arg20: memref<1x32xf32, #tpu.memory_space<vmem>>, %arg21: memref<32x32xbf16, #tpu.memory_space<vmem>>, %arg22: memref<1x32xf32, #tpu.memory_space<vmem>>, %arg23: memref<32x32xbf16, #tpu.memory_space<vmem>>, %arg24: memref<1x32xf32, #tpu.memory_space<vmem>>, %arg25: memref<32x32xbf16, #tpu.memory_space<vmem>>, %arg26: memref<1x32xf32, #tpu.memory_space<vmem>>, %arg27: memref<32x32xbf16, #tpu.memory_space<vmem>>, %arg28: memref<1x32xf32, #tpu.memory_space<vmem>>, %arg29: memref<1x32xf32, #tpu.memory_space<vmem>>, %arg30: memref<1x32xf32, #tpu.memory_space<vmem>>, %arg31: memref<32x64xbf16, #tpu.memory_space<vmem>>, %arg32: memref<1x64xf32, #tpu.memory_space<vmem>>, %arg33: memref<64x32xbf16, #tpu.memory_space<vmem>>, %arg34: memref<1x32xf32, #tpu.memory_space<vmem>>, %arg35: memref<1x32xf32, #tpu.memory_space<vmem>>, %arg36: memref<1x32xf32, #tpu.memory_space<vmem>>, %arg37: memref<2x1x32xf32, #tpu.memory_space<vmem>>) attributes {dimension_semantics = [#tpu.dimension_semantics<parallel>], iteration_bounds = array<i64: 1>, scalar_prefetch = 0 : i64, scratch_operands = 0 : i64, tpu.core_type = #tpu.core_type<tc>, window_params = [{transform_indices = @transform_0, window_bounds = array<i64: 2, 8, 32>}, {transform_indices = @transform_1, window_bounds = array<i64: 2, 1, 8>}, {pipeline_mode = #tpu.pipeline_mode<synchronous>, transform_indices = @transform_2, window_bounds = array<i64: 1, 32>}, {pipeline_mode = #tpu.pipeline_mode<synchronous>, transform_indices = @transform_3, window_bounds = array<i64: 1, 32>}, {pipeline_mode = #tpu.pipeline_mode<synchronous>, transform_indices = @transform_4, window_bounds = array<i64: 32, 32>}, {pipeline_mode = #tpu.pipeline_mode<synchronous>, transform_indices = @transform_5, window_bounds = array<i64: 1, 32>}, {pipeline_mode = #tpu.pipeline_mode<synchronous>, transform_indices = @transform_6, window_bounds = array<i64: 32, 32>}, {pipeline_mode = #tpu.pipeline_mode<synchronous>, transform_indices = @transform_7, window_bounds = array<i64: 1, 32>}, {pipeline_mode = #tpu.pipeline_mode<synchronous>, transform_indices = @transform_8, window_bounds = array<i64: 32, 32>}, {pipeline_mode = #tpu.pipeline_mode<synchronous>, transform_indices = @transform_9, window_bounds = array<i64: 1, 32>}, {pipeline_mode = #tpu.pipeline_mode<synchronous>, transform_indices = @transform_10, window_bounds = array<i64: 32, 32>}, {pipeline_mode = #tpu.pipeline_mode<synchronous>, transform_indices = @transform_11, window_bounds = array<i64: 1, 32>}, {pipeline_mode = #tpu.pipeline_mode<synchronous>, transform_indices = @transform_12, window_bounds = array<i64: 1, 32>}, {pipeline_mode = #tpu.pipeline_mode<synchronous>, transform_indices = @transform_13, window_bounds = array<i64: 1, 32>}, {pipeline_mode = #tpu.pipeline_mode<synchronous>, transform_indices = @transform_14, window_bounds = array<i64: 32, 64>}, {pipeline_mode = #tpu.pipeline_mode<synchronous>, transform_indices = @transform_15, window_bounds = array<i64: 1, 64>}, {pipeline_mode = #tpu.pipeline_mode<synchronous>, transform_indices = @transform_16, window_bounds = array<i64: 64, 32>}, {pipeline_mode = #tpu.pipeline_mode<synchronous>, transform_indices = @transform_17, window_bounds = array<i64: 1, 32>}, {pipeline_mode = #tpu.pipeline_mode<synchronous>, transform_indices = @transform_18, window_bounds = array<i64: 1, 32>}, {pipeline_mode = #tpu.pipeline_mode<synchronous>, transform_indices = @transform_19, window_bounds = array<i64: 1, 32>}, {pipeline_mode = #tpu.pipeline_mode<synchronous>, transform_indices = @transform_20, window_bounds = array<i64: 32, 32>}, {pipeline_mode = #tpu.pipeline_mode<synchronous>, transform_indices = @transform_21, window_bounds = array<i64: 1, 32>}, {pipeline_mode = #tpu.pipeline_mode<synchronous>, transform_indices = @transform_22, window_bounds = array<i64: 32, 32>}, {pipeline_mode = #tpu.pipeline_mode<synchronous>, transform_indices = @transform_23, window_bounds = array<i64: 1, 32>}, {pipeline_mode = #tpu.pipeline_mode<synchronous>, transform_indices = @transform_24, window_bounds = array<i64: 32, 32>}, {pipeline_mode = #tpu.pipeline_mode<synchronous>, transform_indices = @transform_25, window_bounds = array<i64: 1, 32>}, {pipeline_mode = #tpu.pipeline_mode<synchronous>, transform_indices = @transform_26, window_bounds = array<i64: 32, 32>}, {pipeline_mode = #tpu.pipeline_mode<synchronous>, transform_indices = @transform_27, window_bounds = array<i64: 1, 32>}, {pipeline_mode = #tpu.pipeline_mode<synchronous>, transform_indices = @transform_28, window_bounds = array<i64: 1, 32>}, {pipeline_mode = #tpu.pipeline_mode<synchronous>, transform_indices = @transform_29, window_bounds = array<i64: 1, 32>}, {pipeline_mode = #tpu.pipeline_mode<synchronous>, transform_indices = @transform_30, window_bounds = array<i64: 32, 64>}, {pipeline_mode = #tpu.pipeline_mode<synchronous>, transform_indices = @transform_31, window_bounds = array<i64: 1, 64>}, {pipeline_mode = #tpu.pipeline_mode<synchronous>, transform_indices = @transform_32, window_bounds = array<i64: 64, 32>}, {pipeline_mode = #tpu.pipeline_mode<synchronous>, transform_indices = @transform_33, window_bounds = array<i64: 1, 32>}, {pipeline_mode = #tpu.pipeline_mode<synchronous>, transform_indices = @transform_34, window_bounds = array<i64: 1, 32>}, {pipeline_mode = #tpu.pipeline_mode<synchronous>, transform_indices = @transform_35, window_bounds = array<i64: 1, 32>}, {transform_indices = @transform_36, window_bounds = array<i64: 2, 1, 32>}]} {
    %c0 = arith.constant 0 : index
    %c0_0 = arith.constant 0 : index
    %c0_1 = arith.constant 0 : index
    %0 = vector.load %arg1[%c0, %c0_0, %c0_1] : memref<2x8x32xf32, #tpu.memory_space<vmem>>, vector<2x8x32xf32>
    %1 = vector.shape_cast %0 : vector<2x8x32xf32> to vector<16x32xf32>
    %c0_2 = arith.constant 0 : index
    %c0_3 = arith.constant 0 : index
    %2 = vector.load %arg3[%c0_2, %c0_3] : memref<1x32xf32, #tpu.memory_space<vmem>>, vector<1x32xf32>
    %c0_4 = arith.constant 0 : index
    %c0_5 = arith.constant 0 : index
    %3 = vector.load %arg4[%c0_4, %c0_5] : memref<1x32xf32, #tpu.memory_space<vmem>>, vector<1x32xf32>
    %cst = arith.constant dense<0.000000e+00> : vector<16xf32>
    %4 = vector.multi_reduction <add>, %1, %cst [1] : vector<16x32xf32> to vector<16xf32>
    %5 = vector.shape_cast %4 : vector<16xf32> to vector<16x1xf32>
    %cst_6 = arith.constant 3.200000e+01 : f32
    %6 = vector.broadcast %cst_6 : f32 to vector<16x1xf32>
    %7 = arith.divf %5, %6 : vector<16x1xf32>
    %8 = vector.broadcast %7 : vector<16x1xf32> to vector<16x32xf32>
    %9 = arith.subf %1, %8 : vector<16x32xf32>
    %10 = arith.mulf %9, %9 : vector<16x32xf32>
    %cst_7 = arith.constant dense<0.000000e+00> : vector<16xf32>
    %11 = vector.multi_reduction <add>, %10, %cst_7 [1] : vector<16x32xf32> to vector<16xf32>
    %12 = vector.shape_cast %11 : vector<16xf32> to vector<16x1xf32>
    %cst_8 = arith.constant 3.200000e+01 : f32
    %13 = vector.broadcast %cst_8 : f32 to vector<16x1xf32>
    %14 = arith.divf %12, %13 : vector<16x1xf32>
    %15 = vector.broadcast %7 : vector<16x1xf32> to vector<16x32xf32>
    %16 = arith.subf %1, %15 : vector<16x32xf32>
    %cst_9 = arith.constant 9.99999996E-13 : f32
    %17 = vector.broadcast %cst_9 : f32 to vector<16x1xf32>
    %18 = arith.addf %14, %17 : vector<16x1xf32>
    %19 = math.rsqrt %18 : vector<16x1xf32>
    %20 = vector.broadcast %19 : vector<16x1xf32> to vector<16x32xf32>
    %21 = arith.mulf %16, %20 : vector<16x32xf32>
    %22 = vector.broadcast %2 : vector<1x32xf32> to vector<16x32xf32>
    %23 = arith.mulf %21, %22 : vector<16x32xf32>
    %24 = vector.broadcast %3 : vector<1x32xf32> to vector<16x32xf32>
    %25 = arith.addf %23, %24 : vector<16x32xf32>
    %c0_10 = arith.constant 0 : index
    %c0_11 = arith.constant 0 : index
    %c0_12 = arith.constant 0 : index
    %26 = vector.load %arg2[%c0_10, %c0_11, %c0_12] : memref<2x1x8xi32, #tpu.memory_space<vmem>>, vector<2x1x8xi32>
    %27 = arith.sitofp %26 : vector<2x1x8xi32> to vector<2x1x8xf32>
    %cst_13 = arith.constant 1.000000e+00 : f32
    %28 = vector.broadcast %cst_13 : f32 to vector<2x1x8xf32>
    %29 = arith.subf %28, %27 : vector<2x1x8xf32>
    %cst_14 = arith.constant -1.000000e+09 : f32
    %30 = vector.broadcast %cst_14 : f32 to vector<2x1x8xf32>
    %31 = arith.mulf %29, %30 : vector<2x1x8xf32>
    %32 = arith.truncf %25 : vector<16x32xf32> to vector<16x32xbf16>
    %c0_15 = arith.constant 0 : index
    %c0_16 = arith.constant 0 : index
    %33 = vector.load %arg5[%c0_15, %c0_16] : memref<32x32xbf16, #tpu.memory_space<vmem>>, vector<32x32xbf16>
    %cst_17 = arith.constant dense<0.000000e+00> : vector<16x32xf32>
    %34 = tpu.matmul %32, %33, %cst_17 {dimension_numbers = #tpu.dot_dimension_numbers<[1], [0], [0], [1], [0, 0, 1, 1], [], []>} : vector<16x32xbf16>, vector<32x32xbf16>, vector<16x32xf32> -> vector<16x32xf32>
    %c0_18 = arith.constant 0 : index
    %c0_19 = arith.constant 0 : index
    %35 = vector.load %arg6[%c0_18, %c0_19] : memref<1x32xf32, #tpu.memory_space<vmem>>, vector<1x32xf32>
    %36 = vector.broadcast %35 : vector<1x32xf32> to vector<16x32xf32>
    %37 = arith.addf %34, %36 : vector<16x32xf32>
    %cst_20 = arith.constant 0.353553385 : f32
    %38 = vector.broadcast %cst_20 : f32 to vector<16x32xf32>
    %39 = arith.mulf %37, %38 : vector<16x32xf32>
    %c0_21 = arith.constant 0 : index
    %c0_22 = arith.constant 0 : index
    %40 = vector.load %arg7[%c0_21, %c0_22] : memref<32x32xbf16, #tpu.memory_space<vmem>>, vector<32x32xbf16>
    %cst_23 = arith.constant dense<0.000000e+00> : vector<16x32xf32>
    %41 = tpu.matmul %32, %40, %cst_23 {dimension_numbers = #tpu.dot_dimension_numbers<[1], [0], [0], [1], [0, 0, 1, 1], [], []>} : vector<16x32xbf16>, vector<32x32xbf16>, vector<16x32xf32> -> vector<16x32xf32>
    %c0_24 = arith.constant 0 : index
    %c0_25 = arith.constant 0 : index
    %42 = vector.load %arg8[%c0_24, %c0_25] : memref<1x32xf32, #tpu.memory_space<vmem>>, vector<1x32xf32>
    %43 = vector.broadcast %42 : vector<1x32xf32> to vector<16x32xf32>
    %44 = arith.addf %41, %43 : vector<16x32xf32>
    %c0_26 = arith.constant 0 : index
    %c0_27 = arith.constant 0 : index
    %45 = vector.load %arg9[%c0_26, %c0_27] : memref<32x32xbf16, #tpu.memory_space<vmem>>, vector<32x32xbf16>
    %cst_28 = arith.constant dense<0.000000e+00> : vector<16x32xf32>
    %46 = tpu.matmul %32, %45, %cst_28 {dimension_numbers = #tpu.dot_dimension_numbers<[1], [0], [0], [1], [0, 0, 1, 1], [], []>} : vector<16x32xbf16>, vector<32x32xbf16>, vector<16x32xf32> -> vector<16x32xf32>
    %c0_29 = arith.constant 0 : index
    %c0_30 = arith.constant 0 : index
    %47 = vector.load %arg10[%c0_29, %c0_30] : memref<1x32xf32, #tpu.memory_space<vmem>>, vector<1x32xf32>
    %48 = vector.broadcast %47 : vector<1x32xf32> to vector<16x32xf32>
    %49 = arith.addf %46, %48 : vector<16x32xf32>
    %50 = vector.shape_cast %39 : vector<16x32xf32> to vector<2x8x32xf32>
    %51 = vector.shape_cast %44 : vector<16x32xf32> to vector<2x8x32xf32>
    %52 = vector.shape_cast %49 : vector<16x32xf32> to vector<2x8x32xf32>
    %53 = vector.extract_strided_slice %50 {offsets = [0, 0, 0], sizes = [2, 8, 8], strides = [1, 1, 1]} : vector<2x8x32xf32> to vector<2x8x8xf32>
    %54 = arith.truncf %53 : vector<2x8x8xf32> to vector<2x8x8xbf16>
    %55 = vector.extract_strided_slice %51 {offsets = [0, 0, 0], sizes = [2, 8, 8], strides = [1, 1, 1]} : vector<2x8x32xf32> to vector<2x8x8xf32>
    %56 = arith.truncf %55 : vector<2x8x8xf32> to vector<2x8x8xbf16>
    %57 = vector.extract_strided_slice %52 {offsets = [0, 0, 0], sizes = [2, 8, 8], strides = [1, 1, 1]} : vector<2x8x32xf32> to vector<2x8x8xf32>
    %58 = arith.truncf %57 : vector<2x8x8xf32> to vector<2x8x8xbf16>
    "tpu.trace_start"() <{level = 10 : i32, message = "bsd,btd->bst"}> : () -> ()
    %cst_31 = arith.constant dense<0.000000e+00> : vector<2x8x8xf32>
    %59 = tpu.matmul %54, %56, %cst_31 {dimension_numbers = #tpu.dot_dimension_numbers<[2], [2], [1], [1], [0, 0, 0, 1, 1, 1], [0], [0]>} : vector<2x8x8xbf16>, vector<2x8x8xbf16>, vector<2x8x8xf32> -> vector<2x8x8xf32>
    "tpu.trace_stop"() : () -> ()
    %60 = vector.broadcast %31 : vector<2x1x8xf32> to vector<2x8x8xf32>
    %61 = arith.addf %59, %60 : vector<2x8x8xf32>
    %cst_32 = arith.constant dense<0xFF800000> : vector<2x8xf32>
    %62 = vector.multi_reduction <maximumf>, %61, %cst_32 [2] : vector<2x8x8xf32> to vector<2x8xf32>
    %63 = vector.shape_cast %62 : vector<2x8xf32> to vector<2x8x1xf32>
    %64 = vector.broadcast %63 : vector<2x8x1xf32> to vector<2x8x8xf32>
    %65 = arith.subf %61, %64 : vector<2x8x8xf32>
    %66 = math.exp %65 : vector<2x8x8xf32>
    %cst_33 = arith.constant dense<0.000000e+00> : vector<2x8xf32>
    %67 = vector.multi_reduction <add>, %66, %cst_33 [2] : vector<2x8x8xf32> to vector<2x8xf32>
    %68 = vector.shape_cast %67 : vector<2x8xf32> to vector<2x8x1xf32>
    %69 = tpu.reciprocal %68 {approx = true} : vector<2x8x1xf32> -> vector<2x8x1xf32>
    %70 = vector.broadcast %69 : vector<2x8x1xf32> to vector<2x8x8xf32>
    %71 = arith.mulf %66, %70 : vector<2x8x8xf32>
    %72 = arith.truncf %71 : vector<2x8x8xf32> to vector<2x8x8xbf16>
    "tpu.trace_start"() <{level = 10 : i32, message = "bst,btd->bsd"}> : () -> ()
    %cst_34 = arith.constant dense<0.000000e+00> : vector<2x8x8xf32>
    %73 = tpu.matmul %72, %58, %cst_34 {dimension_numbers = #tpu.dot_dimension_numbers<[2], [1], [1], [2], [0, 0, 0, 1, 1, 2], [0], [0]>} : vector<2x8x8xbf16>, vector<2x8x8xbf16>, vector<2x8x8xf32> -> vector<2x8x8xf32>
    "tpu.trace_stop"() : () -> ()
    %74 = vector.extract_strided_slice %50 {offsets = [0, 0, 8], sizes = [2, 8, 8], strides = [1, 1, 1]} : vector<2x8x32xf32> to vector<2x8x8xf32>
    %75 = arith.truncf %74 : vector<2x8x8xf32> to vector<2x8x8xbf16>
    %76 = vector.extract_strided_slice %51 {offsets = [0, 0, 8], sizes = [2, 8, 8], strides = [1, 1, 1]} : vector<2x8x32xf32> to vector<2x8x8xf32>
    %77 = arith.truncf %76 : vector<2x8x8xf32> to vector<2x8x8xbf16>
    %78 = vector.extract_strided_slice %52 {offsets = [0, 0, 8], sizes = [2, 8, 8], strides = [1, 1, 1]} : vector<2x8x32xf32> to vector<2x8x8xf32>
    %79 = arith.truncf %78 : vector<2x8x8xf32> to vector<2x8x8xbf16>
    "tpu.trace_start"() <{level = 10 : i32, message = "bsd,btd->bst"}> : () -> ()
    %cst_35 = arith.constant dense<0.000000e+00> : vector<2x8x8xf32>
    %80 = tpu.matmul %75, %77, %cst_35 {dimension_numbers = #tpu.dot_dimension_numbers<[2], [2], [1], [1], [0, 0, 0, 1, 1, 1], [0], [0]>} : vector<2x8x8xbf16>, vector<2x8x8xbf16>, vector<2x8x8xf32> -> vector<2x8x8xf32>
    "tpu.trace_stop"() : () -> ()
    %81 = vector.broadcast %31 : vector<2x1x8xf32> to vector<2x8x8xf32>
    %82 = arith.addf %80, %81 : vector<2x8x8xf32>
    %cst_36 = arith.constant dense<0xFF800000> : vector<2x8xf32>
    %83 = vector.multi_reduction <maximumf>, %82, %cst_36 [2] : vector<2x8x8xf32> to vector<2x8xf32>
    %84 = vector.shape_cast %83 : vector<2x8xf32> to vector<2x8x1xf32>
    %85 = vector.broadcast %84 : vector<2x8x1xf32> to vector<2x8x8xf32>
    %86 = arith.subf %82, %85 : vector<2x8x8xf32>
    %87 = math.exp %86 : vector<2x8x8xf32>
    %cst_37 = arith.constant dense<0.000000e+00> : vector<2x8xf32>
    %88 = vector.multi_reduction <add>, %87, %cst_37 [2] : vector<2x8x8xf32> to vector<2x8xf32>
    %89 = vector.shape_cast %88 : vector<2x8xf32> to vector<2x8x1xf32>
    %90 = tpu.reciprocal %89 {approx = true} : vector<2x8x1xf32> -> vector<2x8x1xf32>
    %91 = vector.broadcast %90 : vector<2x8x1xf32> to vector<2x8x8xf32>
    %92 = arith.mulf %87, %91 : vector<2x8x8xf32>
    %93 = arith.truncf %92 : vector<2x8x8xf32> to vector<2x8x8xbf16>
    "tpu.trace_start"() <{level = 10 : i32, message = "bst,btd->bsd"}> : () -> ()
    %cst_38 = arith.constant dense<0.000000e+00> : vector<2x8x8xf32>
    %94 = tpu.matmul %93, %79, %cst_38 {dimension_numbers = #tpu.dot_dimension_numbers<[2], [1], [1], [2], [0, 0, 0, 1, 1, 2], [0], [0]>} : vector<2x8x8xbf16>, vector<2x8x8xbf16>, vector<2x8x8xf32> -> vector<2x8x8xf32>
    "tpu.trace_stop"() : () -> ()
    %95 = vector.extract_strided_slice %50 {offsets = [0, 0, 16], sizes = [2, 8, 8], strides = [1, 1, 1]} : vector<2x8x32xf32> to vector<2x8x8xf32>
    %96 = arith.truncf %95 : vector<2x8x8xf32> to vector<2x8x8xbf16>
    %97 = vector.extract_strided_slice %51 {offsets = [0, 0, 16], sizes = [2, 8, 8], strides = [1, 1, 1]} : vector<2x8x32xf32> to vector<2x8x8xf32>
    %98 = arith.truncf %97 : vector<2x8x8xf32> to vector<2x8x8xbf16>
    %99 = vector.extract_strided_slice %52 {offsets = [0, 0, 16], sizes = [2, 8, 8], strides = [1, 1, 1]} : vector<2x8x32xf32> to vector<2x8x8xf32>
    %100 = arith.truncf %99 : vector<2x8x8xf32> to vector<2x8x8xbf16>
    "tpu.trace_start"() <{level = 10 : i32, message = "bsd,btd->bst"}> : () -> ()
    %cst_39 = arith.constant dense<0.000000e+00> : vector<2x8x8xf32>
    %101 = tpu.matmul %96, %98, %cst_39 {dimension_numbers = #tpu.dot_dimension_numbers<[2], [2], [1], [1], [0, 0, 0, 1, 1, 1], [0], [0]>} : vector<2x8x8xbf16>, vector<2x8x8xbf16>, vector<2x8x8xf32> -> vector<2x8x8xf32>
    "tpu.trace_stop"() : () -> ()
    %102 = vector.broadcast %31 : vector<2x1x8xf32> to vector<2x8x8xf32>
    %103 = arith.addf %101, %102 : vector<2x8x8xf32>
    %cst_40 = arith.constant dense<0xFF800000> : vector<2x8xf32>
    %104 = vector.multi_reduction <maximumf>, %103, %cst_40 [2] : vector<2x8x8xf32> to vector<2x8xf32>
    %105 = vector.shape_cast %104 : vector<2x8xf32> to vector<2x8x1xf32>
    %106 = vector.broadcast %105 : vector<2x8x1xf32> to vector<2x8x8xf32>
    %107 = arith.subf %103, %106 : vector<2x8x8xf32>
    %108 = math.exp %107 : vector<2x8x8xf32>
    %cst_41 = arith.constant dense<0.000000e+00> : vector<2x8xf32>
    %109 = vector.multi_reduction <add>, %108, %cst_41 [2] : vector<2x8x8xf32> to vector<2x8xf32>
    %110 = vector.shape_cast %109 : vector<2x8xf32> to vector<2x8x1xf32>
    %111 = tpu.reciprocal %110 {approx = true} : vector<2x8x1xf32> -> vector<2x8x1xf32>
    %112 = vector.broadcast %111 : vector<2x8x1xf32> to vector<2x8x8xf32>
    %113 = arith.mulf %108, %112 : vector<2x8x8xf32>
    %114 = arith.truncf %113 : vector<2x8x8xf32> to vector<2x8x8xbf16>
    "tpu.trace_start"() <{level = 10 : i32, message = "bst,btd->bsd"}> : () -> ()
    %cst_42 = arith.constant dense<0.000000e+00> : vector<2x8x8xf32>
    %115 = tpu.matmul %114, %100, %cst_42 {dimension_numbers = #tpu.dot_dimension_numbers<[2], [1], [1], [2], [0, 0, 0, 1, 1, 2], [0], [0]>} : vector<2x8x8xbf16>, vector<2x8x8xbf16>, vector<2x8x8xf32> -> vector<2x8x8xf32>
    "tpu.trace_stop"() : () -> ()
    %116 = vector.extract_strided_slice %50 {offsets = [0, 0, 24], sizes = [2, 8, 8], strides = [1, 1, 1]} : vector<2x8x32xf32> to vector<2x8x8xf32>
    %117 = arith.truncf %116 : vector<2x8x8xf32> to vector<2x8x8xbf16>
    %118 = vector.extract_strided_slice %51 {offsets = [0, 0, 24], sizes = [2, 8, 8], strides = [1, 1, 1]} : vector<2x8x32xf32> to vector<2x8x8xf32>
    %119 = arith.truncf %118 : vector<2x8x8xf32> to vector<2x8x8xbf16>
    %120 = vector.extract_strided_slice %52 {offsets = [0, 0, 24], sizes = [2, 8, 8], strides = [1, 1, 1]} : vector<2x8x32xf32> to vector<2x8x8xf32>
    %121 = arith.truncf %120 : vector<2x8x8xf32> to vector<2x8x8xbf16>
    "tpu.trace_start"() <{level = 10 : i32, message = "bsd,btd->bst"}> : () -> ()
    %cst_43 = arith.constant dense<0.000000e+00> : vector<2x8x8xf32>
    %122 = tpu.matmul %117, %119, %cst_43 {dimension_numbers = #tpu.dot_dimension_numbers<[2], [2], [1], [1], [0, 0, 0, 1, 1, 1], [0], [0]>} : vector<2x8x8xbf16>, vector<2x8x8xbf16>, vector<2x8x8xf32> -> vector<2x8x8xf32>
    "tpu.trace_stop"() : () -> ()
    %123 = vector.broadcast %31 : vector<2x1x8xf32> to vector<2x8x8xf32>
    %124 = arith.addf %122, %123 : vector<2x8x8xf32>
    %cst_44 = arith.constant dense<0xFF800000> : vector<2x8xf32>
    %125 = vector.multi_reduction <maximumf>, %124, %cst_44 [2] : vector<2x8x8xf32> to vector<2x8xf32>
    %126 = vector.shape_cast %125 : vector<2x8xf32> to vector<2x8x1xf32>
    %127 = vector.broadcast %126 : vector<2x8x1xf32> to vector<2x8x8xf32>
    %128 = arith.subf %124, %127 : vector<2x8x8xf32>
    %129 = math.exp %128 : vector<2x8x8xf32>
    %cst_45 = arith.constant dense<0.000000e+00> : vector<2x8xf32>
    %130 = vector.multi_reduction <add>, %129, %cst_45 [2] : vector<2x8x8xf32> to vector<2x8xf32>
    %131 = vector.shape_cast %130 : vector<2x8xf32> to vector<2x8x1xf32>
    %132 = tpu.reciprocal %131 {approx = true} : vector<2x8x1xf32> -> vector<2x8x1xf32>
    %133 = vector.broadcast %132 : vector<2x8x1xf32> to vector<2x8x8xf32>
    %134 = arith.mulf %129, %133 : vector<2x8x8xf32>
    %135 = arith.truncf %134 : vector<2x8x8xf32> to vector<2x8x8xbf16>
    "tpu.trace_start"() <{level = 10 : i32, message = "bst,btd->bsd"}> : () -> ()
    %cst_46 = arith.constant dense<0.000000e+00> : vector<2x8x8xf32>
    %136 = tpu.matmul %135, %121, %cst_46 {dimension_numbers = #tpu.dot_dimension_numbers<[2], [1], [1], [2], [0, 0, 0, 1, 1, 2], [0], [0]>} : vector<2x8x8xbf16>, vector<2x8x8xbf16>, vector<2x8x8xf32> -> vector<2x8x8xf32>
    "tpu.trace_stop"() : () -> ()
    %137 = tpu.concatenate %73, %94, %115, %136 in 2 : vector<2x8x8xf32>, vector<2x8x8xf32>, vector<2x8x8xf32>, vector<2x8x8xf32> -> vector<2x8x32xf32>
    %138 = vector.shape_cast %137 : vector<2x8x32xf32> to vector<16x32xf32>
    %139 = arith.truncf %138 : vector<16x32xf32> to vector<16x32xbf16>
    %c0_47 = arith.constant 0 : index
    %c0_48 = arith.constant 0 : index
    %140 = vector.load %arg11[%c0_47, %c0_48] : memref<32x32xbf16, #tpu.memory_space<vmem>>, vector<32x32xbf16>
    %cst_49 = arith.constant dense<0.000000e+00> : vector<16x32xf32>
    %141 = tpu.matmul %139, %140, %cst_49 {dimension_numbers = #tpu.dot_dimension_numbers<[1], [0], [0], [1], [0, 0, 1, 1], [], []>} : vector<16x32xbf16>, vector<32x32xbf16>, vector<16x32xf32> -> vector<16x32xf32>
    %c0_50 = arith.constant 0 : index
    %c0_51 = arith.constant 0 : index
    %142 = vector.load %arg12[%c0_50, %c0_51] : memref<1x32xf32, #tpu.memory_space<vmem>>, vector<1x32xf32>
    %143 = vector.broadcast %142 : vector<1x32xf32> to vector<16x32xf32>
    %144 = arith.addf %141, %143 : vector<16x32xf32>
    %145 = arith.addf %25, %144 : vector<16x32xf32>
    %c0_52 = arith.constant 0 : index
    %c0_53 = arith.constant 0 : index
    %146 = vector.load %arg13[%c0_52, %c0_53] : memref<1x32xf32, #tpu.memory_space<vmem>>, vector<1x32xf32>
    %c0_54 = arith.constant 0 : index
    %c0_55 = arith.constant 0 : index
    %147 = vector.load %arg14[%c0_54, %c0_55] : memref<1x32xf32, #tpu.memory_space<vmem>>, vector<1x32xf32>
    %cst_56 = arith.constant dense<0.000000e+00> : vector<16xf32>
    %148 = vector.multi_reduction <add>, %145, %cst_56 [1] : vector<16x32xf32> to vector<16xf32>
    %149 = vector.shape_cast %148 : vector<16xf32> to vector<16x1xf32>
    %cst_57 = arith.constant 3.200000e+01 : f32
    %150 = vector.broadcast %cst_57 : f32 to vector<16x1xf32>
    %151 = arith.divf %149, %150 : vector<16x1xf32>
    %152 = vector.broadcast %151 : vector<16x1xf32> to vector<16x32xf32>
    %153 = arith.subf %145, %152 : vector<16x32xf32>
    %154 = arith.mulf %153, %153 : vector<16x32xf32>
    %cst_58 = arith.constant dense<0.000000e+00> : vector<16xf32>
    %155 = vector.multi_reduction <add>, %154, %cst_58 [1] : vector<16x32xf32> to vector<16xf32>
    %156 = vector.shape_cast %155 : vector<16xf32> to vector<16x1xf32>
    %cst_59 = arith.constant 3.200000e+01 : f32
    %157 = vector.broadcast %cst_59 : f32 to vector<16x1xf32>
    %158 = arith.divf %156, %157 : vector<16x1xf32>
    %159 = vector.broadcast %151 : vector<16x1xf32> to vector<16x32xf32>
    %160 = arith.subf %145, %159 : vector<16x32xf32>
    %cst_60 = arith.constant 9.99999996E-13 : f32
    %161 = vector.broadcast %cst_60 : f32 to vector<16x1xf32>
    %162 = arith.addf %158, %161 : vector<16x1xf32>
    %163 = math.rsqrt %162 : vector<16x1xf32>
    %164 = vector.broadcast %163 : vector<16x1xf32> to vector<16x32xf32>
    %165 = arith.mulf %160, %164 : vector<16x32xf32>
    %166 = vector.broadcast %146 : vector<1x32xf32> to vector<16x32xf32>
    %167 = arith.mulf %165, %166 : vector<16x32xf32>
    %168 = vector.broadcast %147 : vector<1x32xf32> to vector<16x32xf32>
    %169 = arith.addf %167, %168 : vector<16x32xf32>
    %170 = arith.truncf %169 : vector<16x32xf32> to vector<16x32xbf16>
    %c0_61 = arith.constant 0 : index
    %c0_62 = arith.constant 0 : index
    %171 = vector.load %arg15[%c0_61, %c0_62] : memref<32x64xbf16, #tpu.memory_space<vmem>>, vector<32x64xbf16>
    %cst_63 = arith.constant dense<0.000000e+00> : vector<16x64xf32>
    %172 = tpu.matmul %170, %171, %cst_63 {dimension_numbers = #tpu.dot_dimension_numbers<[1], [0], [0], [1], [0, 0, 1, 1], [], []>} : vector<16x32xbf16>, vector<32x64xbf16>, vector<16x64xf32> -> vector<16x64xf32>
    %c0_64 = arith.constant 0 : index
    %c0_65 = arith.constant 0 : index
    %173 = vector.load %arg16[%c0_64, %c0_65] : memref<1x64xf32, #tpu.memory_space<vmem>>, vector<1x64xf32>
    %174 = vector.broadcast %173 : vector<1x64xf32> to vector<16x64xf32>
    %175 = arith.addf %172, %174 : vector<16x64xf32>
    %cst_66 = arith.constant 5.000000e-01 : f32
    %176 = vector.broadcast %cst_66 : f32 to vector<16x64xf32>
    %177 = arith.mulf %176, %175 : vector<16x64xf32>
    %178 = arith.mulf %175, %175 : vector<16x64xf32>
    %179 = arith.mulf %175, %178 : vector<16x64xf32>
    %cst_67 = arith.constant 4.471500e-02 : f32
    %180 = vector.broadcast %cst_67 : f32 to vector<16x64xf32>
    %181 = arith.mulf %180, %179 : vector<16x64xf32>
    %182 = arith.addf %175, %181 : vector<16x64xf32>
    %cst_68 = arith.constant 0.797884583 : f32
    %183 = vector.broadcast %cst_68 : f32 to vector<16x64xf32>
    %184 = arith.mulf %183, %182 : vector<16x64xf32>
    %185 = math.tanh %184 : vector<16x64xf32>
    %cst_69 = arith.constant 1.000000e+00 : f32
    %186 = vector.broadcast %cst_69 : f32 to vector<16x64xf32>
    %187 = arith.addf %186, %185 : vector<16x64xf32>
    %188 = arith.mulf %177, %187 : vector<16x64xf32>
    %189 = arith.truncf %188 : vector<16x64xf32> to vector<16x64xbf16>
    %c0_70 = arith.constant 0 : index
    %c0_71 = arith.constant 0 : index
    %190 = vector.load %arg17[%c0_70, %c0_71] : memref<64x32xbf16, #tpu.memory_space<vmem>>, vector<64x32xbf16>
    %cst_72 = arith.constant dense<0.000000e+00> : vector<16x32xf32>
    %191 = tpu.matmul %189, %190, %cst_72 {dimension_numbers = #tpu.dot_dimension_numbers<[1], [0], [0], [1], [0, 0, 1, 1], [], []>} : vector<16x64xbf16>, vector<64x32xbf16>, vector<16x32xf32> -> vector<16x32xf32>
    %c0_73 = arith.constant 0 : index
    %c0_74 = arith.constant 0 : index
    %192 = vector.load %arg18[%c0_73, %c0_74] : memref<1x32xf32, #tpu.memory_space<vmem>>, vector<1x32xf32>
    %193 = vector.broadcast %192 : vector<1x32xf32> to vector<16x32xf32>
    %194 = arith.addf %191, %193 : vector<16x32xf32>
    %195 = arith.addf %169, %194 : vector<16x32xf32>
    %c0_75 = arith.constant 0 : index
    %c0_76 = arith.constant 0 : index
    %196 = vector.load %arg19[%c0_75, %c0_76] : memref<1x32xf32, #tpu.memory_space<vmem>>, vector<1x32xf32>
    %c0_77 = arith.constant 0 : index
    %c0_78 = arith.constant 0 : index
    %197 = vector.load %arg20[%c0_77, %c0_78] : memref<1x32xf32, #tpu.memory_space<vmem>>, vector<1x32xf32>
    %cst_79 = arith.constant dense<0.000000e+00> : vector<16xf32>
    %198 = vector.multi_reduction <add>, %195, %cst_79 [1] : vector<16x32xf32> to vector<16xf32>
    %199 = vector.shape_cast %198 : vector<16xf32> to vector<16x1xf32>
    %cst_80 = arith.constant 3.200000e+01 : f32
    %200 = vector.broadcast %cst_80 : f32 to vector<16x1xf32>
    %201 = arith.divf %199, %200 : vector<16x1xf32>
    %202 = vector.broadcast %201 : vector<16x1xf32> to vector<16x32xf32>
    %203 = arith.subf %195, %202 : vector<16x32xf32>
    %204 = arith.mulf %203, %203 : vector<16x32xf32>
    %cst_81 = arith.constant dense<0.000000e+00> : vector<16xf32>
    %205 = vector.multi_reduction <add>, %204, %cst_81 [1] : vector<16x32xf32> to vector<16xf32>
    %206 = vector.shape_cast %205 : vector<16xf32> to vector<16x1xf32>
    %cst_82 = arith.constant 3.200000e+01 : f32
    %207 = vector.broadcast %cst_82 : f32 to vector<16x1xf32>
    %208 = arith.divf %206, %207 : vector<16x1xf32>
    %209 = vector.broadcast %201 : vector<16x1xf32> to vector<16x32xf32>
    %210 = arith.subf %195, %209 : vector<16x32xf32>
    %cst_83 = arith.constant 9.99999996E-13 : f32
    %211 = vector.broadcast %cst_83 : f32 to vector<16x1xf32>
    %212 = arith.addf %208, %211 : vector<16x1xf32>
    %213 = math.rsqrt %212 : vector<16x1xf32>
    %214 = vector.broadcast %213 : vector<16x1xf32> to vector<16x32xf32>
    %215 = arith.mulf %210, %214 : vector<16x32xf32>
    %216 = vector.broadcast %196 : vector<1x32xf32> to vector<16x32xf32>
    %217 = arith.mulf %215, %216 : vector<16x32xf32>
    %218 = vector.broadcast %197 : vector<1x32xf32> to vector<16x32xf32>
    %219 = arith.addf %217, %218 : vector<16x32xf32>
    %220 = arith.truncf %219 : vector<16x32xf32> to vector<16x32xbf16>
    %c0_84 = arith.constant 0 : index
    %c0_85 = arith.constant 0 : index
    %221 = vector.load %arg21[%c0_84, %c0_85] : memref<32x32xbf16, #tpu.memory_space<vmem>>, vector<32x32xbf16>
    %cst_86 = arith.constant dense<0.000000e+00> : vector<16x32xf32>
    %222 = tpu.matmul %220, %221, %cst_86 {dimension_numbers = #tpu.dot_dimension_numbers<[1], [0], [0], [1], [0, 0, 1, 1], [], []>} : vector<16x32xbf16>, vector<32x32xbf16>, vector<16x32xf32> -> vector<16x32xf32>
    %c0_87 = arith.constant 0 : index
    %c0_88 = arith.constant 0 : index
    %223 = vector.load %arg22[%c0_87, %c0_88] : memref<1x32xf32, #tpu.memory_space<vmem>>, vector<1x32xf32>
    %224 = vector.broadcast %223 : vector<1x32xf32> to vector<16x32xf32>
    %225 = arith.addf %222, %224 : vector<16x32xf32>
    %cst_89 = arith.constant 0.353553385 : f32
    %226 = vector.broadcast %cst_89 : f32 to vector<16x32xf32>
    %227 = arith.mulf %225, %226 : vector<16x32xf32>
    %c0_90 = arith.constant 0 : index
    %c0_91 = arith.constant 0 : index
    %228 = vector.load %arg23[%c0_90, %c0_91] : memref<32x32xbf16, #tpu.memory_space<vmem>>, vector<32x32xbf16>
    %cst_92 = arith.constant dense<0.000000e+00> : vector<16x32xf32>
    %229 = tpu.matmul %220, %228, %cst_92 {dimension_numbers = #tpu.dot_dimension_numbers<[1], [0], [0], [1], [0, 0, 1, 1], [], []>} : vector<16x32xbf16>, vector<32x32xbf16>, vector<16x32xf32> -> vector<16x32xf32>
    %c0_93 = arith.constant 0 : index
    %c0_94 = arith.constant 0 : index
    %230 = vector.load %arg24[%c0_93, %c0_94] : memref<1x32xf32, #tpu.memory_space<vmem>>, vector<1x32xf32>
    %231 = vector.broadcast %230 : vector<1x32xf32> to vector<16x32xf32>
    %232 = arith.addf %229, %231 : vector<16x32xf32>
    %c0_95 = arith.constant 0 : index
    %c0_96 = arith.constant 0 : index
    %233 = vector.load %arg25[%c0_95, %c0_96] : memref<32x32xbf16, #tpu.memory_space<vmem>>, vector<32x32xbf16>
    %cst_97 = arith.constant dense<0.000000e+00> : vector<16x32xf32>
    %234 = tpu.matmul %220, %233, %cst_97 {dimension_numbers = #tpu.dot_dimension_numbers<[1], [0], [0], [1], [0, 0, 1, 1], [], []>} : vector<16x32xbf16>, vector<32x32xbf16>, vector<16x32xf32> -> vector<16x32xf32>
    %c0_98 = arith.constant 0 : index
    %c0_99 = arith.constant 0 : index
    %235 = vector.load %arg26[%c0_98, %c0_99] : memref<1x32xf32, #tpu.memory_space<vmem>>, vector<1x32xf32>
    %236 = vector.broadcast %235 : vector<1x32xf32> to vector<16x32xf32>
    %237 = arith.addf %234, %236 : vector<16x32xf32>
    %238 = vector.shape_cast %227 : vector<16x32xf32> to vector<2x8x32xf32>
    %239 = vector.shape_cast %232 : vector<16x32xf32> to vector<2x8x32xf32>
    %240 = vector.shape_cast %237 : vector<16x32xf32> to vector<2x8x32xf32>
    %241 = vector.extract_strided_slice %238 {offsets = [0, 0, 0], sizes = [2, 8, 8], strides = [1, 1, 1]} : vector<2x8x32xf32> to vector<2x8x8xf32>
    %242 = arith.truncf %241 : vector<2x8x8xf32> to vector<2x8x8xbf16>
    %243 = vector.extract_strided_slice %239 {offsets = [0, 0, 0], sizes = [2, 8, 8], strides = [1, 1, 1]} : vector<2x8x32xf32> to vector<2x8x8xf32>
    %244 = arith.truncf %243 : vector<2x8x8xf32> to vector<2x8x8xbf16>
    %245 = vector.extract_strided_slice %240 {offsets = [0, 0, 0], sizes = [2, 8, 8], strides = [1, 1, 1]} : vector<2x8x32xf32> to vector<2x8x8xf32>
    %246 = arith.truncf %245 : vector<2x8x8xf32> to vector<2x8x8xbf16>
    "tpu.trace_start"() <{level = 10 : i32, message = "bsd,btd->bst"}> : () -> ()
    %cst_100 = arith.constant dense<0.000000e+00> : vector<2x8x8xf32>
    %247 = tpu.matmul %242, %244, %cst_100 {dimension_numbers = #tpu.dot_dimension_numbers<[2], [2], [1], [1], [0, 0, 0, 1, 1, 1], [0], [0]>} : vector<2x8x8xbf16>, vector<2x8x8xbf16>, vector<2x8x8xf32> -> vector<2x8x8xf32>
    "tpu.trace_stop"() : () -> ()
    %248 = vector.broadcast %31 : vector<2x1x8xf32> to vector<2x8x8xf32>
    %249 = arith.addf %247, %248 : vector<2x8x8xf32>
    %cst_101 = arith.constant dense<0xFF800000> : vector<2x8xf32>
    %250 = vector.multi_reduction <maximumf>, %249, %cst_101 [2] : vector<2x8x8xf32> to vector<2x8xf32>
    %251 = vector.shape_cast %250 : vector<2x8xf32> to vector<2x8x1xf32>
    %252 = vector.broadcast %251 : vector<2x8x1xf32> to vector<2x8x8xf32>
    %253 = arith.subf %249, %252 : vector<2x8x8xf32>
    %254 = math.exp %253 : vector<2x8x8xf32>
    %cst_102 = arith.constant dense<0.000000e+00> : vector<2x8xf32>
    %255 = vector.multi_reduction <add>, %254, %cst_102 [2] : vector<2x8x8xf32> to vector<2x8xf32>
    %256 = vector.shape_cast %255 : vector<2x8xf32> to vector<2x8x1xf32>
    %257 = tpu.reciprocal %256 {approx = true} : vector<2x8x1xf32> -> vector<2x8x1xf32>
    %258 = vector.broadcast %257 : vector<2x8x1xf32> to vector<2x8x8xf32>
    %259 = arith.mulf %254, %258 : vector<2x8x8xf32>
    %260 = arith.truncf %259 : vector<2x8x8xf32> to vector<2x8x8xbf16>
    "tpu.trace_start"() <{level = 10 : i32, message = "bst,btd->bsd"}> : () -> ()
    %cst_103 = arith.constant dense<0.000000e+00> : vector<2x8x8xf32>
    %261 = tpu.matmul %260, %246, %cst_103 {dimension_numbers = #tpu.dot_dimension_numbers<[2], [1], [1], [2], [0, 0, 0, 1, 1, 2], [0], [0]>} : vector<2x8x8xbf16>, vector<2x8x8xbf16>, vector<2x8x8xf32> -> vector<2x8x8xf32>
    "tpu.trace_stop"() : () -> ()
    %262 = vector.extract_strided_slice %238 {offsets = [0, 0, 8], sizes = [2, 8, 8], strides = [1, 1, 1]} : vector<2x8x32xf32> to vector<2x8x8xf32>
    %263 = arith.truncf %262 : vector<2x8x8xf32> to vector<2x8x8xbf16>
    %264 = vector.extract_strided_slice %239 {offsets = [0, 0, 8], sizes = [2, 8, 8], strides = [1, 1, 1]} : vector<2x8x32xf32> to vector<2x8x8xf32>
    %265 = arith.truncf %264 : vector<2x8x8xf32> to vector<2x8x8xbf16>
    %266 = vector.extract_strided_slice %240 {offsets = [0, 0, 8], sizes = [2, 8, 8], strides = [1, 1, 1]} : vector<2x8x32xf32> to vector<2x8x8xf32>
    %267 = arith.truncf %266 : vector<2x8x8xf32> to vector<2x8x8xbf16>
    "tpu.trace_start"() <{level = 10 : i32, message = "bsd,btd->bst"}> : () -> ()
    %cst_104 = arith.constant dense<0.000000e+00> : vector<2x8x8xf32>
    %268 = tpu.matmul %263, %265, %cst_104 {dimension_numbers = #tpu.dot_dimension_numbers<[2], [2], [1], [1], [0, 0, 0, 1, 1, 1], [0], [0]>} : vector<2x8x8xbf16>, vector<2x8x8xbf16>, vector<2x8x8xf32> -> vector<2x8x8xf32>
    "tpu.trace_stop"() : () -> ()
    %269 = vector.broadcast %31 : vector<2x1x8xf32> to vector<2x8x8xf32>
    %270 = arith.addf %268, %269 : vector<2x8x8xf32>
    %cst_105 = arith.constant dense<0xFF800000> : vector<2x8xf32>
    %271 = vector.multi_reduction <maximumf>, %270, %cst_105 [2] : vector<2x8x8xf32> to vector<2x8xf32>
    %272 = vector.shape_cast %271 : vector<2x8xf32> to vector<2x8x1xf32>
    %273 = vector.broadcast %272 : vector<2x8x1xf32> to vector<2x8x8xf32>
    %274 = arith.subf %270, %273 : vector<2x8x8xf32>
    %275 = math.exp %274 : vector<2x8x8xf32>
    %cst_106 = arith.constant dense<0.000000e+00> : vector<2x8xf32>
    %276 = vector.multi_reduction <add>, %275, %cst_106 [2] : vector<2x8x8xf32> to vector<2x8xf32>
    %277 = vector.shape_cast %276 : vector<2x8xf32> to vector<2x8x1xf32>
    %278 = tpu.reciprocal %277 {approx = true} : vector<2x8x1xf32> -> vector<2x8x1xf32>
    %279 = vector.broadcast %278 : vector<2x8x1xf32> to vector<2x8x8xf32>
    %280 = arith.mulf %275, %279 : vector<2x8x8xf32>
    %281 = arith.truncf %280 : vector<2x8x8xf32> to vector<2x8x8xbf16>
    "tpu.trace_start"() <{level = 10 : i32, message = "bst,btd->bsd"}> : () -> ()
    %cst_107 = arith.constant dense<0.000000e+00> : vector<2x8x8xf32>
    %282 = tpu.matmul %281, %267, %cst_107 {dimension_numbers = #tpu.dot_dimension_numbers<[2], [1], [1], [2], [0, 0, 0, 1, 1, 2], [0], [0]>} : vector<2x8x8xbf16>, vector<2x8x8xbf16>, vector<2x8x8xf32> -> vector<2x8x8xf32>
    "tpu.trace_stop"() : () -> ()
    %283 = vector.extract_strided_slice %238 {offsets = [0, 0, 16], sizes = [2, 8, 8], strides = [1, 1, 1]} : vector<2x8x32xf32> to vector<2x8x8xf32>
    %284 = arith.truncf %283 : vector<2x8x8xf32> to vector<2x8x8xbf16>
    %285 = vector.extract_strided_slice %239 {offsets = [0, 0, 16], sizes = [2, 8, 8], strides = [1, 1, 1]} : vector<2x8x32xf32> to vector<2x8x8xf32>
    %286 = arith.truncf %285 : vector<2x8x8xf32> to vector<2x8x8xbf16>
    %287 = vector.extract_strided_slice %240 {offsets = [0, 0, 16], sizes = [2, 8, 8], strides = [1, 1, 1]} : vector<2x8x32xf32> to vector<2x8x8xf32>
    %288 = arith.truncf %287 : vector<2x8x8xf32> to vector<2x8x8xbf16>
    "tpu.trace_start"() <{level = 10 : i32, message = "bsd,btd->bst"}> : () -> ()
    %cst_108 = arith.constant dense<0.000000e+00> : vector<2x8x8xf32>
    %289 = tpu.matmul %284, %286, %cst_108 {dimension_numbers = #tpu.dot_dimension_numbers<[2], [2], [1], [1], [0, 0, 0, 1, 1, 1], [0], [0]>} : vector<2x8x8xbf16>, vector<2x8x8xbf16>, vector<2x8x8xf32> -> vector<2x8x8xf32>
    "tpu.trace_stop"() : () -> ()
    %290 = vector.broadcast %31 : vector<2x1x8xf32> to vector<2x8x8xf32>
    %291 = arith.addf %289, %290 : vector<2x8x8xf32>
    %cst_109 = arith.constant dense<0xFF800000> : vector<2x8xf32>
    %292 = vector.multi_reduction <maximumf>, %291, %cst_109 [2] : vector<2x8x8xf32> to vector<2x8xf32>
    %293 = vector.shape_cast %292 : vector<2x8xf32> to vector<2x8x1xf32>
    %294 = vector.broadcast %293 : vector<2x8x1xf32> to vector<2x8x8xf32>
    %295 = arith.subf %291, %294 : vector<2x8x8xf32>
    %296 = math.exp %295 : vector<2x8x8xf32>
    %cst_110 = arith.constant dense<0.000000e+00> : vector<2x8xf32>
    %297 = vector.multi_reduction <add>, %296, %cst_110 [2] : vector<2x8x8xf32> to vector<2x8xf32>
    %298 = vector.shape_cast %297 : vector<2x8xf32> to vector<2x8x1xf32>
    %299 = tpu.reciprocal %298 {approx = true} : vector<2x8x1xf32> -> vector<2x8x1xf32>
    %300 = vector.broadcast %299 : vector<2x8x1xf32> to vector<2x8x8xf32>
    %301 = arith.mulf %296, %300 : vector<2x8x8xf32>
    %302 = arith.truncf %301 : vector<2x8x8xf32> to vector<2x8x8xbf16>
    "tpu.trace_start"() <{level = 10 : i32, message = "bst,btd->bsd"}> : () -> ()
    %cst_111 = arith.constant dense<0.000000e+00> : vector<2x8x8xf32>
    %303 = tpu.matmul %302, %288, %cst_111 {dimension_numbers = #tpu.dot_dimension_numbers<[2], [1], [1], [2], [0, 0, 0, 1, 1, 2], [0], [0]>} : vector<2x8x8xbf16>, vector<2x8x8xbf16>, vector<2x8x8xf32> -> vector<2x8x8xf32>
    "tpu.trace_stop"() : () -> ()
    %304 = vector.extract_strided_slice %238 {offsets = [0, 0, 24], sizes = [2, 8, 8], strides = [1, 1, 1]} : vector<2x8x32xf32> to vector<2x8x8xf32>
    %305 = arith.truncf %304 : vector<2x8x8xf32> to vector<2x8x8xbf16>
    %306 = vector.extract_strided_slice %239 {offsets = [0, 0, 24], sizes = [2, 8, 8], strides = [1, 1, 1]} : vector<2x8x32xf32> to vector<2x8x8xf32>
    %307 = arith.truncf %306 : vector<2x8x8xf32> to vector<2x8x8xbf16>
    %308 = vector.extract_strided_slice %240 {offsets = [0, 0, 24], sizes = [2, 8, 8], strides = [1, 1, 1]} : vector<2x8x32xf32> to vector<2x8x8xf32>
    %309 = arith.truncf %308 : vector<2x8x8xf32> to vector<2x8x8xbf16>
    "tpu.trace_start"() <{level = 10 : i32, message = "bsd,btd->bst"}> : () -> ()
    %cst_112 = arith.constant dense<0.000000e+00> : vector<2x8x8xf32>
    %310 = tpu.matmul %305, %307, %cst_112 {dimension_numbers = #tpu.dot_dimension_numbers<[2], [2], [1], [1], [0, 0, 0, 1, 1, 1], [0], [0]>} : vector<2x8x8xbf16>, vector<2x8x8xbf16>, vector<2x8x8xf32> -> vector<2x8x8xf32>
    "tpu.trace_stop"() : () -> ()
    %311 = vector.broadcast %31 : vector<2x1x8xf32> to vector<2x8x8xf32>
    %312 = arith.addf %310, %311 : vector<2x8x8xf32>
    %cst_113 = arith.constant dense<0xFF800000> : vector<2x8xf32>
    %313 = vector.multi_reduction <maximumf>, %312, %cst_113 [2] : vector<2x8x8xf32> to vector<2x8xf32>
    %314 = vector.shape_cast %313 : vector<2x8xf32> to vector<2x8x1xf32>
    %315 = vector.broadcast %314 : vector<2x8x1xf32> to vector<2x8x8xf32>
    %316 = arith.subf %312, %315 : vector<2x8x8xf32>
    %317 = math.exp %316 : vector<2x8x8xf32>
    %cst_114 = arith.constant dense<0.000000e+00> : vector<2x8xf32>
    %318 = vector.multi_reduction <add>, %317, %cst_114 [2] : vector<2x8x8xf32> to vector<2x8xf32>
    %319 = vector.shape_cast %318 : vector<2x8xf32> to vector<2x8x1xf32>
    %320 = tpu.reciprocal %319 {approx = true} : vector<2x8x1xf32> -> vector<2x8x1xf32>
    %321 = vector.broadcast %320 : vector<2x8x1xf32> to vector<2x8x8xf32>
    %322 = arith.mulf %317, %321 : vector<2x8x8xf32>
    %323 = arith.truncf %322 : vector<2x8x8xf32> to vector<2x8x8xbf16>
    "tpu.trace_start"() <{level = 10 : i32, message = "bst,btd->bsd"}> : () -> ()
    %cst_115 = arith.constant dense<0.000000e+00> : vector<2x8x8xf32>
    %324 = tpu.matmul %323, %309, %cst_115 {dimension_numbers = #tpu.dot_dimension_numbers<[2], [1], [1], [2], [0, 0, 0, 1, 1, 2], [0], [0]>} : vector<2x8x8xbf16>, vector<2x8x8xbf16>, vector<2x8x8xf32> -> vector<2x8x8xf32>
    "tpu.trace_stop"() : () -> ()
    %325 = tpu.concatenate %261, %282, %303, %324 in 2 : vector<2x8x8xf32>, vector<2x8x8xf32>, vector<2x8x8xf32>, vector<2x8x8xf32> -> vector<2x8x32xf32>
    %326 = vector.shape_cast %325 : vector<2x8x32xf32> to vector<16x32xf32>
    %327 = arith.truncf %326 : vector<16x32xf32> to vector<16x32xbf16>
    %c0_116 = arith.constant 0 : index
    %c0_117 = arith.constant 0 : index
    %328 = vector.load %arg27[%c0_116, %c0_117] : memref<32x32xbf16, #tpu.memory_space<vmem>>, vector<32x32xbf16>
    %cst_118 = arith.constant dense<0.000000e+00> : vector<16x32xf32>
    %329 = tpu.matmul %327, %328, %cst_118 {dimension_numbers = #tpu.dot_dimension_numbers<[1], [0], [0], [1], [0, 0, 1, 1], [], []>} : vector<16x32xbf16>, vector<32x32xbf16>, vector<16x32xf32> -> vector<16x32xf32>
    %c0_119 = arith.constant 0 : index
    %c0_120 = arith.constant 0 : index
    %330 = vector.load %arg28[%c0_119, %c0_120] : memref<1x32xf32, #tpu.memory_space<vmem>>, vector<1x32xf32>
    %331 = vector.broadcast %330 : vector<1x32xf32> to vector<16x32xf32>
    %332 = arith.addf %329, %331 : vector<16x32xf32>
    %333 = arith.addf %219, %332 : vector<16x32xf32>
    %c0_121 = arith.constant 0 : index
    %c0_122 = arith.constant 0 : index
    %334 = vector.load %arg29[%c0_121, %c0_122] : memref<1x32xf32, #tpu.memory_space<vmem>>, vector<1x32xf32>
    %c0_123 = arith.constant 0 : index
    %c0_124 = arith.constant 0 : index
    %335 = vector.load %arg30[%c0_123, %c0_124] : memref<1x32xf32, #tpu.memory_space<vmem>>, vector<1x32xf32>
    %cst_125 = arith.constant dense<0.000000e+00> : vector<16xf32>
    %336 = vector.multi_reduction <add>, %333, %cst_125 [1] : vector<16x32xf32> to vector<16xf32>
    %337 = vector.shape_cast %336 : vector<16xf32> to vector<16x1xf32>
    %cst_126 = arith.constant 3.200000e+01 : f32
    %338 = vector.broadcast %cst_126 : f32 to vector<16x1xf32>
    %339 = arith.divf %337, %338 : vector<16x1xf32>
    %340 = vector.broadcast %339 : vector<16x1xf32> to vector<16x32xf32>
    %341 = arith.subf %333, %340 : vector<16x32xf32>
    %342 = arith.mulf %341, %341 : vector<16x32xf32>
    %cst_127 = arith.constant dense<0.000000e+00> : vector<16xf32>
    %343 = vector.multi_reduction <add>, %342, %cst_127 [1] : vector<16x32xf32> to vector<16xf32>
    %344 = vector.shape_cast %343 : vector<16xf32> to vector<16x1xf32>
    %cst_128 = arith.constant 3.200000e+01 : f32
    %345 = vector.broadcast %cst_128 : f32 to vector<16x1xf32>
    %346 = arith.divf %344, %345 : vector<16x1xf32>
    %347 = vector.broadcast %339 : vector<16x1xf32> to vector<16x32xf32>
    %348 = arith.subf %333, %347 : vector<16x32xf32>
    %cst_129 = arith.constant 9.99999996E-13 : f32
    %349 = vector.broadcast %cst_129 : f32 to vector<16x1xf32>
    %350 = arith.addf %346, %349 : vector<16x1xf32>
    %351 = math.rsqrt %350 : vector<16x1xf32>
    %352 = vector.broadcast %351 : vector<16x1xf32> to vector<16x32xf32>
    %353 = arith.mulf %348, %352 : vector<16x32xf32>
    %354 = vector.broadcast %334 : vector<1x32xf32> to vector<16x32xf32>
    %355 = arith.mulf %353, %354 : vector<16x32xf32>
    %356 = vector.broadcast %335 : vector<1x32xf32> to vector<16x32xf32>
    %357 = arith.addf %355, %356 : vector<16x32xf32>
    %358 = arith.truncf %357 : vector<16x32xf32> to vector<16x32xbf16>
    %c0_130 = arith.constant 0 : index
    %c0_131 = arith.constant 0 : index
    %359 = vector.load %arg31[%c0_130, %c0_131] : memref<32x64xbf16, #tpu.memory_space<vmem>>, vector<32x64xbf16>
    %cst_132 = arith.constant dense<0.000000e+00> : vector<16x64xf32>
    %360 = tpu.matmul %358, %359, %cst_132 {dimension_numbers = #tpu.dot_dimension_numbers<[1], [0], [0], [1], [0, 0, 1, 1], [], []>} : vector<16x32xbf16>, vector<32x64xbf16>, vector<16x64xf32> -> vector<16x64xf32>
    %c0_133 = arith.constant 0 : index
    %c0_134 = arith.constant 0 : index
    %361 = vector.load %arg32[%c0_133, %c0_134] : memref<1x64xf32, #tpu.memory_space<vmem>>, vector<1x64xf32>
    %362 = vector.broadcast %361 : vector<1x64xf32> to vector<16x64xf32>
    %363 = arith.addf %360, %362 : vector<16x64xf32>
    %cst_135 = arith.constant 5.000000e-01 : f32
    %364 = vector.broadcast %cst_135 : f32 to vector<16x64xf32>
    %365 = arith.mulf %364, %363 : vector<16x64xf32>
    %366 = arith.mulf %363, %363 : vector<16x64xf32>
    %367 = arith.mulf %363, %366 : vector<16x64xf32>
    %cst_136 = arith.constant 4.471500e-02 : f32
    %368 = vector.broadcast %cst_136 : f32 to vector<16x64xf32>
    %369 = arith.mulf %368, %367 : vector<16x64xf32>
    %370 = arith.addf %363, %369 : vector<16x64xf32>
    %cst_137 = arith.constant 0.797884583 : f32
    %371 = vector.broadcast %cst_137 : f32 to vector<16x64xf32>
    %372 = arith.mulf %371, %370 : vector<16x64xf32>
    %373 = math.tanh %372 : vector<16x64xf32>
    %cst_138 = arith.constant 1.000000e+00 : f32
    %374 = vector.broadcast %cst_138 : f32 to vector<16x64xf32>
    %375 = arith.addf %374, %373 : vector<16x64xf32>
    %376 = arith.mulf %365, %375 : vector<16x64xf32>
    %377 = arith.truncf %376 : vector<16x64xf32> to vector<16x64xbf16>
    %c0_139 = arith.constant 0 : index
    %c0_140 = arith.constant 0 : index
    %378 = vector.load %arg33[%c0_139, %c0_140] : memref<64x32xbf16, #tpu.memory_space<vmem>>, vector<64x32xbf16>
    %cst_141 = arith.constant dense<0.000000e+00> : vector<16x32xf32>
    %379 = tpu.matmul %377, %378, %cst_141 {dimension_numbers = #tpu.dot_dimension_numbers<[1], [0], [0], [1], [0, 0, 1, 1], [], []>} : vector<16x64xbf16>, vector<64x32xbf16>, vector<16x32xf32> -> vector<16x32xf32>
    %c0_142 = arith.constant 0 : index
    %c0_143 = arith.constant 0 : index
    %380 = vector.load %arg34[%c0_142, %c0_143] : memref<1x32xf32, #tpu.memory_space<vmem>>, vector<1x32xf32>
    %381 = vector.broadcast %380 : vector<1x32xf32> to vector<16x32xf32>
    %382 = arith.addf %379, %381 : vector<16x32xf32>
    %383 = arith.addf %357, %382 : vector<16x32xf32>
    %c0_144 = arith.constant 0 : index
    %c0_145 = arith.constant 0 : index
    %384 = vector.load %arg35[%c0_144, %c0_145] : memref<1x32xf32, #tpu.memory_space<vmem>>, vector<1x32xf32>
    %c0_146 = arith.constant 0 : index
    %c0_147 = arith.constant 0 : index
    %385 = vector.load %arg36[%c0_146, %c0_147] : memref<1x32xf32, #tpu.memory_space<vmem>>, vector<1x32xf32>
    %cst_148 = arith.constant dense<0.000000e+00> : vector<16xf32>
    %386 = vector.multi_reduction <add>, %383, %cst_148 [1] : vector<16x32xf32> to vector<16xf32>
    %387 = vector.shape_cast %386 : vector<16xf32> to vector<16x1xf32>
    %cst_149 = arith.constant 3.200000e+01 : f32
    %388 = vector.broadcast %cst_149 : f32 to vector<16x1xf32>
    %389 = arith.divf %387, %388 : vector<16x1xf32>
    %390 = vector.broadcast %389 : vector<16x1xf32> to vector<16x32xf32>
    %391 = arith.subf %383, %390 : vector<16x32xf32>
    %392 = arith.mulf %391, %391 : vector<16x32xf32>
    %cst_150 = arith.constant dense<0.000000e+00> : vector<16xf32>
    %393 = vector.multi_reduction <add>, %392, %cst_150 [1] : vector<16x32xf32> to vector<16xf32>
    %394 = vector.shape_cast %393 : vector<16xf32> to vector<16x1xf32>
    %cst_151 = arith.constant 3.200000e+01 : f32
    %395 = vector.broadcast %cst_151 : f32 to vector<16x1xf32>
    %396 = arith.divf %394, %395 : vector<16x1xf32>
    %397 = vector.broadcast %389 : vector<16x1xf32> to vector<16x32xf32>
    %398 = arith.subf %383, %397 : vector<16x32xf32>
    %cst_152 = arith.constant 9.99999996E-13 : f32
    %399 = vector.broadcast %cst_152 : f32 to vector<16x1xf32>
    %400 = arith.addf %396, %399 : vector<16x1xf32>
    %401 = math.rsqrt %400 : vector<16x1xf32>
    %402 = vector.broadcast %401 : vector<16x1xf32> to vector<16x32xf32>
    %403 = arith.mulf %398, %402 : vector<16x32xf32>
    %404 = vector.broadcast %384 : vector<1x32xf32> to vector<16x32xf32>
    %405 = arith.mulf %403, %404 : vector<16x32xf32>
    %406 = vector.broadcast %385 : vector<1x32xf32> to vector<16x32xf32>
    %407 = arith.addf %405, %406 : vector<16x32xf32>
    %408 = vector.shape_cast %407 : vector<16x32xf32> to vector<2x8x32xf32>
    %409 = vector.extract_strided_slice %408 {offsets = [0, 0, 0], sizes = [2, 1, 32], strides = [1, 1, 1]} : vector<2x8x32xf32> to vector<2x1x32xf32>
    %c0_153 = arith.constant 0 : index
    %c0_154 = arith.constant 0 : index
    %c0_155 = arith.constant 0 : index
    %410 = vector.load %arg37[%c0_153, %c0_154, %c0_155] : memref<2x1x32xf32, #tpu.memory_space<vmem>>, vector<2x1x32xf32>
    tpu.vector_store %arg37[%c0_153, %c0_154, %c0_155], %409 {strides = array<i32>} : memref<2x1x32xf32, #tpu.memory_space<vmem>>, vector<2x1x32xf32>,
    return
  }
  func.func @transform_0(%arg0: i32) -> (i32, i32, i32) {
    %c0_i32 = arith.constant 0 : i32
    %c0_i32_0 = arith.constant 0 : i32
    %c0_i32_1 = arith.constant 0 : i32
    return %arg0, %c0_i32, %c0_i32_0 : i32, i32, i32
  }
  func.func @transform_1(%arg0: i32) -> (i32, i32, i32) {
    %c0_i32 = arith.constant 0 : i32
    %c0_i32_0 = arith.constant 0 : i32
    %c0_i32_1 = arith.constant 0 : i32
    return %arg0, %c0_i32, %c0_i32_0 : i32, i32, i32
  }
  func.func @transform_2(%arg0: i32) -> (i32, i32) {
    %c0_i32 = arith.constant 0 : i32
    %c0_i32_0 = arith.constant 0 : i32
    %c0_i32_1 = arith.constant 0 : i32
    return %c0_i32, %c0_i32_0 : i32, i32
  }
  func.func @transform_3(%arg0: i32) -> (i32, i32) {
    %c0_i32 = arith.constant 0 : i32
    %c0_i32_0 = arith.constant 0 : i32
    %c0_i32_1 = arith.constant 0 : i32
    return %c0_i32, %c0_i32_0 : i32, i32
  }
  func.func @transform_4(%arg0: i32) -> (i32, i32) {
    %c0_i32 = arith.constant 0 : i32
    %c0_i32_0 = arith.constant 0 : i32
    %c0_i32_1 = arith.constant 0 : i32
    return %c0_i32, %c0_i32_0 : i32, i32
  }
  func.func @transform_5(%arg0: i32) -> (i32, i32) {
    %c0_i32 = arith.constant 0 : i32
    %c0_i32_0 = arith.constant 0 : i32
    %c0_i32_1 = arith.constant 0 : i32
    return %c0_i32, %c0_i32_0 : i32, i32
  }
  func.func @transform_6(%arg0: i32) -> (i32, i32) {
    %c0_i32 = arith.constant 0 : i32
    %c0_i32_0 = arith.constant 0 : i32
    %c0_i32_1 = arith.constant 0 : i32
    return %c0_i32, %c0_i32_0 : i32, i32
  }
  func.func @transform_7(%arg0: i32) -> (i32, i32) {
    %c0_i32 = arith.constant 0 : i32
    %c0_i32_0 = arith.constant 0 : i32
    %c0_i32_1 = arith.constant 0 : i32
    return %c0_i32, %c0_i32_0 : i32, i32
  }
  func.func @transform_8(%arg0: i32) -> (i32, i32) {
    %c0_i32 = arith.constant 0 : i32
    %c0_i32_0 = arith.constant 0 : i32
    %c0_i32_1 = arith.constant 0 : i32
    return %c0_i32, %c0_i32_0 : i32, i32
  }
  func.func @transform_9(%arg0: i32) -> (i32, i32) {
    %c0_i32 = arith.constant 0 : i32
    %c0_i32_0 = arith.constant 0 : i32
    %c0_i32_1 = arith.constant 0 : i32
    return %c0_i32, %c0_i32_0 : i32, i32
  }
  func.func @transform_10(%arg0: i32) -> (i32, i32) {
    %c0_i32 = arith.constant 0 : i32
    %c0_i32_0 = arith.constant 0 : i32
    %c0_i32_1 = arith.constant 0 : i32
    return %c0_i32, %c0_i32_0 : i32, i32
  }
  func.func @transform_11(%arg0: i32) -> (i32, i32) {
    %c0_i32 = arith.constant 0 : i32
    %c0_i32_0 = arith.constant 0 : i32
    %c0_i32_1 = arith.constant 0 : i32
    return %c0_i32, %c0_i32_0 : i32, i32
  }
  func.func @transform_12(%arg0: i32) -> (i32, i32) {
    %c0_i32 = arith.constant 0 : i32
    %c0_i32_0 = arith.constant 0 : i32
    %c0_i32_1 = arith.constant 0 : i32
    return %c0_i32, %c0_i32_0 : i32, i32
  }
  func.func @transform_13(%arg0: i32) -> (i32, i32) {
    %c0_i32 = arith.constant 0 : i32
    %c0_i32_0 = arith.constant 0 : i32
    %c0_i32_1 = arith.constant 0 : i32
    return %c0_i32, %c0_i32_0 : i32, i32
  }
  func.func @transform_14(%arg0: i32) -> (i32, i32) {
    %c0_i32 = arith.constant 0 : i32
    %c0_i32_0 = arith.constant 0 : i32
    %c0_i32_1 = arith.constant 0 : i32
    return %c0_i32, %c0_i32_0 : i32, i32
  }
  func.func @transform_15(%arg0: i32) -> (i32, i32) {
    %c0_i32 = arith.constant 0 : i32
    %c0_i32_0 = arith.constant 0 : i32
    %c0_i32_1 = arith.constant 0 : i32
    return %c0_i32, %c0_i32_0 : i32, i32
  }
  func.func @transform_16(%arg0: i32) -> (i32, i32) {
    %c0_i32 = arith.constant 0 : i32
    %c0_i32_0 = arith.constant 0 : i32
    %c0_i32_1 = arith.constant 0 : i32
    return %c0_i32, %c0_i32_0 : i32, i32
  }
  func.func @transform_17(%arg0: i32) -> (i32, i32) {
    %c0_i32 = arith.constant 0 : i32
    %c0_i32_0 = arith.constant 0 : i32
    %c0_i32_1 = arith.constant 0 : i32
    return %c0_i32, %c0_i32_0 : i32, i32
  }
  func.func @transform_18(%arg0: i32) -> (i32, i32) {
    %c0_i32 = arith.constant 0 : i32
    %c0_i32_0 = arith.constant 0 : i32
    %c0_i32_1 = arith.constant 0 : i32
    return %c0_i32, %c0_i32_0 : i32, i32
  }
  func.func @transform_19(%arg0: i32) -> (i32, i32) {
    %c0_i32 = arith.constant 0 : i32
    %c0_i32_0 = arith.constant 0 : i32
    %c0_i32_1 = arith.constant 0 : i32
    return %c0_i32, %c0_i32_0 : i32, i32
  }
  func.func @transform_20(%arg0: i32) -> (i32, i32) {
    %c0_i32 = arith.constant 0 : i32
    %c0_i32_0 = arith.constant 0 : i32
    %c0_i32_1 = arith.constant 0 : i32
    return %c0_i32, %c0_i32_0 : i32, i32
  }
  func.func @transform_21(%arg0: i32) -> (i32, i32) {
    %c0_i32 = arith.constant 0 : i32
    %c0_i32_0 = arith.constant 0 : i32
    %c0_i32_1 = arith.constant 0 : i32
    return %c0_i32, %c0_i32_0 : i32, i32
  }
  func.func @transform_22(%arg0: i32) -> (i32, i32) {
    %c0_i32 = arith.constant 0 : i32
    %c0_i32_0 = arith.constant 0 : i32
    %c0_i32_1 = arith.constant 0 : i32
    return %c0_i32, %c0_i32_0 : i32, i32
  }
  func.func @transform_23(%arg0: i32) -> (i32, i32) {
    %c0_i32 = arith.constant 0 : i32
    %c0_i32_0 = arith.constant 0 : i32
    %c0_i32_1 = arith.constant 0 : i32
    return %c0_i32, %c0_i32_0 : i32, i32
  }
  func.func @transform_24(%arg0: i32) -> (i32, i32) {
    %c0_i32 = arith.constant 0 : i32
    %c0_i32_0 = arith.constant 0 : i32
    %c0_i32_1 = arith.constant 0 : i32
    return %c0_i32, %c0_i32_0 : i32, i32
  }
  func.func @transform_25(%arg0: i32) -> (i32, i32) {
    %c0_i32 = arith.constant 0 : i32
    %c0_i32_0 = arith.constant 0 : i32
    %c0_i32_1 = arith.constant 0 : i32
    return %c0_i32, %c0_i32_0 : i32, i32
  }
  func.func @transform_26(%arg0: i32) -> (i32, i32) {
    %c0_i32 = arith.constant 0 : i32
    %c0_i32_0 = arith.constant 0 : i32
    %c0_i32_1 = arith.constant 0 : i32
    return %c0_i32, %c0_i32_0 : i32, i32
  }
  func.func @transform_27(%arg0: i32) -> (i32, i32) {
    %c0_i32 = arith.constant 0 : i32
    %c0_i32_0 = arith.constant 0 : i32
    %c0_i32_1 = arith.constant 0 : i32
    return %c0_i32, %c0_i32_0 : i32, i32
  }
  func.func @transform_28(%arg0: i32) -> (i32, i32) {
    %c0_i32 = arith.constant 0 : i32
    %c0_i32_0 = arith.constant 0 : i32
    %c0_i32_1 = arith.constant 0 : i32
    return %c0_i32, %c0_i32_0 : i32, i32
  }
  func.func @transform_29(%arg0: i32) -> (i32, i32) {
    %c0_i32 = arith.constant 0 : i32
    %c0_i32_0 = arith.constant 0 : i32
    %c0_i32_1 = arith.constant 0 : i32
    return %c0_i32, %c0_i32_0 : i32, i32
  }
  func.func @transform_30(%arg0: i32) -> (i32, i32) {
    %c0_i32 = arith.constant 0 : i32
    %c0_i32_0 = arith.constant 0 : i32
    %c0_i32_1 = arith.constant 0 : i32
    return %c0_i32, %c0_i32_0 : i32, i32
  }
  func.func @transform_31(%arg0: i32) -> (i32, i32) {
    %c0_i32 = arith.constant 0 : i32
    %c0_i32_0 = arith.constant 0 : i32
    %c0_i32_1 = arith.constant 0 : i32
    return %c0_i32, %c0_i32_0 : i32, i32
  }
  func.func @transform_32(%arg0: i32) -> (i32, i32) {
    %c0_i32 = arith.constant 0 : i32
    %c0_i32_0 = arith.constant 0 : i32
    %c0_i32_1 = arith.constant 0 : i32
    return %c0_i32, %c0_i32_0 : i32, i32
  }
  func.func @transform_33(%arg0: i32) -> (i32, i32) {
    %c0_i32 = arith.constant 0 : i32
    %c0_i32_0 = arith.constant 0 : i32
    %c0_i32_1 = arith.constant 0 : i32
    return %c0_i32, %c0_i32_0 : i32, i32
  }
  func.func @transform_34(%arg0: i32) -> (i32, i32) {
    %c0_i32 = arith.constant 0 : i32
    %c0_i32_0 = arith.constant 0 : i32
    %c0_i32_1 = arith.constant 0 : i32
    return %c0_i32, %c0_i32_0 : i32, i32
  }
  func.func @transform_35(%arg0: i32) -> (i32, i32) {
    %c0_i32 = arith.constant 0 : i32
    %c0_i32_0 = arith.constant 0 : i32
    %c0_i32_1 = arith.constant 0 : i32
    return %c0_i32, %c0_i32_0 : i32, i32
  }
  func.func @transform_36(%arg0: i32) -> (i32, i32, i32) {
    %c0_i32 = arith.constant 0 : i32
    %c0_i32_0 = arith.constant 0 : i32
    %c0_i32_1 = arith.constant 0 : i32
    return %arg0, %c0_i32, %c0_i32_0 : i32, i32, i32
  }
}

</mosaic_0001>

<bundles_post_ra>
// kernel: text_encoder_forward.1
= control target key start
LH: loop header
LB: loop body
LE: loop exit
PB: predicated region body
PF: predicated region fallthrough
CT: control target
= control target key end

     0   :  { %s3868_s6 = smov 1   ;;  %s3869_s10 = smov 2   ;;  %s4629_s0 = inlined_call_operand.smem [shape: u32[37], index: -1, kind: input, shape index: {}] }
   0x1   :  { %s3922_s5 = sld [smem:[%s4629_s0]]   ;;  %s3870_s14 = smov 3  }
   0x2   :  { %s3927_s9 = sld [smem:[%s4629_s0 + %s3868_s6]]   ;;  %s3871_s18 = smov 4  }
   0x3   :  { %s3932_s13 = sld [smem:[%s4629_s0 + %s3869_s10]]   ;;  %s3872_s22 = smov 5  }
   0x4   :  { %s3937_s17 = sld [smem:[%s4629_s0 + %s3870_s14]]   ;;  %s3873_s26 = smov 6  }
   0x5   :  { %s3942_s21 = sld [smem:[%s4629_s0 + %s3871_s18]]   ;;  %s3874_s30 = smov 7  }
   0x6   :  { %s3947_s25 = sld [smem:[%s4629_s0 + %s3872_s22]]   ;;  %s3875_s4 = smov 8  }
   0x7   :  { %s3952_s29 = sld [smem:[%s4629_s0 + %s3873_s26]]   ;;  %s3876_s10 = smov 9  }
   0x8   :  { %s3957_s3 = sld [smem:[%s4629_s0 + %s3874_s30]]   ;;  %s3877_s15 = smov 10  }
   0x9   :  { %s3962_s8 = sld [smem:[%s4629_s0 + %s3875_s4]]   ;;  %s3878_s20 = smov 11  }
   0xa   :  { %s3967_s14 = sld [smem:[%s4629_s0 + %s3876_s10]]   ;;  %s3879_s26 = smov 12  }
   0xb   :  { %s3972_s19 = sld [smem:[%s4629_s0 + %s3877_s15]]   ;;  %s3880_s1 = smov 13  }
   0xc   :  { %s3977_s24 = sld [smem:[%s4629_s0 + %s3878_s20]]   ;;  %s3881_s7 = smov 14  }
   0xd   :  { %s3982_s30 = sld [smem:[%s4629_s0 + %s3879_s26]]   ;;  %s3882_s15 = smov 15  }
   0xe   :  { %s3987_s6 = sld [smem:[%s4629_s0 + %s3880_s1]]   ;;  %s3883_s22 = smov 16  }
   0xf   :  { %s3992_s12 = sld [smem:[%s4629_s0 + %s3881_s7]]   ;;  %s3884_s28 = smov 17  }
  0x10   :  { %s3997_s20 = sld [smem:[%s4629_s0 + %s3882_s15]]   ;;  %s3885_s7 = smov 18  }
  0x11   :  { %s4002_s27 = sld [smem:[%s4629_s0 + %s3883_s22]]   ;;  %s3886_s15 = smov 19  }
  0x12   :  { %s4007_s4 = sld [smem:[%s4629_s0 + %s3884_s28]]   ;;  %s3887_s22 = smov 20  }
  0x13   :  { %s3888_s28 = smov 21  }
  0x14   :  { %4637 = sst [smem:[#allocation5_spill]] %s3987_s6 }
  0x15   :  { %s4012_s6 = sld [smem:[%s4629_s0 + %s3885_s7]]   ;;  %s3889_s7 = smov 22  }
  0x16   :  { %4638 = sst [smem:[#allocation6_spill]] %s3997_s20 }
  0x17   :  { %4639 = sst [smem:[#allocation7_spill]] %s4002_s27 }
  0x18   :  { %4640 = sst [smem:[#allocation8_spill]] %s4007_s4 }
  0x19   :  { %s4017_s20 = sld [smem:[%s4629_s0 + %s3886_s15]]   ;;  %s3890_s15 = smov 23  }
  0x1a   :  { %s4022_s27 = sld [smem:[%s4629_s0 + %s3887_s22]]   ;;  %s3891_s22 = smov 24  }
  0x1b   :  { %4641 = sst [smem:[#allocation9_spill]] %s4012_s6 }
  0x1c   :  { %s4027_s4 = sld [smem:[%s4629_s0 + %s3888_s28]]   ;;  %s3892_s28 = smov 25  }
  0x1d   :  { %s4032_s6 = sld [smem:[%s4629_s0 + %s3889_s7]]   ;;  %s3893_s7 = smov 26  }
  0x1f   :  { %4642 = sst [smem:[#allocation10_spill]] %s4017_s20 }
  0x20   :  { %4643 = sst [smem:[#allocation11_spill]] %s4022_s27 }
  0x21   :  { %s4037_s20 = sld [smem:[%s4629_s0 + %s3890_s15]]   ;;  %s3894_s15 = smov 27  }
  0x22   :  { %4644 = sst [smem:[#allocation12_spill]] %s4027_s4 }
  0x23   :  { %4645 = sst [smem:[#allocation13_spill]] %s4032_s6 }
  0x24   :  { %s4042_s27 = sld [smem:[%s4629_s0 + %s3891_s22]]   ;;  %s3895_s22 = smov 28  }
  0x25   :  { %s4047_s4 = sld [smem:[%s4629_s0 + %s3892_s28]]   ;;  %s3896_s28 = smov 29  }
  0x26   :  { %s4052_s6 = sld [smem:[%s4629_s0 + %s3893_s7]]   ;;  %s3897_s7 = smov 30  }
  0x27   :  { %4646 = sst [smem:[#allocation14_spill]] %s4037_s20 }
  0x28   :  { %s4057_s20 = sld [smem:[%s4629_s0 + %s3894_s15]]   ;;  %s3898_s15 = smov 31  }
  0x2a   :  { %4647 = sst [smem:[#allocation15_spill]] %s4042_s27 }
  0x2b   :  { %4648 = sst [smem:[#allocation16_spill]] %s4047_s4 }
  0x2c   :  { %4649 = sst [smem:[#allocation17_spill]] %s4052_s6 }
  0x2d   :  { %s4062_s27 = sld [smem:[%s4629_s0 + %s3895_s22]]   ;;  %s3899_s22 = smov 32  }
  0x2e   :  { %4650 = sst [smem:[#allocation18_spill]] %s4057_s20 }
  0x2f   :  { %s4067_s4 = sld [smem:[%s4629_s0 + %s3896_s28]]   ;;  %s3900_s28 = smov 33  }
  0x30   :  { %s4072_s6 = sld [smem:[%s4629_s0 + %s3897_s7]]   ;;  %s3901_s7 = smov 34  }
  0x31   :  { %s4077_s20 = sld [smem:[%s4629_s0 + %s3898_s15]]   ;;  %s3902_s15 = smov 35  }
  0x33   :  { %4651 = sst [smem:[#allocation19_spill]] %s4062_s27 }
  0x34   :  { %s4082_s27 = sld [smem:[%s4629_s0 + %s3899_s22]]   ;;  %s3903_s22 = smov 36  }
  0x35   :  { %4652 = sst [smem:[#allocation20_spill]] %s4067_s4 }
  0x36   :  { %4653 = sst [smem:[#allocation21_spill]] %s4072_s6 }
  0x37   :  { %4654 = sst [smem:[#allocation22_spill]] %s4077_s20 }
  0x38   :  { %s4087_s4 = sld [smem:[%s4629_s0 + %s3900_s28]]  }
  0x39   :  { %s4092_s6 = sld [smem:[%s4629_s0 + %s3901_s7]]  }
  0x3a   :  { %4655 = sst [smem:[#allocation23_spill]] %s4082_s27 }
  0x3b   :  { %s4097_s20 = sld [smem:[%s4629_s0 + %s3902_s15]]  }
  0x3c   :  { %s4102_s27 = sld [smem:[%s4629_s0 + %s3903_s22]]  }
  0x3d   :  { %v152_v0 = vld [vmem:[%s3922_s5] sm:$0xff]  ;;  %vm156_vm0 = vcmask 261120   ;;  %v153_v1 = vld [vmem:[%s3922_s5 + $0x8] sm:$0xff] }
  0x3e   :  { %v157_v2 = vsel %vm156_vm0, %v152_v0, 0.0  ;;  %v160_v3 = vsel %vm156_vm0, %v153_v1, 0.0 }
  0x3f   :  { %158 = vadd.xlane.f32.xlu0 %v157_v2 }
  0x43   :  { %161 = vadd.xlane.f32.xlu0 %v160_v3 }
  0x44   :  { %78 = vsyncpa [#allocation3], 0  ;;  %v3726_v14 = vld [vmem:[%s3942_s21 + $0x8] sm:$0xff]   ;;  %v3904_v16 = vmov 0.0   ;;  %v3728_v17 = vld [vmem:[%s3942_s21] sm:$0xff]   ;;  %vm3905_vm1 = vmmov 0  }
  0x45   :  { %v3727_v15 = vld [vmem:[%s3962_s8 + $0x8] sm:$0xff]   ;;  %3354 = vmatprep.subr.bf16.mxu1 %v3904_v16  ;;  %3370 = vmatprep.subr.bf16.mxu0 %v3904_v16  ;;  %v3729_v18 = vld [vmem:[%s3962_s8] sm:$0xff]   ;;  %vm424_vm2 = vcmask 64512   ;;  %vm544_vm3 = vcmask 1043456   ;;  %s3906_s0 = smov 120   ;;  %s3907_s5 = smov 112  }
  0x46   :  { %3355 = vmatpush3.bf16.msra.mxu1 %v3726_v14  ;;  %3371 = vmatpush3.bf16.msra.mxu0 %v3727_v15  ;;  %v3156_v27 = vld [vmem:[%s3932_s13] ss:$0 sm:$0xff]  ;;  %v3730_v35 = vld [vmem:[%s3952_s29 + $0x8] sm:$0xff]   ;;  %s3909_s13 = smov 8   ;;  %s3911_s21 = smov 24   ;;  %vm1326_vm4 = vcmask 130048  }
  0x47   :  { %3356 = vmatprep.subr.bf16.mxu1 %v3904_v16  ;;  %3372 = vmatprep.subr.bf16.mxu0 %v3904_v16  ;;  %v3157_v31 = vld [vmem:[%s3937_s17] ss:$0 sm:$0xff]  ;;  %s3910_s17 = smov 16   ;;  %vm1329_vm5 = vcmask 195584   ;;  %s4659_s8 = sld [smem:[#allocation8_spill]]  ;;  %vm1572_vm6 = vcmask 523264  }
  0x48   :  { %3358 = vmatprep.mubr.msk.bf16.mxu1 %vm3905_vm1, %v3904_v16  ;;  %3374 = vmatprep.mubr.msk.bf16.mxu0 %vm3905_vm1, %v3904_v16  ;;  %v3731_v37 = vld [vmem:[%s3952_s29] sm:$0xff]   ;;  %s4657_s29 = sld [smem:[#allocation7_spill]]  ;;  %vm3101_vm7 = vcmask 253952  }
  0x49   :  { %v3162_v46 = vld [vmem:[%s3957_s3] ss:$0 sm:$0xff]  ;;  %s4658_s3 = sld [smem:[#allocation6_spill]] }
  0x4a   :  { %3357 = vmatpush3.bf16.msra.mxu1 %v3728_v17  ;;  %3373 = vmatpush3.bf16.msra.mxu0 %v3729_v18  ;;  %v3158_v47 = vld [vmem:[%s3947_s25] ss:$0 sm:$0xff]  ;;  %s4656_s25 = sld [smem:[#allocation5_spill]] }
  0x4b   :  { %3362 = vmatprep.subr.bf16.mxu1 %v3904_v16  ;;  %3384 = vmatprep.subr.bf16.mxu0 %v3904_v16  ;;  %v3166_v50 = vld [vmem:[%s3967_s14] ss:$0 sm:$0xff]  ;;  %s4660_s14 = sld [smem:[#allocation11_spill]] }
  0x4c   :  { %s4665_s28 = sld [smem:[#allocation14_spill]] }
  0x4d   :  { %s4666_s1 = sld [smem:[#allocation12_spill]] }
  0x4e   :  { %s4667_s2 = sld [smem:[#allocation16_spill]] }
  0x4f   :  { %s4668_s7 = sld [smem:[#allocation17_spill]] }
  0x50   :  { %s4669_s10 = sld [smem:[#allocation18_spill]] }
  0x51   :  { %s4670_s11 = sld [smem:[#allocation21_spill]] }
  0x52   :  { %s4671_s15 = sld [smem:[#allocation19_spill]] }
  0x53   :  { %s4672_s16 = sld [smem:[#allocation20_spill]] }
  0x54   :  { %s4673_s18 = sld [smem:[#allocation23_spill]] }
  0x55   :  { %s4674_s22 = sld [smem:[#allocation22_spill]] }
  0xc8   :  { %v159_v4 = vpop.xlane.xlu0 %158 }
  0xc9   :  { %v164_v5 = vmul.f32 0.03125, %v159_v4 }
  0xcb   :  { %v166_v6 = vsub.f32 %v152_v0, %v164_v5 }
  0xcc   :  { %v162_v7 = vpop.xlane.xlu0 %161 }
  0xcd   :  { %v165_v8 = vmul.f32 0.03125, %v162_v7  ;;  %v168_v9 = vmul.f32 %v166_v6, %v166_v6  ;;  %v200_v7 = vld [vmem:[%s3927_s9] sm:$0x1] }
  0xcf   :  { %v167_v10 = vsub.f32 %v153_v1, %v165_v8  ;;  %v170_v11 = vsel %vm156_vm0, %v168_v9, 0.0  ;;  %v202_v8 = vcvt.s32.f32 %v200_v7  ;;  %v414_v9 = vlaneseq }
  0xd0   :  { %171 = vadd.xlane.f32.xlu1 %v170_v11 }
  0xd1   :  { %v169_v12 = vmul.f32 %v167_v10, %v167_v10  ;;  %v204_v11 = vsub.f32 1.0, %v202_v8 }
  0xd3   :  { %v173_v13 = vsel %vm156_vm0, %v169_v12, 0.0  ;;  %v415_v12 = vshrl.u32 %v414_v9, 7  ;;  %v206_v14 = vmul.f32 -1e+09, %v204_v11 }
  0xd4   :  { %174 = vadd.xlane.f32.xlu1 %v173_v13 }
  0xd5   :  { %v416_v15 = vsub.s32 0, %v415_v12 }
  0xd7   :  { %v4182_v18 = vrot.slane %v206_v14, %v416_v15 }
 0x159   :  { %v172_v19 = vpop.xlane.xlu1 %171 }
 0x15a   :  { %v176_v20 = vmul.f32 0.03125, %v172_v19 }
 0x15c   :  { %v178_v21 = vadd.f32 1e-12, %v176_v20 }
 0x15d   :  { %v175_v22 = vpop.xlane.xlu1 %174 }
 0x15e   :  { %3754 = vrsqrt.f32 %v178_v21  ;;  %v177_v23 = vmul.f32 0.03125, %v175_v22 }
 0x160   :  { %v179_v24 = vadd.f32 1e-12, %v177_v23 }
 0x162   :  { %3756 = vrsqrt.f32 %v179_v24 }
 0x16b   :  { %v3755_v25 = vpop.eup %3754 }
 0x16c   :  { %v182_v26 = vmul.f32 %v3755_v25, %v166_v6 }
 0x16e   :  { %v190_v30 = vmul.f32 %v3156_v27, %v182_v26 }
 0x16f   :  { %v3757_v28 = vpop.eup %3756 }
 0x170   :  { %v183_v29 = vmul.f32 %v3757_v28, %v167_v10  ;;  %v4126_v33 = vadd.f32 %v3157_v31, %v190_v30  ;;  %v201_v10 = vld [vmem:[%s3927_s9 + $0x1] sm:$0x1]  ;;  %s3908_s9 = smov 104  }
 0x171   :  { %v203_v13 = vcvt.s32.f32 %v201_v10 }
 0x172   :  { %v191_v32 = vmul.f32 %v3156_v27, %v183_v29 }
 0x173   :  { %v205_v17 = vsub.f32 1.0, %v203_v13 }
 0x174   :  { %v4128_v34 = vadd.f32 %v3157_v31, %v191_v32 }
 0x175   :  { %v207_v19 = vmul.f32 -1e+09, %v205_v17 }
 0x176   :  { %v208_v36 = vpack.c.bf16 %v4128_v34, %v4126_v33 }
 0x177   :  { %v4185_v22 = vrot.slane %v207_v19, %v416_v15 }
 0x178   :  { %3359 = vmatmul.mubr.msk.bf16.vlgmr.msra.gmra.mxu1 %vm156_vm0, %v208_v36  ;;  %3375 = vmatmul.mubr.msk.bf16.vlgmr.msra.gmra.mxu0 %vm156_vm0, %v208_v36 }
 0x179   :  { %3363 = vmatpush3.bf16.msra.mxu1 %v3730_v35  ;;  %3366 = vmatprep.mubr.msk.bf16.mxu1 %vm3905_vm1, %v3904_v16 }
 0x17a   :  { %3364 = vmatprep.subr.bf16.mxu1 %v3904_v16  ;;  %3386 = vmatprep.mubr.msk.bf16.mxu0 %vm3905_vm1, %v3904_v16 }
 0x17d   :  { %3365 = vmatpush3.bf16.msra.mxu1 %v3731_v37 }
 0x17e   :  { %3378 = vmatprep.subr.bf16.mxu1 %v3904_v16 }
 0x180   :  { %3367 = vmatmul.mubr.msk.bf16.vlgmr.msra.gmra.mxu1 %vm156_vm0, %v208_v36 }
 0x181   :  { %3380 = vmatprep.mubr.msk.bf16.mxu1 %vm3905_vm1, %v3904_v16 }
 0x238   :  { %v269_v38 = vpop.f32.mrf.mxu1  ;;  %v399_v39 = vpop.f32.mrf.mxu0 }
 0x239   :  { %v270_v52 = vadd.f32 %v3158_v47, %v269_v38  ;;  %v400_v55 = vadd.f32 %v3166_v50, %v399_v39 }
 0x23a   :  { %v3360_v40 = vpop.f32.mrf.mxu1  ;;  %v3376_v41 = vpop.f32.mrf.mxu0 }
 0x23b   :  { %v276_v59 = vmul.f32 0.35355338, %v270_v52  ;;  %v4155_v62 = vpack.c.bf16 %v400_v55, %v400_v55 }
 0x23c   :  { %v272_v42 = vpop.f32.mrf.mxu1  ;;  %v402_v43 = vpop.f32.mrf.mxu0 }
 0x23d   :  { %v273_v60 = vadd.f32 %v3158_v47, %v272_v42  ;;  %v403_v63 = vadd.f32 %v3166_v50, %v402_v43  ;;  %v4159_v1 = vpack.c.bf16 %v276_v59, %v276_v59  ;;  %v546_v4 = vsel %vm544_vm3, %v4155_v62, 0 }
 0x23e   :  { %v3361_v44 = vpop.f32.mrf.mxu1  ;;  %v3377_v45 = vpop.f32.mrf.mxu0 }
 0x23f   :  { %v277_v2 = vmul.f32 0.35355338, %v273_v60  ;;  %v4162_v3 = vpack.c.bf16 %v403_v63, %v403_v63 }
 0x240   :  { %v335_v48 = vpop.f32.mrf.mxu1 }
 0x241   :  { %v336_v49 = vadd.f32 %v3162_v46, %v335_v48  ;;  %v4170_v5 = vpack.c.bf16 %v277_v2, %v277_v2  ;;  %v592_v6 = vsel %vm544_vm3, %v4162_v3, 0 }
 0x242   :  { %v3368_v51 = vpop.f32.mrf.mxu1 }
 0x243   :  { %v4148_v53 = vpack.c.bf16 %v336_v49, %v336_v49 }
 0x244   :  { %v338_v54 = vpop.f32.mrf.mxu1 }
 0x245   :  { %v339_v56 = vadd.f32 %v3162_v46, %v338_v54  ;;  %v429_v57 = vsel %vm424_vm2, %v4148_v53, 0 }
 0x246   :  { %v3369_v58 = vpop.f32.mrf.mxu1  ;;  %3379 = vmatpush3.bf16.xpose.msra.mxu1 %v429_v57 }
 0x247   :  { %v4152_v61 = vpack.c.bf16 %v339_v56, %v339_v56  ;;  %3390 = vmatprep.subr.bf16.mxu1 %v3904_v16 }
 0x249   :  { %v475_v0 = vsel %vm424_vm2, %v4152_v61, 0 }
 0x24a   :  { %3385 = vmatpush3.bf16.xpose.msra.mxu0 %v475_v0 }
 0x24b   :  { %3396 = vmatprep.subr.bf16.mxu0 %v3904_v16 }
 0x24d   :  { %3381 = vmatmul.mubr.msk.bf16.vlgmr.msra.gmra.mxu1 %vm424_vm2, %v4159_v1 }
 0x24e   :  { %3391 = vmatpush3.bf16.msra.mxu1 %v546_v4  ;;  %3392 = vmatprep.mubr.msk.bf16.mxu1 %vm3905_vm1, %v3904_v16 }
 0x24f   :  { %3402 = vmatprep.subr.bf16.mxu1 %v3904_v16 }
 0x251   :  { %3387 = vmatmul.mubr.msk.bf16.vlgmr.msra.gmra.mxu0 %vm424_vm2, %v4170_v5 }
 0x252   :  { %3397 = vmatpush3.bf16.msra.mxu0 %v592_v6  ;;  %3398 = vmatprep.mubr.msk.bf16.mxu0 %vm3905_vm1, %v3904_v16 }
 0x253   :  { %3408 = vmatprep.subr.bf16.mxu0 %v3904_v16 }
 0x30d   :  { %v465_v20 = vpop.f32.mrf.mxu1 }
 0x30e   :  { %v466_v21 = vadd.f32 %v465_v20, %v4182_v18 }
 0x30f   :  { %v3382_v23 = vpop.f32.mrf.mxu1 }
 0x310   :  { %v517_v24 = vsel %vm424_vm2, %v466_v21, -inf }
 0x311   :  { %v511_v25 = vpop.f32.mrf.mxu0  ;;  %518 = vmax.xlane.f32.xlu0 %v517_v24  ;;  %v468_v26 = vpop.f32.mrf.mxu1 }
 0x312   :  { %v512_v27 = vadd.f32 %v511_v25, %v4185_v22 }
 0x313   :  { %v3383_v28 = vpop.f32.mrf.mxu1  ;;  %v3388_v29 = vpop.f32.mrf.mxu0 }
 0x314   :  { %v520_v30 = vsel %vm424_vm2, %v512_v27, -inf }
 0x315   :  { %521 = vmax.xlane.f32.xlu1 %v520_v30  ;;  %v514_v31 = vpop.f32.mrf.mxu0 }
 0x317   :  { %v3389_v32 = vpop.f32.mrf.mxu0 }
 0x326   :  { %690 = vrot.lane.b32.xlu1 %v4152_v61, %s3906_s0 }
 0x39a   :  { %v519_v35 = vpop.xlane.xlu0 %518 }
 0x39b   :  { %v523_v36 = vsub.f32 %v466_v21, %v519_v35 }
 0x39d   :  { %v525_v37 = vmul.f32 1.442695, %v523_v36 }
 0x39e   :  { %v522_v38 = vpop.xlane.xlu1 %521 }
 0x39f   :  { %3758 = vpow2.f32 %v525_v37  ;;  %v524_v39 = vsub.f32 %v512_v27, %v522_v38 }
 0x3a1   :  { %v527_v40 = vmul.f32 1.442695, %v524_v39 }
 0x3a2   :  { %v691_v45 = vpop.permute.xlu1 %690 }
 0x3a3   :  { %3760 = vpow2.f32 %v527_v40  ;;  %v696_v57 = vsel %vm424_vm2, %v691_v45, 0 }
 0x3ac   :  { %v3759_v41 = vpop.eup %3758 }
 0x3ad   :  { %v529_v42 = vsel %vm424_vm2, %v3759_v41, 0.0 }
 0x3ae   :  { %530 = vadd.xlane.f32.xlu0 %v529_v42 }
 0x3b0   :  { %v3761_v43 = vpop.eup %3760 }
 0x3b1   :  { %v532_v44 = vsel %vm424_vm2, %v3761_v43, 0.0 }
 0x3b2   :  { %533 = vadd.xlane.f32.xlu1 %v532_v44 }
 0x3c3   :  { %635 = vrot.lane.b32.xlu1 %v4159_v1, %s3906_s0 }
 0x3c4   :  { %638 = vrot.lane.b32.xlu0 %v4148_v53, %s3906_s0 }
 0x3c7   :  { %687 = vrot.lane.b32.xlu1 %v4170_v5, %s3906_s0 }
 0x437   :  { %v531_v46 = vpop.xlane.xlu0 %530 }
 0x438   :  { %3762 = vrcp.f32 %v531_v46 }
 0x43b   :  { %v534_v47 = vpop.xlane.xlu1 %533  ;;  %v639_v50 = vpop.permute.xlu0 %638 }
 0x43c   :  { %3764 = vrcp.f32 %v534_v47  ;;  %v644_v54 = vsel %vm424_vm2, %v639_v50, 0 }
 0x43f   :  { %v636_v58 = vpop.permute.xlu1 %635 }
 0x443   :  { %v688_v59 = vpop.permute.xlu1 %687 }
 0x445   :  { %v3763_v48 = vpop.eup %3762 }
 0x446   :  { %v537_v49 = vmul.f32 %v3763_v48, %v3759_v41 }
 0x448   :  { %v539_v51 = vpack.c.bf16 %v537_v49, %v537_v49 }
 0x449   :  { %v3765_v52 = vpop.eup %3764 }
 0x44a   :  { %3393 = vmatmul.mubr.msk.bf16.vlgmr.msra.gmra.mxu1 %vm424_vm2, %v539_v51  ;;  %v538_v55 = vmul.f32 %v3765_v52, %v3761_v43 }
 0x44b   :  { %3403 = vmatpush3.bf16.xpose.msra.mxu1 %v644_v54  ;;  %3404 = vmatprep.mubr.msk.bf16.mxu1 %vm3905_vm1, %v3904_v16 }
 0x44c   :  { %v540_v56 = vpack.c.bf16 %v538_v55, %v538_v55  ;;  %3414 = vmatprep.subr.bf16.mxu1 %v3904_v16 }
 0x44e   :  { %3399 = vmatmul.mubr.msk.bf16.vlgmr.msra.gmra.mxu0 %vm424_vm2, %v540_v56 }
 0x44f   :  { %3409 = vmatpush3.bf16.xpose.msra.mxu0 %v696_v57  ;;  %3410 = vmatprep.mubr.msk.bf16.mxu0 %vm3905_vm1, %v3904_v16 }
 0x450   :  { %3420 = vmatprep.subr.bf16.mxu0 %v3904_v16 }
 0x452   :  { %3405 = vmatmul.mubr.msk.bf16.vlgmr.msra.gmra.mxu1 %vm424_vm2, %v636_v58 }
 0x453   :  { %3416 = vmatprep.mubr.msk.bf16.mxu1 %vm3905_vm1, %v3904_v16 }
 0x456   :  { %3411 = vmatmul.mubr.msk.bf16.vlgmr.msra.gmra.mxu0 %vm424_vm2, %v688_v59 }
 0x457   :  { %3422 = vmatprep.mubr.msk.bf16.mxu0 %vm3905_vm1, %v3904_v16 }
 0x50a   :  { %v4216_v60 = vpop.f32.mrf.mxu1 }
 0x50c   :  { %v3394_v63 = vpop.f32.mrf.mxu1 }
 0x50e   :  { %v585_v0 = vpop.f32.mrf.mxu1  ;;  %v4218_v2 = vpop.f32.mrf.mxu0 }
 0x510   :  { %v3395_v4 = vpop.f32.mrf.mxu1  ;;  %v3400_v6 = vpop.f32.mrf.mxu0 }
 0x512   :  { %v631_v7 = vpop.f32.mrf.mxu0  ;;  %v680_v8 = vpop.f32.mrf.mxu1 }
 0x513   :  { %v681_v9 = vadd.f32 %v680_v8, %v4182_v18 }
 0x514   :  { %v3401_v10 = vpop.f32.mrf.mxu0  ;;  %v3406_v11 = vpop.f32.mrf.mxu1 }
 0x515   :  { %v738_v12 = vsel %vm424_vm2, %v681_v9, -inf }
 0x516   :  { %v732_v13 = vpop.f32.mrf.mxu0  ;;  %739 = vmax.xlane.f32.xlu0 %v738_v12  ;;  %v683_v14 = vpop.f32.mrf.mxu1 }
 0x517   :  { %v733_v15 = vadd.f32 %v732_v13, %v4185_v22 }
 0x518   :  { %v3407_v17 = vpop.f32.mrf.mxu1  ;;  %v3412_v19 = vpop.f32.mrf.mxu0 }
 0x519   :  { %v741_v20 = vsel %vm424_vm2, %v733_v15, -inf }
 0x51a   :  { %742 = vmax.xlane.f32.xlu1 %v741_v20  ;;  %v735_v21 = vpop.f32.mrf.mxu0 }
 0x51c   :  { %v3413_v23 = vpop.f32.mrf.mxu0 }
 0x52b   :  { %812 = vrot.lane.b32.xlu1 %v4162_v3, %s3906_s0 }
 0x52f   :  { %862 = vrot.lane.b32.xlu1 %v4148_v53, %s3907_s5 }
 0x533   :  { %912 = vrot.lane.b32.xlu1 %v4152_v61, %s3907_s5 }
 0x537   :  { %910 = vrot.lane.b32.xlu1 %v4170_v5, %s3907_s5 }
 0x59f   :  { %v740_v24 = vpop.xlane.xlu0 %739 }
 0x5a0   :  { %v744_v25 = vsub.f32 %v681_v9, %v740_v24 }
 0x5a2   :  { %v746_v26 = vmul.f32 1.442695, %v744_v25 }
 0x5a3   :  { %v743_v27 = vpop.xlane.xlu1 %742 }
 0x5a4   :  { %3766 = vpow2.f32 %v746_v26  ;;  %v745_v28 = vsub.f32 %v733_v15, %v743_v27 }
 0x5a6   :  { %v748_v29 = vmul.f32 1.442695, %v745_v28 }
 0x5a7   :  { %v813_v30 = vpop.permute.xlu1 %812 }
 0x5a8   :  { %3768 = vpow2.f32 %v748_v29  ;;  %v818_v31 = vsel %vm544_vm3, %v813_v30, 0 }
 0x5a9   :  { %3421 = vmatpush3.bf16.msra.mxu0 %v818_v31 }
 0x5aa   :  { %3432 = vmatprep.subr.bf16.mxu0 %v3904_v16 }
 0x5ab   :  { %v863_v43 = vpop.permute.xlu1 %862 }
 0x5ac   :  { %v868_v47 = vsel %vm424_vm2, %v863_v43, 0 }
 0x5af   :  { %v913_v49 = vpop.permute.xlu1 %912 }
 0x5b0   :  { %v918_v51 = vsel %vm424_vm2, %v913_v49, 0 }
 0x5b1   :  { %v3767_v32 = vpop.eup %3766 }
 0x5b2   :  { %v750_v35 = vsel %vm424_vm2, %v3767_v32, 0.0 }
 0x5b3   :  { %751 = vadd.xlane.f32.xlu0 %v750_v35  ;;  %v911_v54 = vpop.permute.xlu1 %910 }
 0x5b5   :  { %v3769_v36 = vpop.eup %3768 }
 0x5b6   :  { %v753_v37 = vsel %vm424_vm2, %v3769_v36, 0.0 }
 0x5b7   :  { %754 = vadd.xlane.f32.xlu0 %v753_v37 }
 0x5cd   :  { %763 = vrot.lane.b32.xlu0 %v4155_v62, %s3906_s0 }
 0x5d1   :  { %860 = vrot.lane.b32.xlu0 %v4159_v1, %s3907_s5 }
 0x63c   :  { %v752_v38 = vpop.xlane.xlu0 %751 }
 0x63d   :  { %3770 = vrcp.f32 %v752_v38 }
 0x640   :  { %v755_v39 = vpop.xlane.xlu0 %754 }
 0x641   :  { %3772 = vrcp.f32 %v755_v39 }
 0x644   :  { %v764_v40 = vpop.permute.xlu0 %763 }
 0x645   :  { %v769_v41 = vsel %vm544_vm3, %v764_v40, 0 }
 0x646   :  { %3415 = vmatpush3.bf16.msra.mxu1 %v769_v41 }
 0x647   :  { %3426 = vmatprep.subr.bf16.mxu1 %v3904_v16 }
 0x648   :  { %v861_v52 = vpop.permute.xlu0 %860 }
 0x64a   :  { %v3771_v42 = vpop.eup %3770 }
 0x64b   :  { %v758_v44 = vmul.f32 %v3771_v42, %v3767_v32 }
 0x64d   :  { %v760_v45 = vpack.c.bf16 %v758_v44, %v758_v44 }
 0x64e   :  { %v3773_v46 = vpop.eup %3772 }
 0x64f   :  { %3417 = vmatmul.mubr.msk.bf16.vlgmr.msra.gmra.mxu1 %vm424_vm2, %v760_v45  ;;  %v759_v48 = vmul.f32 %v3773_v46, %v3769_v36 }
 0x650   :  { %3427 = vmatpush3.bf16.xpose.msra.mxu1 %v868_v47  ;;  %3428 = vmatprep.mubr.msk.bf16.mxu1 %vm3905_vm1, %v3904_v16 }
 0x651   :  { %v761_v50 = vpack.c.bf16 %v759_v48, %v759_v48  ;;  %3438 = vmatprep.subr.bf16.mxu1 %v3904_v16 }
 0x653   :  { %3423 = vmatmul.mubr.msk.bf16.vlgmr.msra.gmra.mxu0 %vm424_vm2, %v761_v50 }
 0x654   :  { %3433 = vmatpush3.bf16.xpose.msra.mxu0 %v918_v51  ;;  %3434 = vmatprep.mubr.msk.bf16.mxu0 %vm3905_vm1, %v3904_v16 }
 0x655   :  { %3444 = vmatprep.subr.bf16.mxu0 %v3904_v16 }
 0x657   :  { %3429 = vmatmul.mubr.msk.bf16.vlgmr.msra.gmra.mxu1 %vm424_vm2, %v861_v52 }
 0x658   :  { %3440 = vmatprep.mubr.msk.bf16.mxu1 %vm3905_vm1, %v3904_v16 }
 0x65b   :  { %3435 = vmatmul.mubr.msk.bf16.vlgmr.msra.gmra.mxu0 %vm424_vm2, %v911_v54 }
 0x65c   :  { %3446 = vmatprep.mubr.msk.bf16.mxu0 %vm3905_vm1, %v3904_v16 }
 0x70f   :  { %v4258_v55 = vpop.f32.mrf.mxu1 }
 0x711   :  { %v3418_v56 = vpop.f32.mrf.mxu1 }
 0x713   :  { %v808_v57 = vpop.f32.mrf.mxu1  ;;  %v4260_v58 = vpop.f32.mrf.mxu0 }
 0x714   :  { %v3696_v59 = vpack.i.bf16 %v4260_v58, %v4258_v55 }
 0x715   :  { %v3419_v63 = vpop.f32.mrf.mxu1  ;;  %v3424_v0 = vpop.f32.mrf.mxu0 }
 0x717   :  { %v857_v4 = vpop.f32.mrf.mxu0  ;;  %v904_v6 = vpop.f32.mrf.mxu1 }
 0x718   :  { %v905_v7 = vadd.f32 %v904_v6, %v4182_v18 }
 0x719   :  { %v3425_v8 = vpop.f32.mrf.mxu0  ;;  %v3430_v9 = vpop.f32.mrf.mxu1 }
 0x71a   :  { %v960_v10 = vsel %vm424_vm2, %v905_v7, -inf }
 0x71b   :  { %v954_v11 = vpop.f32.mrf.mxu0  ;;  %961 = vmax.xlane.f32.xlu0 %v960_v10  ;;  %v907_v12 = vpop.f32.mrf.mxu1 }
 0x71c   :  { %v955_v13 = vadd.f32 %v954_v11, %v4185_v22 }
 0x71d   :  { %v3431_v14 = vpop.f32.mrf.mxu1  ;;  %v3436_v15 = vpop.f32.mrf.mxu0 }
 0x71e   :  { %v963_v17 = vsel %vm424_vm2, %v955_v13, -inf }
 0x71f   :  { %964 = vmax.xlane.f32.xlu1 %v963_v17  ;;  %v957_v19 = vpop.f32.mrf.mxu0 }
 0x721   :  { %v3437_v20 = vpop.f32.mrf.mxu0 }
 0x730   :  { %1032 = vrot.lane.b32.xlu1 %v4162_v3, %s3907_s5 }
 0x734   :  { %1082 = vrot.lane.b32.xlu1 %v4148_v53, %s3908_s9 }
 0x738   :  { %1132 = vrot.lane.b32.xlu1 %v4152_v61, %s3908_s9 }
 0x73c   :  { %1130 = vrot.lane.b32.xlu1 %v4170_v5, %s3908_s9 }
 0x7a4   :  { %v962_v21 = vpop.xlane.xlu0 %961 }
 0x7a5   :  { %v966_v23 = vsub.f32 %v905_v7, %v962_v21 }
 0x7a7   :  { %v968_v24 = vmul.f32 1.442695, %v966_v23 }
 0x7a8   :  { %v965_v25 = vpop.xlane.xlu1 %964 }
 0x7a9   :  { %3774 = vpow2.f32 %v968_v24  ;;  %v967_v26 = vsub.f32 %v955_v13, %v965_v25 }
 0x7ab   :  { %v970_v27 = vmul.f32 1.442695, %v967_v26 }
 0x7ac   :  { %v1033_v28 = vpop.permute.xlu1 %1032 }
 0x7ad   :  { %3776 = vpow2.f32 %v970_v27  ;;  %v1038_v29 = vsel %vm544_vm3, %v1033_v28, 0 }
 0x7ae   :  { %3445 = vmatpush3.bf16.msra.mxu0 %v1038_v29 }
 0x7af   :  { %3456 = vmatprep.subr.bf16.mxu0 %v3904_v16 }
 0x7b0   :  { %v1083_v38 = vpop.permute.xlu1 %1082 }
 0x7b1   :  { %v1088_v42 = vsel %vm424_vm2, %v1083_v38, 0 }
 0x7b4   :  { %v1133_v43 = vpop.permute.xlu1 %1132 }
 0x7b5   :  { %v1138_v45 = vsel %vm424_vm2, %v1133_v43, 0 }
 0x7b6   :  { %v3775_v53 = vpop.eup %3774 }
 0x7b7   :  { %v972_v61 = vsel %vm424_vm2, %v3775_v53, 0.0 }
 0x7b8   :  { %973 = vadd.xlane.f32.xlu0 %v972_v61  ;;  %v1131_v47 = vpop.permute.xlu1 %1130 }
 0x7ba   :  { %v3777_v30 = vpop.eup %3776 }
 0x7bb   :  { %v975_v5 = vsel %vm424_vm2, %v3777_v30, 0.0 }
 0x7bc   :  { %976 = vadd.xlane.f32.xlu0 %v975_v5 }
 0x7d2   :  { %984 = vrot.lane.b32.xlu0 %v4155_v62, %s3907_s5 }
 0x7d6   :  { %1080 = vrot.lane.b32.xlu0 %v4159_v1, %s3908_s9 }
 0x841   :  { %v974_v31 = vpop.xlane.xlu0 %973 }
 0x842   :  { %3778 = vrcp.f32 %v974_v31 }
 0x845   :  { %v977_v32 = vpop.xlane.xlu0 %976 }
 0x846   :  { %3780 = vrcp.f32 %v977_v32 }
 0x849   :  { %v985_v35 = vpop.permute.xlu0 %984 }
 0x84a   :  { %v990_v36 = vsel %vm544_vm3, %v985_v35, 0  ;;  %v3732_v35 = vld [vmem:[%s3972_s19 + $0x8] sm:$0xff]  }
 0x84b   :  { %3439 = vmatpush3.bf16.msra.mxu1 %v990_v36  ;;  %v3733_v36 = vld [vmem:[%s3972_s19] sm:$0xff]   ;;  %s4661_s19 = sld [smem:[#allocation15_spill]] }
 0x84c   :  { %3450 = vmatprep.subr.bf16.mxu1 %v3904_v16 }
 0x84d   :  { %v1081_v46 = vpop.permute.xlu0 %1080 }
 0x84f   :  { %v3779_v37 = vpop.eup %3778 }
 0x850   :  { %v980_v39 = vmul.f32 %v3779_v37, %v3775_v53 }
 0x852   :  { %v982_v40 = vpack.c.bf16 %v980_v39, %v980_v39 }
 0x853   :  { %v3781_v41 = vpop.eup %3780 }
 0x854   :  { %3441 = vmatmul.mubr.msk.bf16.vlgmr.msra.gmra.mxu1 %vm424_vm2, %v982_v40  ;;  %v981_v1 = vmul.f32 %v3781_v41, %v3777_v30 }
 0x855   :  { %3451 = vmatpush3.bf16.xpose.msra.mxu1 %v1088_v42  ;;  %3452 = vmatprep.mubr.msk.bf16.mxu1 %vm3905_vm1, %v3904_v16 }
 0x856   :  { %v983_v44 = vpack.c.bf16 %v981_v1, %v981_v1  ;;  %3462 = vmatprep.subr.bf16.mxu1 %v3904_v16 }
 0x858   :  { %3447 = vmatmul.mubr.msk.bf16.vlgmr.msra.gmra.mxu0 %vm424_vm2, %v983_v44 }
 0x859   :  { %3457 = vmatpush3.bf16.xpose.msra.mxu0 %v1138_v45  ;;  %3458 = vmatprep.mubr.msk.bf16.mxu0 %vm3905_vm1, %v3904_v16 }
 0x85a   :  { %3468 = vmatprep.subr.bf16.mxu0 %v3904_v16 }
 0x85c   :  { %3453 = vmatmul.mubr.msk.bf16.vlgmr.msra.gmra.mxu1 %vm424_vm2, %v1081_v46 }
 0x85d   :  { %3464 = vmatprep.mubr.msk.bf16.mxu1 %vm3905_vm1, %v3904_v16 }
 0x860   :  { %3459 = vmatmul.mubr.msk.bf16.vlgmr.msra.gmra.mxu0 %vm424_vm2, %v1131_v47 }
 0x861   :  { %3470 = vmatprep.mubr.msk.bf16.mxu0 %vm3905_vm1, %v3904_v16 }
 0x914   :  { %v1026_v48 = vpop.f32.mrf.mxu1 }
 0x916   :  { %v3442_v49 = vpop.f32.mrf.mxu1 }
 0x918   :  { %v1029_v50 = vpop.f32.mrf.mxu1  ;;  %v1074_v51 = vpop.f32.mrf.mxu0 }
 0x919   :  { %v3701_v15 = vpack.i.bf16 %v1074_v51, %v1026_v48 }
 0x91a   :  { %v3443_v52 = vpop.f32.mrf.mxu1  ;;  %v3448_v54 = vpop.f32.mrf.mxu0 }
 0x91c   :  { %v1077_v56 = vpop.f32.mrf.mxu0  ;;  %v1124_v57 = vpop.f32.mrf.mxu1 }
 0x91d   :  { %v1125_v63 = vadd.f32 %v1124_v57, %v4182_v18 }
 0x91e   :  { %v3449_v0 = vpop.f32.mrf.mxu0  ;;  %v3454_v4 = vpop.f32.mrf.mxu1 }
 0x91f   :  { %v1180_v6 = vsel %vm424_vm2, %v1125_v63, -inf }
 0x920   :  { %v1174_v7 = vpop.f32.mrf.mxu0  ;;  %1181 = vmax.xlane.f32.xlu0 %v1180_v6  ;;  %v1127_v8 = vpop.f32.mrf.mxu1 }
 0x921   :  { %v1175_v9 = vadd.f32 %v1174_v7, %v4185_v22 }
 0x922   :  { %v3455_v10 = vpop.f32.mrf.mxu1  ;;  %v3460_v11 = vpop.f32.mrf.mxu0 }
 0x923   :  { %v1183_v12 = vsel %vm424_vm2, %v1175_v9, -inf }
 0x924   :  { %1184 = vmax.xlane.f32.xlu1 %v1183_v12  ;;  %v1177_v13 = vpop.f32.mrf.mxu0 }
 0x926   :  { %v3461_v14 = vpop.f32.mrf.mxu0 }
 0x935   :  { %1252 = vrot.lane.b32.xlu1 %v4162_v3, %s3908_s9 }
 0x939   :  { %3697 = vrot.lane.b32.xlu1 %v3696_v59, %s3909_s13 }
 0x93d   :  { %3702 = vrot.lane.b32.xlu1 %v3701_v15, %s3910_s17 }
 0x9a9   :  { %v1182_v17 = vpop.xlane.xlu0 %1181 }
 0x9aa   :  { %v1186_v19 = vsub.f32 %v1125_v63, %v1182_v17 }
 0x9ac   :  { %v1188_v20 = vmul.f32 1.442695, %v1186_v19 }
 0x9ad   :  { %v1185_v21 = vpop.xlane.xlu1 %1184 }
 0x9ae   :  { %3782 = vpow2.f32 %v1188_v20  ;;  %v1187_v23 = vsub.f32 %v1175_v9, %v1185_v21 }
 0x9b0   :  { %v1190_v24 = vmul.f32 1.442695, %v1187_v23 }
 0x9b1   :  { %v1253_v25 = vpop.permute.xlu1 %1252 }
 0x9b2   :  { %3784 = vpow2.f32 %v1190_v24  ;;  %v1258_v3 = vsel %vm544_vm3, %v1253_v25, 0 }
 0x9b3   :  { %3469 = vmatpush3.bf16.msra.mxu0 %v1258_v3 }
 0x9b4   :  { %3482 = vmatprep.subr.bf16.mxu0 %v3904_v16 }
 0x9b5   :  { %v3698_v45 = vpop.permute.xlu1 %3697 }
 0x9b6   :  { %v3700_v47 = vunpack.i.h.bf16 %v3698_v45  ;;  %v3699_v48 = vunpack.i.l.bf16 %v3698_v45 }
 0x9b8   :  { %v1325_v52 = vsel %vm424_vm2, %v4218_v2, %v3700_v47  ;;  %v1324_v54 = vsel %vm424_vm2, %v4216_v60, %v3699_v48  ;;  %v3186_v2 = vld [vmem:[%s3977_s24] ss:$0 sm:$0xff]  ;;  %s4662_s24 = sld [smem:[#allocation9_spill]] }
 0x9b9   :  { %v3703_v46 = vpop.permute.xlu1 %3702 }
 0x9ba   :  { %v3705_v49 = vunpack.i.h.bf16 %v3703_v46  ;;  %v3704_v50 = vunpack.i.l.bf16 %v3703_v46 }
 0x9bb   :  { %v3783_v55 = vpop.eup %3782 }
 0x9bc   :  { %v1192_v58 = vsel %vm424_vm2, %v3783_v55, 0.0  ;;  %v1328_v63 = vsel %vm1326_vm4, %v1325_v52, %v3705_v49  ;;  %v1327_v0 = vsel %vm1326_vm4, %v1324_v54, %v3704_v50 }
 0x9bd   :  { %1193 = vadd.xlane.f32.xlu0 %v1192_v58 }
 0x9bf   :  { %v3785_v59 = vpop.eup %3784 }
 0x9c0   :  { %v1195_v26 = vsel %vm424_vm2, %v3785_v59, 0.0 }
 0x9c1   :  { %1196 = vadd.xlane.f32.xlu0 %v1195_v26 }
 0x9d7   :  { %1204 = vrot.lane.b32.xlu0 %v4155_v62, %s3908_s9 }
 0xa46   :  { %v1194_v27 = vpop.xlane.xlu0 %1193 }
 0xa47   :  { %3786 = vrcp.f32 %v1194_v27 }
 0xa4a   :  { %v1197_v28 = vpop.xlane.xlu0 %1196 }
 0xa4b   :  { %3788 = vrcp.f32 %v1197_v28 }
 0xa4e   :  { %v1205_v29 = vpop.permute.xlu0 %1204 }
 0xa4f   :  { %v1210_v53 = vsel %vm544_vm3, %v1205_v29, 0 }
 0xa50   :  { %3463 = vmatpush3.bf16.msra.mxu1 %v1210_v53 }
 0xa51   :  { %3474 = vmatprep.subr.bf16.mxu1 %v3904_v16 }
 0xa54   :  { %v3787_v61 = vpop.eup %3786 }
 0xa55   :  { %v1200_v30 = vmul.f32 %v3787_v61, %v3783_v55 }
 0xa57   :  { %v1202_v5 = vpack.c.bf16 %v1200_v30, %v1200_v30 }
 0xa58   :  { %v3789_v31 = vpop.eup %3788 }
 0xa59   :  { %3465 = vmatmul.mubr.msk.bf16.vlgmr.msra.gmra.mxu1 %vm424_vm2, %v1202_v5  ;;  %v1201_v32 = vmul.f32 %v3789_v31, %v3785_v59  ;;  %v3734_v59 = vld [vmem:[%s3992_s12 + $0x8] sm:$0xff]   ;;  %v3190_v31 = vld [vmem:[%s3982_s30] ss:$0 sm:$0xff]  ;;  %s4663_s30 = sld [smem:[#allocation10_spill]] }
 0xa5a   :  { %3478 = vmatprep.mubr.msk.bf16.mxu1 %vm3905_vm1, %v3904_v16  ;;  %3475 = vmatpush3.bf16.msra.mxu1 %v3732_v35 }
 0xa5b   :  { %v1203_v62 = vpack.c.bf16 %v1201_v32, %v1201_v32  ;;  %3476 = vmatprep.subr.bf16.mxu1 %v3904_v16 }
 0xa5d   :  { %3471 = vmatmul.mubr.msk.bf16.vlgmr.msra.gmra.mxu0 %vm424_vm2, %v1203_v62 }
 0xa5e   :  { %3486 = vmatprep.mubr.msk.bf16.mxu0 %vm3905_vm1, %v3904_v16  ;;  %3477 = vmatpush3.bf16.msra.mxu1 %v3733_v36  ;;  %v3191_v36 = vld [vmem:[%s4656_s25] ss:$0 sm:$0xff] }
 0xa5f   :  { %3490 = vmatprep.subr.bf16.mxu1 %v3904_v16  ;;  %3483 = vmatpush3.bf16.msra.mxu0 %v3734_v59 }
 0xa60   :  { %3484 = vmatprep.subr.bf16.mxu0 %v3904_v16 }
 0xb19   :  { %v1246_v37 = vpop.f32.mrf.mxu1 }
 0xb1b   :  { %v3466_v38 = vpop.f32.mrf.mxu1 }
 0xb1d   :  { %v1249_v39 = vpop.f32.mrf.mxu1  ;;  %v1294_v40 = vpop.f32.mrf.mxu0 }
 0xb1e   :  { %v3706_v41 = vpack.i.bf16 %v1294_v40, %v1246_v37 }
 0xb1f   :  { %v3467_v42 = vpop.f32.mrf.mxu1  ;;  %v3472_v1 = vpop.f32.mrf.mxu0 }
 0xb20   :  { %3707 = vrot.lane.b32.xlu0 %v3706_v41, %s3911_s21  ;;  %v3736_v41 = vld [vmem:[%s4657_s29 + $0x18] sm:$0xff]   ;;  %v3737_v42 = vld [vmem:[%s4657_s29 + $0x10] sm:$0xff]   ;;  %v3738_v1 = vld [vmem:[%s4657_s29 + $0x8] sm:$0xff]  }
 0xb21   :  { %v1297_v43 = vpop.f32.mrf.mxu0 }
 0xb22   :  { %v3739_v43 = vld [vmem:[%s4657_s29] sm:$0xff]  }
 0xb23   :  { %v3473_v44 = vpop.f32.mrf.mxu0 }
 0xb24   :  { %v3192_v44 = vld [vmem:[%s4658_s3] ss:$0 sm:$0xff] }
 0xb92   :  { %v3708_v51 = vpop.permute.xlu0 %3707 }
 0xb93   :  { %v3710_v56 = vunpack.i.h.bf16 %v3708_v51  ;;  %v3709_v57 = vunpack.i.l.bf16 %v3708_v51 }
 0xb95   :  { %v1331_v4 = vsel %vm1329_vm5, %v1328_v63, %v3710_v56  ;;  %v1330_v6 = vsel %vm1329_vm5, %v1327_v0, %v3709_v57 }
 0xb96   :  { %v1332_v7 = vpack.c.bf16 %v1331_v4, %v1330_v6 }
 0xb98   :  { %3479 = vmatmul.mubr.msk.bf16.vlgmr.msra.gmra.mxu1 %vm156_vm0, %v1332_v7 }
 0xb99   :  { %3498 = vmatprep.mubr.msk.bf16.mxu1 %vm3905_vm1, %v3904_v16  ;;  %3491 = vmatpush3.bf16.msra.mxu1 %v3736_v41 }
 0xb9a   :  { %3492 = vmatprep.subr.bf16.mxu1 %v3904_v16 }
 0xb9d   :  { %3493 = vmatpush3.bf16.msra.mxu1 %v3737_v42 }
 0xb9e   :  { %3494 = vmatprep.subr.bf16.mxu1 %v3904_v16 }
 0xba1   :  { %3495 = vmatpush3.bf16.msra.mxu1 %v3738_v1  ;;  %v3202_v1 = vld [vmem:[%s4662_s24] ss:$0 sm:$0xff] }
 0xba2   :  { %3496 = vmatprep.subr.bf16.mxu1 %v3904_v16 }
 0xba5   :  { %3497 = vmatpush3.bf16.msra.mxu1 %v3739_v43 }
 0xba6   :  { %3518 = vmatprep.subr.bf16.mxu1 %v3904_v16 }
 0xc58   :  { %v1393_v8 = vpop.f32.mrf.mxu1 }
 0xc59   :  { %v1394_v9 = vadd.f32 %v3186_v2, %v1393_v8 }
 0xc5a   :  { %v3480_v60 = vpop.f32.mrf.mxu1 }
 0xc5b   :  { %v1400_v10 = vadd.f32 %v1394_v9, %v4126_v33 }
 0xc5c   :  { %v1396_v11 = vpop.f32.mrf.mxu1 }
 0xc5d   :  { %v1397_v12 = vadd.f32 %v3186_v2, %v1396_v11  ;;  %v1404_v13 = vsel %vm156_vm0, %v1400_v10, 0.0 }
 0xc5e   :  { %1405 = vadd.xlane.f32.xlu1 %v1404_v13  ;;  %v3481_v14 = vpop.f32.mrf.mxu1 }
 0xc5f   :  { %v1401_v15 = vadd.f32 %v1397_v12, %v4128_v34  ;;  %v3735_v34 = vld [vmem:[%s3992_s12] sm:$0xff]   ;;  %s4664_s12 = sld [smem:[#allocation13_spill]] }
 0xc60   :  { %3485 = vmatpush3.bf16.msra.mxu0 %v3735_v34 }
 0xc61   :  { %v1407_v17 = vsel %vm156_vm0, %v1401_v15, 0.0  ;;  %3502 = vmatprep.subr.bf16.mxu0 %v3904_v16 }
 0xc62   :  { %1408 = vadd.xlane.f32.xlu0 %v1407_v17 }
 0xce7   :  { %v1406_v19 = vpop.xlane.xlu1 %1405 }
 0xce8   :  { %v1410_v20 = vmul.f32 0.03125, %v1406_v19 }
 0xcea   :  { %v1412_v21 = vsub.f32 %v1400_v10, %v1410_v20 }
 0xceb   :  { %v1409_v23 = vpop.xlane.xlu0 %1408 }
 0xcec   :  { %v1411_v24 = vmul.f32 0.03125, %v1409_v23  ;;  %v1414_v25 = vmul.f32 %v1412_v21, %v1412_v21 }
 0xcee   :  { %v1413_v33 = vsub.f32 %v1401_v15, %v1411_v24  ;;  %v1416_v3 = vsel %vm156_vm0, %v1414_v25, 0.0  ;;  %v3196_v15 = vld [vmem:[%s4659_s8] ss:$0 sm:$0xff] }
 0xcef   :  { %1417 = vadd.xlane.f32.xlu0 %v1416_v3 }
 0xcf0   :  { %v1415_v55 = vmul.f32 %v1413_v33, %v1413_v33 }
 0xcf2   :  { %v1419_v58 = vsel %vm156_vm0, %v1415_v55, 0.0 }
 0xcf3   :  { %1420 = vadd.xlane.f32.xlu0 %v1419_v58 }
 0xd78   :  { %v1418_v26 = vpop.xlane.xlu0 %1417 }
 0xd79   :  { %v1422_v27 = vmul.f32 0.03125, %v1418_v26 }
 0xd7b   :  { %v1424_v28 = vadd.f32 1e-12, %v1422_v27 }
 0xd7c   :  { %v1421_v29 = vpop.xlane.xlu0 %1420 }
 0xd7d   :  { %3790 = vrsqrt.f32 %v1424_v28  ;;  %v1423_v53 = vmul.f32 0.03125, %v1421_v29 }
 0xd7f   :  { %v1425_v61 = vadd.f32 1e-12, %v1423_v53 }
 0xd81   :  { %3792 = vrsqrt.f32 %v1425_v61 }
 0xd8a   :  { %v3791_v30 = vpop.eup %3790 }
 0xd8b   :  { %v1428_v5 = vmul.f32 %v3791_v30, %v1412_v21 }
 0xd8d   :  { %v1436_v35 = vmul.f32 %v3190_v31, %v1428_v5  ;;  %v3740_v5 = vld [vmem:[%s4660_s14 + $0x8] sm:$0xff]  }
 0xd8e   :  { %v3793_v32 = vpop.eup %3792 }
 0xd8f   :  { %v1429_v62 = vmul.f32 %v3793_v32, %v1413_v33  ;;  %v1444_v38 = vadd.f32 %v3191_v36, %v1436_v35  ;;  %v3742_v32 = vld [vmem:[%s4660_s14] sm:$0xff]  }
 0xd91   :  { %v1437_v37 = vmul.f32 %v3190_v31, %v1429_v62  ;;  %v3741_v31 = vld [vmem:[%s4661_s19 + $0x8] sm:$0xff]   ;;  %v3743_v62 = vld [vmem:[%s4661_s19] sm:$0xff]  }
 0xd93   :  { %v1445_v39 = vadd.f32 %v3191_v36, %v1437_v37 }
 0xd95   :  { %v1446_v40 = vpack.c.bf16 %v1445_v39, %v1444_v38 }
 0xd97   :  { %3487 = vmatmul.mubr.msk.bf16.vlgmr.msra.gmra.mxu0 %vm156_vm0, %v1446_v40 }
 0xd98   :  { %3506 = vmatprep.mubr.msk.bf16.mxu0 %vm3905_vm1, %v3904_v16  ;;  %3503 = vmatpush3.bf16.msra.mxu0 %v3740_v5 }
 0xd99   :  { %3504 = vmatprep.subr.bf16.mxu0 %v3904_v16 }
 0xd9c   :  { %3505 = vmatpush3.bf16.msra.mxu0 %v3742_v32 }
 0xd9d   :  { %3510 = vmatprep.subr.bf16.mxu0 %v3904_v16 }
 0xe57   :  { %v1507_v45 = vpop.f32.mrf.mxu0 }
 0xe58   :  { %v1508_v46 = vadd.f32 %v3192_v44, %v1507_v45 }
 0xe59   :  { %v3488_v47 = vpop.f32.mrf.mxu0 }
 0xe5a   :  { %v1516_v48 = vmul.f32 %v1508_v46, %v1508_v46  ;;  %v1514_v60 = vmul.f32 0.5, %v1508_v46 }
 0xe5b   :  { %v1510_v49 = vpop.f32.mrf.mxu0 }
 0xe5c   :  { %v1518_v50 = vmul.f32 %v1516_v48, %v1508_v46  ;;  %v1511_v51 = vadd.f32 %v3192_v44, %v1510_v49 }
 0xe5d   :  { %v3489_v52 = vpop.f32.mrf.mxu0 }
 0xe5e   :  { %v1520_v54 = vmul.f32 0.044715, %v1518_v50  ;;  %v1517_v56 = vmul.f32 %v1511_v51, %v1511_v51  ;;  %v1515_v10 = vmul.f32 0.5, %v1511_v51  ;;  %v3744_v50 = vld [vmem:[%s4664_s12 + $0x8] sm:$0xff]   ;;  %v3745_v52 = vld [vmem:[%s4664_s12] sm:$0xff]  }
 0xe60   :  { %v1522_v57 = vadd.f32 %v1520_v54, %v1508_v46  ;;  %v1519_v63 = vmul.f32 %v1517_v56, %v1511_v51  ;;  %v3203_v46 = vld [vmem:[%s4663_s30] ss:$0 sm:$0xff] }
 0xe62   :  { %v1524_v0 = vmul.f32 0.7978846, %v1522_v57  ;;  %v1521_v4 = vmul.f32 0.044715, %v1519_v63 }
 0xe64   :  { %3794 = vtanh.f32 %v1524_v0  ;;  %v1523_v6 = vadd.f32 %v1521_v4, %v1511_v51 }
 0xe66   :  { %v1525_v7 = vmul.f32 0.7978846, %v1523_v6 }
 0xe68   :  { %3796 = vtanh.f32 %v1525_v7 }
 0xe71   :  { %v3795_v2 = vpop.eup %3794 }
 0xe72   :  { %v1528_v8 = vadd.f32 1.0, %v3795_v2  ;;  %v3208_v2 = vld [vmem:[%s4665_s28] ss:$0 sm:$0xff] }
 0xe74   :  { %v1530_v12 = vmul.f32 %v1528_v8, %v1514_v60  ;;  %v3204_v8 = vld [vmem:[%s4666_s1] ss:$0 sm:$0xff] }
 0xe75   :  { %v3797_v9 = vpop.eup %3796 }
 0xe76   :  { %v1529_v11 = vadd.f32 1.0, %v3797_v9 }
 0xe78   :  { %v1531_v13 = vmul.f32 %v1529_v11, %v1515_v10  ;;  %v3212_v10 = vld [vmem:[%s4667_s2] ss:$0 sm:$0xff] }
 0xe7a   :  { %v1532_v14 = vpack.c.bf16 %v1531_v13, %v1530_v12 }
 0xe7c   :  { %3499 = vmatmul.mubr.msk.bf16.vlgmr.msra.gmra.mxu1 %vm1572_vm6, %v1532_v14 }
 0xe7d   :  { %3522 = vmatprep.mubr.msk.bf16.mxu1 %vm3905_vm1, %v3904_v16  ;;  %3519 = vmatpush3.bf16.msra.mxu1 %v3741_v31 }
 0xe7e   :  { %3520 = vmatprep.subr.bf16.mxu1 %v3904_v16 }
 0xe81   :  { %3521 = vmatpush3.bf16.msra.mxu1 %v3743_v62 }
 0xe82   :  { %3532 = vmatprep.subr.bf16.mxu1 %v3904_v16 }
 0xf3c   :  { %v1610_v17 = vpop.f32.mrf.mxu1 }
 0xf3d   :  { %v1611_v19 = vadd.f32 %v3196_v15, %v1610_v17 }
 0xf3e   :  { %v3500_v20 = vpop.f32.mrf.mxu1 }
 0xf3f   :  { %v1617_v21 = vadd.f32 %v1611_v19, %v1444_v38 }
 0xf40   :  { %v1613_v23 = vpop.f32.mrf.mxu1 }
 0xf41   :  { %v1614_v24 = vadd.f32 %v3196_v15, %v1613_v23  ;;  %v1621_v25 = vsel %vm156_vm0, %v1617_v21, 0.0 }
 0xf42   :  { %1622 = vadd.xlane.f32.xlu1 %v1621_v25  ;;  %v3501_v33 = vpop.f32.mrf.mxu1 }
 0xf43   :  { %v1618_v3 = vadd.f32 %v1614_v24, %v1445_v39 }
 0xf45   :  { %v1624_v55 = vsel %vm156_vm0, %v1618_v3, 0.0 }
 0xf46   :  { %1625 = vadd.xlane.f32.xlu0 %v1624_v55 }
 0xfcb   :  { %v1623_v58 = vpop.xlane.xlu1 %1622 }
 0xfcc   :  { %v1627_v59 = vmul.f32 0.03125, %v1623_v58 }
 0xfce   :  { %v1629_v34 = vsub.f32 %v1617_v21, %v1627_v59 }
 0xfcf   :  { %v1626_v26 = vpop.xlane.xlu0 %1625 }
 0xfd0   :  { %v1628_v27 = vmul.f32 0.03125, %v1626_v26  ;;  %v1631_v28 = vmul.f32 %v1629_v34, %v1629_v34 }
 0xfd2   :  { %v1630_v29 = vsub.f32 %v1618_v3, %v1628_v27  ;;  %v1633_v53 = vsel %vm156_vm0, %v1631_v28, 0.0 }
 0xfd3   :  { %1634 = vadd.xlane.f32.xlu1 %v1633_v53 }
 0xfd4   :  { %v1632_v61 = vmul.f32 %v1630_v29, %v1630_v29 }
 0xfd6   :  { %v1636_v30 = vsel %vm156_vm0, %v1632_v61, 0.0 }
 0xfd7   :  { %1637 = vadd.xlane.f32.xlu0 %v1636_v30 }
0x105c   :  { %v1635_v35 = vpop.xlane.xlu1 %1634 }
0x105d   :  { %v1639_v36 = vmul.f32 0.03125, %v1635_v35 }
0x105f   :  { %v1641_v37 = vadd.f32 1e-12, %v1639_v36 }
0x1060   :  { %v1638_v38 = vpop.xlane.xlu0 %1637 }
0x1061   :  { %3798 = vrsqrt.f32 %v1641_v37  ;;  %v1640_v39 = vmul.f32 0.03125, %v1638_v38 }
0x1063   :  { %v1642_v40 = vadd.f32 1e-12, %v1640_v39 }
0x1065   :  { %3800 = vrsqrt.f32 %v1642_v40 }
0x106e   :  { %v3799_v41 = vpop.eup %3798 }
0x106f   :  { %v1645_v42 = vmul.f32 %v3799_v41, %v1629_v34 }
0x1071   :  { %v1653_v45 = vmul.f32 %v3202_v1, %v1645_v42 }
0x1072   :  { %v3801_v43 = vpop.eup %3800 }
0x1073   :  { %v1646_v44 = vmul.f32 %v3801_v43, %v1630_v29  ;;  %v4386_v48 = vadd.f32 %v3203_v46, %v1653_v45 }
0x1075   :  { %v1654_v47 = vmul.f32 %v3202_v1, %v1646_v44 }
0x1077   :  { %v4388_v49 = vadd.f32 %v3203_v46, %v1654_v47 }
0x1079   :  { %v1663_v51 = vpack.c.bf16 %v4388_v49, %v4386_v48 }
0x107b   :  { %3507 = vmatmul.mubr.msk.bf16.vlgmr.msra.gmra.mxu0 %vm156_vm0, %v1663_v51  ;;  %3523 = vmatmul.mubr.msk.bf16.vlgmr.msra.gmra.mxu1 %vm156_vm0, %v1663_v51 }
0x107c   :  { %3511 = vmatpush3.bf16.msra.mxu0 %v3744_v50  ;;  %3514 = vmatprep.mubr.msk.bf16.mxu0 %vm3905_vm1, %v3904_v16 }
0x107d   :  { %3512 = vmatprep.subr.bf16.mxu0 %v3904_v16  ;;  %3534 = vmatprep.mubr.msk.bf16.mxu1 %vm3905_vm1, %v3904_v16 }
0x1080   :  { %3513 = vmatpush3.bf16.msra.mxu0 %v3745_v52 }
0x1081   :  { %3526 = vmatprep.subr.bf16.mxu0 %v3904_v16 }
0x1083   :  { %3515 = vmatmul.mubr.msk.bf16.vlgmr.msra.gmra.mxu0 %vm156_vm0, %v1663_v51 }
0x1084   :  { %3528 = vmatprep.mubr.msk.bf16.mxu0 %vm3905_vm1, %v3904_v16 }
0x113b   :  { %v1724_v54 = vpop.f32.mrf.mxu0  ;;  %v1854_v56 = vpop.f32.mrf.mxu1 }
0x113c   :  { %v1725_v12 = vadd.f32 %v3204_v8, %v1724_v54  ;;  %v1855_v15 = vadd.f32 %v3212_v10, %v1854_v56 }
0x113d   :  { %v3508_v57 = vpop.f32.mrf.mxu0  ;;  %v3524_v63 = vpop.f32.mrf.mxu1 }
0x113e   :  { %v1731_v21 = vmul.f32 0.35355338, %v1725_v12  ;;  %v4415_v25 = vpack.c.bf16 %v1855_v15, %v1855_v15 }
0x113f   :  { %v1727_v0 = vpop.f32.mrf.mxu0  ;;  %v1857_v4 = vpop.f32.mrf.mxu1 }
0x1140   :  { %v1728_v23 = vadd.f32 %v3204_v8, %v1727_v0  ;;  %v1858_v33 = vadd.f32 %v3212_v10, %v1857_v4  ;;  %v4419_v55 = vpack.c.bf16 %v1731_v21, %v1731_v21  ;;  %v1987_v34 = vsel %vm544_vm3, %v4415_v25, 0 }
0x1141   :  { %v3509_v6 = vpop.f32.mrf.mxu0  ;;  %v3525_v7 = vpop.f32.mrf.mxu1 }
0x1142   :  { %v1732_v58 = vmul.f32 0.35355338, %v1728_v23  ;;  %v4422_v59 = vpack.c.bf16 %v1858_v33, %v1858_v33 }
0x1143   :  { %v1790_v9 = vpop.f32.mrf.mxu0 }
0x1144   :  { %v1791_v60 = vadd.f32 %v3208_v2, %v1790_v9  ;;  %v4430_v26 = vpack.c.bf16 %v1732_v58, %v1732_v58  ;;  %v2033_v27 = vsel %vm544_vm3, %v4422_v59, 0 }
0x1145   :  { %v3516_v11 = vpop.f32.mrf.mxu0 }
0x1146   :  { %v4408_v13 = vpack.c.bf16 %v1791_v60, %v1791_v60 }
0x1147   :  { %v1793_v14 = vpop.f32.mrf.mxu0 }
0x1148   :  { %v1794_v17 = vadd.f32 %v3208_v2, %v1793_v14  ;;  %v1871_v19 = vsel %vm424_vm2, %v4408_v13, 0 }
0x1149   :  { %v3517_v20 = vpop.f32.mrf.mxu0  ;;  %3527 = vmatpush3.bf16.xpose.msra.mxu0 %v1871_v19 }
0x114a   :  { %v4412_v24 = vpack.c.bf16 %v1794_v17, %v1794_v17  ;;  %3538 = vmatprep.subr.bf16.mxu0 %v3904_v16 }
0x114c   :  { %v1917_v3 = vsel %vm424_vm2, %v4412_v24, 0 }
0x114d   :  { %3533 = vmatpush3.bf16.xpose.msra.mxu1 %v1917_v3 }
0x114e   :  { %3544 = vmatprep.subr.bf16.mxu1 %v3904_v16 }
0x1150   :  { %3529 = vmatmul.mubr.msk.bf16.vlgmr.msra.gmra.mxu0 %vm424_vm2, %v4419_v55 }
0x1151   :  { %3539 = vmatpush3.bf16.msra.mxu0 %v1987_v34  ;;  %3540 = vmatprep.mubr.msk.bf16.mxu0 %vm3905_vm1, %v3904_v16 }
0x1152   :  { %3550 = vmatprep.subr.bf16.mxu0 %v3904_v16 }
0x1154   :  { %3535 = vmatmul.mubr.msk.bf16.vlgmr.msra.gmra.mxu1 %vm424_vm2, %v4430_v26 }
0x1155   :  { %3545 = vmatpush3.bf16.msra.mxu1 %v2033_v27  ;;  %3546 = vmatprep.mubr.msk.bf16.mxu1 %vm3905_vm1, %v3904_v16 }
0x1156   :  { %3556 = vmatprep.subr.bf16.mxu1 %v3904_v16 }
0x1210   :  { %v1907_v28 = vpop.f32.mrf.mxu0 }
0x1211   :  { %v1908_v29 = vadd.f32 %v1907_v28, %v4182_v18 }
0x1212   :  { %v3530_v53 = vpop.f32.mrf.mxu0 }
0x1213   :  { %v1959_v61 = vsel %vm424_vm2, %v1908_v29, -inf }
0x1214   :  { %1960 = vmax.xlane.f32.xlu1 %v1959_v61  ;;  %v1910_v30 = vpop.f32.mrf.mxu0  ;;  %v1953_v5 = vpop.f32.mrf.mxu1 }
0x1215   :  { %v1954_v31 = vadd.f32 %v1953_v5, %v4185_v22 }
0x1216   :  { %v3531_v32 = vpop.f32.mrf.mxu0  ;;  %v3536_v62 = vpop.f32.mrf.mxu1 }
0x1217   :  { %v1962_v35 = vsel %vm424_vm2, %v1954_v31, -inf }
0x1218   :  { %1963 = vmax.xlane.f32.xlu0 %v1962_v35  ;;  %v1956_v36 = vpop.f32.mrf.mxu1 }
0x121a   :  { %v3537_v37 = vpop.f32.mrf.mxu1 }
0x1225   :  { %2079 = vrot.lane.b32.xlu1 %v4408_v13, %s3906_s0 }
0x129d   :  { %v1961_v38 = vpop.xlane.xlu1 %1960 }
0x129e   :  { %v1965_v39 = vsub.f32 %v1908_v29, %v1961_v38 }
0x12a0   :  { %v1967_v40 = vmul.f32 1.442695, %v1965_v39 }
0x12a1   :  { %v1964_v41 = vpop.xlane.xlu0 %1963  ;;  %v2080_v47 = vpop.permute.xlu1 %2079 }
0x12a2   :  { %3802 = vpow2.f32 %v1967_v40  ;;  %v1966_v42 = vsub.f32 %v1954_v31, %v1964_v41  ;;  %v2085_v63 = vsel %vm424_vm2, %v2080_v47, 0 }
0x12a4   :  { %v1969_v1 = vmul.f32 1.442695, %v1966_v42 }
0x12a6   :  { %3804 = vpow2.f32 %v1969_v1 }
0x12af   :  { %v3803_v43 = vpop.eup %3802 }
0x12b0   :  { %v1971_v44 = vsel %vm424_vm2, %v3803_v43, 0.0 }
0x12b1   :  { %1972 = vadd.xlane.f32.xlu1 %v1971_v44 }
0x12b3   :  { %v3805_v45 = vpop.eup %3804 }
0x12b4   :  { %v1974_v46 = vsel %vm424_vm2, %v3805_v45, 0.0 }
0x12b5   :  { %1975 = vadd.xlane.f32.xlu0 %v1974_v46 }
0x12c2   :  { %2076 = vrot.lane.b32.xlu1 %v4419_v55, %s3906_s0 }
0x12c6   :  { %2128 = vrot.lane.b32.xlu1 %v4430_v26, %s3906_s0 }
0x12cb   :  { %2131 = vrot.lane.b32.xlu0 %v4412_v24, %s3906_s0 }
0x133a   :  { %v1973_v50 = vpop.xlane.xlu1 %1972 }
0x133b   :  { %3806 = vrcp.f32 %v1973_v50 }
0x133e   :  { %v1976_v51 = vpop.xlane.xlu0 %1975  ;;  %v2077_v2 = vpop.permute.xlu1 %2076 }
0x133f   :  { %3808 = vrcp.f32 %v1976_v51 }
0x1342   :  { %v2132_v4 = vpop.permute.xlu0 %2131  ;;  %v2129_v8 = vpop.permute.xlu1 %2128 }
0x1343   :  { %v2137_v7 = vsel %vm424_vm2, %v2132_v4, 0 }
0x1348   :  { %v3807_v52 = vpop.eup %3806 }
0x1349   :  { %v1979_v54 = vmul.f32 %v3807_v52, %v3803_v43 }
0x134b   :  { %v1981_v56 = vpack.c.bf16 %v1979_v54, %v1979_v54 }
0x134c   :  { %v3809_v57 = vpop.eup %3808 }
0x134d   :  { %3541 = vmatmul.mubr.msk.bf16.vlgmr.msra.gmra.mxu0 %vm424_vm2, %v1981_v56  ;;  %v1980_v0 = vmul.f32 %v3809_v57, %v3805_v45 }
0x134e   :  { %3551 = vmatpush3.bf16.xpose.msra.mxu0 %v2085_v63  ;;  %3552 = vmatprep.mubr.msk.bf16.mxu0 %vm3905_vm1, %v3904_v16 }
0x134f   :  { %v1982_v6 = vpack.c.bf16 %v1980_v0, %v1980_v0  ;;  %3562 = vmatprep.subr.bf16.mxu0 %v3904_v16 }
0x1351   :  { %3547 = vmatmul.mubr.msk.bf16.vlgmr.msra.gmra.mxu1 %vm424_vm2, %v1982_v6 }
0x1352   :  { %3557 = vmatpush3.bf16.xpose.msra.mxu1 %v2137_v7  ;;  %3558 = vmatprep.mubr.msk.bf16.mxu1 %vm3905_vm1, %v3904_v16 }
0x1353   :  { %3568 = vmatprep.subr.bf16.mxu1 %v3904_v16 }
0x1355   :  { %3553 = vmatmul.mubr.msk.bf16.vlgmr.msra.gmra.mxu0 %vm424_vm2, %v2077_v2 }
0x1356   :  { %3564 = vmatprep.mubr.msk.bf16.mxu0 %vm3905_vm1, %v3904_v16 }
0x1359   :  { %3559 = vmatmul.mubr.msk.bf16.vlgmr.msra.gmra.mxu1 %vm424_vm2, %v2129_v8 }
0x135a   :  { %3570 = vmatprep.mubr.msk.bf16.mxu1 %vm3905_vm1, %v3904_v16 }
0x140d   :  { %v4470_v9 = vpop.f32.mrf.mxu0 }
0x140f   :  { %v3542_v60 = vpop.f32.mrf.mxu0 }
0x1411   :  { %v2026_v10 = vpop.f32.mrf.mxu0  ;;  %v4472_v11 = vpop.f32.mrf.mxu1 }
0x1413   :  { %v3543_v12 = vpop.f32.mrf.mxu0  ;;  %v3548_v14 = vpop.f32.mrf.mxu1 }
0x1415   :  { %v2072_v15 = vpop.f32.mrf.mxu1  ;;  %v2121_v17 = vpop.f32.mrf.mxu0 }
0x1416   :  { %v2122_v19 = vadd.f32 %v2121_v17, %v4182_v18 }
0x1417   :  { %v3549_v20 = vpop.f32.mrf.mxu1  ;;  %v3554_v21 = vpop.f32.mrf.mxu0 }
0x1418   :  { %v2179_v23 = vsel %vm424_vm2, %v2122_v19, -inf }
0x1419   :  { %2180 = vmax.xlane.f32.xlu1 %v2179_v23  ;;  %v2124_v33 = vpop.f32.mrf.mxu0  ;;  %v2173_v3 = vpop.f32.mrf.mxu1 }
0x141a   :  { %v2174_v58 = vadd.f32 %v2173_v3, %v4185_v22 }
0x141b   :  { %v3555_v34 = vpop.f32.mrf.mxu0  ;;  %v3560_v27 = vpop.f32.mrf.mxu1 }
0x141c   :  { %v2182_v28 = vsel %vm424_vm2, %v2174_v58, -inf }
0x141d   :  { %2183 = vmax.xlane.f32.xlu0 %v2182_v28  ;;  %v2176_v29 = vpop.f32.mrf.mxu1 }
0x141f   :  { %v3561_v53 = vpop.f32.mrf.mxu1 }
0x142a   :  { %2204 = vrot.lane.b32.xlu1 %v4415_v25, %s3906_s0 }
0x142e   :  { %2303 = vrot.lane.b32.xlu1 %v4408_v13, %s3907_s5 }
0x1432   :  { %2353 = vrot.lane.b32.xlu1 %v4412_v24, %s3907_s5 }
0x1436   :  { %2301 = vrot.lane.b32.xlu1 %v4419_v55, %s3907_s5 }
0x14a2   :  { %v2181_v61 = vpop.xlane.xlu1 %2180 }
0x14a3   :  { %v2185_v30 = vsub.f32 %v2122_v19, %v2181_v61 }
0x14a5   :  { %v2187_v5 = vmul.f32 1.442695, %v2185_v30 }
0x14a6   :  { %v2205_v31 = vpop.permute.xlu1 %2204  ;;  %v2184_v32 = vpop.xlane.xlu0 %2183 }
0x14a7   :  { %3810 = vpow2.f32 %v2187_v5  ;;  %v2210_v62 = vsel %vm544_vm3, %v2205_v31, 0  ;;  %v2186_v35 = vsub.f32 %v2174_v58, %v2184_v32 }
0x14a8   :  { %3563 = vmatpush3.bf16.msra.mxu0 %v2210_v62 }
0x14a9   :  { %v2189_v36 = vmul.f32 1.442695, %v2186_v35  ;;  %3574 = vmatprep.subr.bf16.mxu0 %v3904_v16 }
0x14aa   :  { %v2304_v45 = vpop.permute.xlu1 %2303 }
0x14ab   :  { %3812 = vpow2.f32 %v2189_v36  ;;  %v2309_v51 = vsel %vm424_vm2, %v2304_v45, 0 }
0x14ae   :  { %v2354_v54 = vpop.permute.xlu1 %2353 }
0x14af   :  { %v2359_v57 = vsel %vm424_vm2, %v2354_v54, 0 }
0x14b2   :  { %v2302_v63 = vpop.permute.xlu1 %2301 }
0x14b4   :  { %v3811_v37 = vpop.eup %3810 }
0x14b5   :  { %v2191_v38 = vsel %vm424_vm2, %v3811_v37, 0.0 }
0x14b6   :  { %2192 = vadd.xlane.f32.xlu0 %v2191_v38 }
0x14b8   :  { %v3813_v39 = vpop.eup %3812 }
0x14b9   :  { %v2194_v40 = vsel %vm424_vm2, %v3813_v39, 0.0 }
0x14ba   :  { %2195 = vadd.xlane.f32.xlu0 %v2194_v40 }
0x14d0   :  { %2253 = vrot.lane.b32.xlu0 %v4422_v59, %s3906_s0 }
0x14d4   :  { %2351 = vrot.lane.b32.xlu0 %v4430_v26, %s3907_s5 }
0x153f   :  { %v2193_v41 = vpop.xlane.xlu0 %2192 }
0x1540   :  { %3814 = vrcp.f32 %v2193_v41 }
0x1543   :  { %v2196_v42 = vpop.xlane.xlu0 %2195 }
0x1544   :  { %3816 = vrcp.f32 %v2196_v42 }
0x1547   :  { %v2254_v1 = vpop.permute.xlu0 %2253 }
0x1548   :  { %v2259_v43 = vsel %vm544_vm3, %v2254_v1, 0 }
0x1549   :  { %3569 = vmatpush3.bf16.msra.mxu1 %v2259_v43 }
0x154a   :  { %3580 = vmatprep.subr.bf16.mxu1 %v3904_v16 }
0x154b   :  { %v2352_v0 = vpop.permute.xlu0 %2351 }
0x154d   :  { %v3815_v44 = vpop.eup %3814 }
0x154e   :  { %v2199_v46 = vmul.f32 %v3815_v44, %v3811_v37 }
0x1550   :  { %v2201_v47 = vpack.c.bf16 %v2199_v46, %v2199_v46 }
0x1551   :  { %v3817_v50 = vpop.eup %3816 }
0x1552   :  { %3565 = vmatmul.mubr.msk.bf16.vlgmr.msra.gmra.mxu0 %vm424_vm2, %v2201_v47  ;;  %v2200_v52 = vmul.f32 %v3817_v50, %v3813_v39 }
0x1553   :  { %3575 = vmatpush3.bf16.xpose.msra.mxu0 %v2309_v51  ;;  %3576 = vmatprep.mubr.msk.bf16.mxu0 %vm3905_vm1, %v3904_v16 }
0x1554   :  { %v2202_v56 = vpack.c.bf16 %v2200_v52, %v2200_v52  ;;  %3586 = vmatprep.subr.bf16.mxu0 %v3904_v16 }
0x1556   :  { %3571 = vmatmul.mubr.msk.bf16.vlgmr.msra.gmra.mxu1 %vm424_vm2, %v2202_v56 }
0x1557   :  { %3581 = vmatpush3.bf16.xpose.msra.mxu1 %v2359_v57  ;;  %3582 = vmatprep.mubr.msk.bf16.mxu1 %vm3905_vm1, %v3904_v16 }
0x1558   :  { %3592 = vmatprep.subr.bf16.mxu1 %v3904_v16 }
0x155a   :  { %3577 = vmatmul.mubr.msk.bf16.vlgmr.msra.gmra.mxu0 %vm424_vm2, %v2302_v63 }
0x155b   :  { %3588 = vmatprep.mubr.msk.bf16.mxu0 %vm3905_vm1, %v3904_v16 }
0x155e   :  { %3583 = vmatmul.mubr.msk.bf16.vlgmr.msra.gmra.mxu1 %vm424_vm2, %v2352_v0 }
0x155f   :  { %3594 = vmatprep.mubr.msk.bf16.mxu1 %vm3905_vm1, %v3904_v16 }
0x1612   :  { %v4512_v4 = vpop.f32.mrf.mxu0 }
0x1614   :  { %v3566_v6 = vpop.f32.mrf.mxu0 }
0x1616   :  { %v2249_v7 = vpop.f32.mrf.mxu0  ;;  %v4514_v2 = vpop.f32.mrf.mxu1 }
0x1617   :  { %v3711_v8 = vpack.i.bf16 %v4514_v2, %v4512_v4 }
0x1618   :  { %v3567_v60 = vpop.f32.mrf.mxu0  ;;  %v3572_v10 = vpop.f32.mrf.mxu1 }
0x161a   :  { %v2298_v12 = vpop.f32.mrf.mxu1  ;;  %v2345_v14 = vpop.f32.mrf.mxu0 }
0x161b   :  { %v2346_v15 = vadd.f32 %v2345_v14, %v4182_v18 }
0x161c   :  { %v3573_v17 = vpop.f32.mrf.mxu1  ;;  %v3578_v19 = vpop.f32.mrf.mxu0 }
0x161d   :  { %v2401_v20 = vsel %vm424_vm2, %v2346_v15, -inf }
0x161e   :  { %2402 = vmax.xlane.f32.xlu1 %v2401_v20  ;;  %v2348_v21 = vpop.f32.mrf.mxu0  ;;  %v2395_v23 = vpop.f32.mrf.mxu1 }
0x161f   :  { %v2396_v33 = vadd.f32 %v2395_v23, %v4185_v22 }
0x1620   :  { %v3579_v3 = vpop.f32.mrf.mxu0  ;;  %v3584_v58 = vpop.f32.mrf.mxu1 }
0x1621   :  { %v2404_v34 = vsel %vm424_vm2, %v2396_v33, -inf }
0x1622   :  { %2405 = vmax.xlane.f32.xlu0 %v2404_v34  ;;  %v2398_v27 = vpop.f32.mrf.mxu1 }
0x1624   :  { %v3585_v28 = vpop.f32.mrf.mxu1 }
0x162f   :  { %2425 = vrot.lane.b32.xlu1 %v4415_v25, %s3907_s5 }
0x1633   :  { %2523 = vrot.lane.b32.xlu1 %v4408_v13, %s3908_s9 }
0x1637   :  { %2573 = vrot.lane.b32.xlu1 %v4412_v24, %s3908_s9 }
0x163b   :  { %2521 = vrot.lane.b32.xlu1 %v4419_v55, %s3908_s9 }
0x16a7   :  { %v2403_v29 = vpop.xlane.xlu1 %2402 }
0x16a8   :  { %v2407_v53 = vsub.f32 %v2346_v15, %v2403_v29 }
0x16aa   :  { %v2409_v61 = vmul.f32 1.442695, %v2407_v53 }
0x16ab   :  { %v2426_v30 = vpop.permute.xlu1 %2425  ;;  %v2406_v5 = vpop.xlane.xlu0 %2405 }
0x16ac   :  { %3818 = vpow2.f32 %v2409_v61  ;;  %v2431_v31 = vsel %vm544_vm3, %v2426_v30, 0  ;;  %v2408_v32 = vsub.f32 %v2396_v33, %v2406_v5 }
0x16ad   :  { %3587 = vmatpush3.bf16.msra.mxu0 %v2431_v31 }
0x16ae   :  { %v2411_v62 = vmul.f32 1.442695, %v2408_v32  ;;  %3598 = vmatprep.subr.bf16.mxu0 %v3904_v16 }
0x16af   :  { %v2524_v41 = vpop.permute.xlu1 %2523 }
0x16b0   :  { %3820 = vpow2.f32 %v2411_v62  ;;  %v2529_v44 = vsel %vm424_vm2, %v2524_v41, 0 }
0x16b3   :  { %v2574_v45 = vpop.permute.xlu1 %2573 }
0x16b4   :  { %v2579_v47 = vsel %vm424_vm2, %v2574_v45, 0 }
0x16b7   :  { %v2522_v50 = vpop.permute.xlu1 %2521 }
0x16b9   :  { %v3819_v13 = vpop.eup %3818 }
0x16ba   :  { %v2413_v24 = vsel %vm424_vm2, %v3819_v13, 0.0 }
0x16bb   :  { %2414 = vadd.xlane.f32.xlu0 %v2413_v24 }
0x16bd   :  { %v3821_v35 = vpop.eup %3820 }
0x16be   :  { %v2416_v55 = vsel %vm424_vm2, %v3821_v35, 0.0 }
0x16bf   :  { %2417 = vadd.xlane.f32.xlu0 %v2416_v55 }
0x16d5   :  { %2473 = vrot.lane.b32.xlu0 %v4422_v59, %s3907_s5 }
0x16d9   :  { %2571 = vrot.lane.b32.xlu0 %v4430_v26, %s3908_s9 }
0x1744   :  { %v2415_v36 = vpop.xlane.xlu0 %2414 }
0x1745   :  { %3822 = vrcp.f32 %v2415_v36  ;;  %v3746_v36 = vld [vmem:[%s4668_s7 + $0x8] sm:$0xff]  }
0x1748   :  { %v2418_v37 = vpop.xlane.xlu0 %2417 }
0x1749   :  { %3824 = vrcp.f32 %v2418_v37  ;;  %v3747_v37 = vld [vmem:[%s4668_s7] sm:$0xff]  }
0x174c   :  { %v2474_v38 = vpop.permute.xlu0 %2473 }
0x174d   :  { %v2479_v39 = vsel %vm544_vm3, %v2474_v38, 0 }
0x174e   :  { %3593 = vmatpush3.bf16.msra.mxu1 %v2479_v39 }
0x174f   :  { %3604 = vmatprep.subr.bf16.mxu1 %v3904_v16 }
0x1750   :  { %v2572_v51 = vpop.permute.xlu0 %2571 }
0x1752   :  { %v3823_v40 = vpop.eup %3822 }
0x1753   :  { %v2421_v42 = vmul.f32 %v3823_v40, %v3819_v13 }
0x1755   :  { %v2423_v1 = vpack.c.bf16 %v2421_v42, %v2421_v42 }
0x1756   :  { %v3825_v43 = vpop.eup %3824 }
0x1757   :  { %3589 = vmatmul.mubr.msk.bf16.vlgmr.msra.gmra.mxu0 %vm424_vm2, %v2423_v1  ;;  %v2422_v26 = vmul.f32 %v3825_v43, %v3821_v35 }
0x1758   :  { %3599 = vmatpush3.bf16.xpose.msra.mxu0 %v2529_v44  ;;  %3600 = vmatprep.mubr.msk.bf16.mxu0 %vm3905_vm1, %v3904_v16 }
0x1759   :  { %v2424_v46 = vpack.c.bf16 %v2422_v26, %v2422_v26  ;;  %3610 = vmatprep.subr.bf16.mxu0 %v3904_v16 }
0x175b   :  { %3595 = vmatmul.mubr.msk.bf16.vlgmr.msra.gmra.mxu1 %vm424_vm2, %v2424_v46 }
0x175c   :  { %3605 = vmatpush3.bf16.xpose.msra.mxu1 %v2579_v47  ;;  %3606 = vmatprep.mubr.msk.bf16.mxu1 %vm3905_vm1, %v3904_v16 }
0x175d   :  { %3616 = vmatprep.subr.bf16.mxu1 %v3904_v16 }
0x175f   :  { %3601 = vmatmul.mubr.msk.bf16.vlgmr.msra.gmra.mxu0 %vm424_vm2, %v2522_v50 }
0x1760   :  { %3612 = vmatprep.mubr.msk.bf16.mxu0 %vm3905_vm1, %v3904_v16 }
0x1763   :  { %3607 = vmatmul.mubr.msk.bf16.vlgmr.msra.gmra.mxu1 %vm424_vm2, %v2572_v51 }
0x1764   :  { %3618 = vmatprep.mubr.msk.bf16.mxu1 %vm3905_vm1, %v3904_v16 }
0x1817   :  { %v2467_v52 = vpop.f32.mrf.mxu0 }
0x1819   :  { %v3590_v54 = vpop.f32.mrf.mxu0 }
0x181b   :  { %v2470_v56 = vpop.f32.mrf.mxu0  ;;  %v2515_v57 = vpop.f32.mrf.mxu1 }
0x181d   :  { %v3591_v63 = vpop.f32.mrf.mxu0  ;;  %v3596_v0 = vpop.f32.mrf.mxu1 }
0x181f   :  { %v2518_v6 = vpop.f32.mrf.mxu1  ;;  %v2565_v7 = vpop.f32.mrf.mxu0 }
0x1820   :  { %v2566_v60 = vadd.f32 %v2565_v7, %v4182_v18  ;;  %v3716_v18 = vpack.i.bf16 %v2515_v57, %v2467_v52 }
0x1821   :  { %v3597_v10 = vpop.f32.mrf.mxu1  ;;  %v3602_v12 = vpop.f32.mrf.mxu0 }
0x1822   :  { %v2621_v14 = vsel %vm424_vm2, %v2566_v60, -inf }
0x1823   :  { %2622 = vmax.xlane.f32.xlu1 %v2621_v14  ;;  %v2568_v15 = vpop.f32.mrf.mxu0  ;;  %v2615_v17 = vpop.f32.mrf.mxu1 }
0x1824   :  { %v2616_v19 = vadd.f32 %v2615_v17, %v4185_v22 }
0x1825   :  { %v3603_v20 = vpop.f32.mrf.mxu0  ;;  %v3608_v21 = vpop.f32.mrf.mxu1 }
0x1826   :  { %v2624_v23 = vsel %vm424_vm2, %v2616_v19, -inf }
0x1827   :  { %2625 = vmax.xlane.f32.xlu0 %v2624_v23  ;;  %v2618_v33 = vpop.f32.mrf.mxu1 }
0x1829   :  { %v3609_v3 = vpop.f32.mrf.mxu1 }
0x1834   :  { %2645 = vrot.lane.b32.xlu1 %v4415_v25, %s3908_s9 }
0x1838   :  { %3712 = vrot.lane.b32.xlu1 %v3711_v8, %s3909_s13 }
0x183c   :  { %3717 = vrot.lane.b32.xlu1 %v3716_v18, %s3910_s17 }
0x18ac   :  { %v2623_v58 = vpop.xlane.xlu1 %2622 }
0x18ad   :  { %v2627_v22 = vsub.f32 %v2566_v60, %v2623_v58 }
0x18af   :  { %v2629_v34 = vmul.f32 1.442695, %v2627_v22 }
0x18b0   :  { %v2646_v27 = vpop.permute.xlu1 %2645  ;;  %v2626_v28 = vpop.xlane.xlu0 %2625 }
0x18b1   :  { %3826 = vpow2.f32 %v2629_v34  ;;  %v2651_v29 = vsel %vm544_vm3, %v2646_v27, 0  ;;  %v2628_v53 = vsub.f32 %v2616_v19, %v2626_v28 }
0x18b2   :  { %3611 = vmatpush3.bf16.msra.mxu0 %v2651_v29 }
0x18b3   :  { %v2631_v61 = vmul.f32 1.442695, %v2628_v53  ;;  %3622 = vmatprep.subr.bf16.mxu0 %v3904_v16 }
0x18b4   :  { %v3713_v45 = vpop.permute.xlu1 %3712 }
0x18b5   :  { %3828 = vpow2.f32 %v2631_v61  ;;  %v3715_v47 = vunpack.i.h.bf16 %v3713_v45  ;;  %v3714_v50 = vunpack.i.l.bf16 %v3713_v45 }
0x18b7   :  { %v2766_v56 = vsel %vm424_vm2, %v4472_v11, %v3715_v47  ;;  %v2765_v57 = vsel %vm424_vm2, %v4470_v9, %v3714_v50  ;;  %v3232_v11 = vld [vmem:[%s4669_s10] ss:$0 sm:$0xff] }
0x18b8   :  { %v3718_v46 = vpop.permute.xlu1 %3717 }
0x18b9   :  { %v3720_v51 = vunpack.i.h.bf16 %v3718_v46  ;;  %v3719_v52 = vunpack.i.l.bf16 %v3718_v46 }
0x18bb   :  { %v2768_v6 = vsel %vm1326_vm4, %v2766_v56, %v3720_v51  ;;  %v2767_v7 = vsel %vm1326_vm4, %v2765_v57, %v3719_v52 }
0x18be   :  { %v3827_v25 = vpop.eup %3826 }
0x18bf   :  { %v2633_v4 = vsel %vm424_vm2, %v3827_v25, 0.0 }
0x18c0   :  { %2634 = vadd.xlane.f32.xlu0 %v2633_v4 }
0x18c2   :  { %v3829_v2 = vpop.eup %3828 }
0x18c3   :  { %v2636_v8 = vsel %vm424_vm2, %v3829_v2, 0.0 }
0x18c4   :  { %2637 = vadd.xlane.f32.xlu0 %v2636_v8 }
0x18da   :  { %2693 = vrot.lane.b32.xlu0 %v4422_v59, %s3908_s9 }
0x1949   :  { %v2635_v30 = vpop.xlane.xlu0 %2634 }
0x194a   :  { %3830 = vrcp.f32 %v2635_v30 }
0x194d   :  { %v2638_v5 = vpop.xlane.xlu0 %2637 }
0x194e   :  { %3832 = vrcp.f32 %v2638_v5 }
0x1951   :  { %v2694_v31 = vpop.permute.xlu0 %2693 }
0x1952   :  { %v2699_v32 = vsel %vm544_vm3, %v2694_v31, 0 }
0x1953   :  { %3617 = vmatpush3.bf16.msra.mxu1 %v2699_v32 }
0x1954   :  { %3630 = vmatprep.subr.bf16.mxu1 %v3904_v16 }
0x1957   :  { %v3831_v62 = vpop.eup %3830 }
0x1958   :  { %v2641_v13 = vmul.f32 %v3831_v62, %v3827_v25  ;;  %v3749_v25 = vld [vmem:[%s4670_s11] sm:$0xff]  }
0x195a   :  { %v2643_v24 = vpack.c.bf16 %v2641_v13, %v2641_v13  ;;  %v3236_v13 = vld [vmem:[%s4671_s15] ss:$0 sm:$0xff] }
0x195b   :  { %v3833_v35 = vpop.eup %3832 }
0x195c   :  { %3613 = vmatmul.mubr.msk.bf16.vlgmr.msra.gmra.mxu0 %vm424_vm2, %v2643_v24  ;;  %v2642_v55 = vmul.f32 %v3833_v35, %v3829_v2 }
0x195d   :  { %3626 = vmatprep.mubr.msk.bf16.mxu0 %vm3905_vm1, %v3904_v16  ;;  %3623 = vmatpush3.bf16.msra.mxu0 %v3746_v36 }
0x195e   :  { %v2644_v59 = vpack.c.bf16 %v2642_v55, %v2642_v55  ;;  %3624 = vmatprep.subr.bf16.mxu0 %v3904_v16 }
0x1960   :  { %3619 = vmatmul.mubr.msk.bf16.vlgmr.msra.gmra.mxu1 %vm424_vm2, %v2644_v59  ;;  %v3237_v59 = vld [vmem:[%s4672_s16] ss:$0 sm:$0xff] }
0x1961   :  { %3634 = vmatprep.mubr.msk.bf16.mxu1 %vm3905_vm1, %v3904_v16  ;;  %3625 = vmatpush3.bf16.msra.mxu0 %v3747_v37 }
0x1962   :  { %3638 = vmatprep.subr.bf16.mxu0 %v3904_v16 }
0x1a1c   :  { %v2687_v38 = vpop.f32.mrf.mxu0 }
0x1a1e   :  { %v3614_v39 = vpop.f32.mrf.mxu0 }
0x1a20   :  { %v2690_v40 = vpop.f32.mrf.mxu0  ;;  %v2735_v41 = vpop.f32.mrf.mxu1 }
0x1a21   :  { %v3721_v42 = vpack.i.bf16 %v2735_v41, %v2687_v38  ;;  %v3750_v40 = vld [vmem:[%s4673_s18 + $0x18] sm:$0xff]   ;;  %v3751_v41 = vld [vmem:[%s4673_s18 + $0x10] sm:$0xff]  }
0x1a22   :  { %v3615_v1 = vpop.f32.mrf.mxu0  ;;  %v3620_v43 = vpop.f32.mrf.mxu1 }
0x1a23   :  { %3722 = vrot.lane.b32.xlu1 %v3721_v42, %s3911_s21  ;;  %v3752_v42 = vld [vmem:[%s4673_s18 + $0x8] sm:$0xff]   ;;  %v3753_v1 = vld [vmem:[%s4673_s18] sm:$0xff]  }
0x1a24   :  { %v2738_v44 = vpop.f32.mrf.mxu1  ;;  %v3238_v43 = vld [vmem:[%s4674_s22] ss:$0 sm:$0xff] }
0x1a26   :  { %v3621_v26 = vpop.f32.mrf.mxu1 }
0x1a95   :  { %v3723_v54 = vpop.permute.xlu1 %3722 }
0x1a96   :  { %v3725_v63 = vunpack.i.h.bf16 %v3723_v54  ;;  %v3724_v0 = vunpack.i.l.bf16 %v3723_v54 }
0x1a98   :  { %v2770_v60 = vsel %vm1329_vm5, %v2768_v6, %v3725_v63  ;;  %v2769_v10 = vsel %vm1329_vm5, %v2767_v7, %v3724_v0 }
0x1a99   :  { %v2771_v12 = vpack.c.bf16 %v2770_v60, %v2769_v10 }
0x1a9b   :  { %3627 = vmatmul.mubr.msk.bf16.vlgmr.msra.gmra.mxu0 %vm156_vm0, %v2771_v12 }
0x1a9c   :  { %3646 = vmatprep.mubr.msk.bf16.mxu0 %vm3905_vm1, %v3904_v16  ;;  %3639 = vmatpush3.bf16.msra.mxu0 %v3750_v40 }
0x1a9d   :  { %3640 = vmatprep.subr.bf16.mxu0 %v3904_v16 }
0x1aa0   :  { %3641 = vmatpush3.bf16.msra.mxu0 %v3751_v41 }
0x1aa1   :  { %3642 = vmatprep.subr.bf16.mxu0 %v3904_v16 }
0x1aa4   :  { %3643 = vmatpush3.bf16.msra.mxu0 %v3752_v42 }
0x1aa5   :  { %3644 = vmatprep.subr.bf16.mxu0 %v3904_v16 }
0x1aa8   :  { %3645 = vmatpush3.bf16.msra.mxu0 %v3753_v1 }
0x1b5b   :  { %v2832_v14 = vpop.f32.mrf.mxu0 }
0x1b5c   :  { %v2833_v15 = vadd.f32 %v3232_v11, %v2832_v14 }
0x1b5d   :  { %v3628_v9 = vpop.f32.mrf.mxu0 }
0x1b5e   :  { %v2839_v17 = vadd.f32 %v2833_v15, %v4386_v48 }
0x1b5f   :  { %v2835_v19 = vpop.f32.mrf.mxu0 }
0x1b60   :  { %v2836_v20 = vadd.f32 %v3232_v11, %v2835_v19  ;;  %v2843_v21 = vsel %vm156_vm0, %v2839_v17, 0.0 }
0x1b61   :  { %2844 = vadd.xlane.f32.xlu0 %v2843_v21  ;;  %v3629_v23 = vpop.f32.mrf.mxu0 }
0x1b62   :  { %v2840_v33 = vadd.f32 %v2836_v20, %v4388_v49  ;;  %v3748_v49 = vld [vmem:[%s4670_s11 + $0x8] sm:$0xff]   ;;  %v3242_v20 = vld [vmem:[%s4087_s4] ss:$0 sm:$0xff]  ;;  %s3912_s4 = smov [#allocation2]  }
0x1b63   :  { %3631 = vmatpush3.bf16.msra.mxu1 %v3748_v49  ;;  %s3109_s23 = sshll.u32 %s3912_s4, 4  ;;  %s3110_s23 = int_to_ptr.vmem [resolvable:$true] %s3109_s23 }
0x1b64   :  { %v2846_v3 = vsel %vm156_vm0, %v2840_v33, 0.0  ;;  %3632 = vmatprep.subr.bf16.mxu1 %v3904_v16  ;;  %s3846_s26 = scalar_lea.vmem %s3110_s23, 32  ;;  %p3851_p1 = scmp.lt.s32.totalorder %s3110_s23, %s3110_s23 }
0x1b65   :  { %2847 = vadd.xlane.f32.xlu1 %v2846_v3  ;;  %p3847_p0 = scmp.ne.s32.totalorder %s3110_s23, %s3846_s26  ;;  %p3852_p2 = scmp.lt.s32.totalorder %s3846_s26, %s3846_s26 }
0x1b67   :  { %3633 = vmatpush3.bf16.msra.mxu1 %v3749_v25  ;;  %p3853_p3 = por %p3852_p2, %p3851_p1 }
0x1b69   :  { %p3854_p4 = pnand %p3853_p3, %p3847_p0 }
0x1bea   :  { %v2845_v18 = vpop.xlane.xlu0 %2844 }
0x1beb   :  { %v2849_v58 = vmul.f32 0.03125, %v2845_v18 }
0x1bed   :  { %v2851_v22 = vsub.f32 %v2839_v17, %v2849_v58 }
0x1bee   :  { %v2848_v34 = vpop.xlane.xlu1 %2847 }
0x1bef   :  { %v2850_v27 = vmul.f32 0.03125, %v2848_v34  ;;  %v2853_v28 = vmul.f32 %v2851_v22, %v2851_v22 }
0x1bf1   :  { %v2852_v48 = vsub.f32 %v2840_v33, %v2850_v27  ;;  %v2855_v29 = vsel %vm156_vm0, %v2853_v28, 0.0 }
0x1bf2   :  { %2856 = vadd.xlane.f32.xlu0 %v2855_v29 }
0x1bf3   :  { %v2854_v53 = vmul.f32 %v2852_v48, %v2852_v48 }
0x1bf5   :  { %v2858_v61 = vsel %vm156_vm0, %v2854_v53, 0.0 }
0x1bf6   :  { %2859 = vadd.xlane.f32.xlu0 %v2858_v61 }
0x1c7b   :  { %v2857_v4 = vpop.xlane.xlu0 %2856 }
0x1c7c   :  { %v2861_v2 = vmul.f32 0.03125, %v2857_v4 }
0x1c7e   :  { %v2863_v8 = vadd.f32 1e-12, %v2861_v2 }
0x1c7f   :  { %v2860_v30 = vpop.xlane.xlu0 %2859 }
0x1c80   :  { %3834 = vrsqrt.f32 %v2863_v8  ;;  %v2862_v5 = vmul.f32 0.03125, %v2860_v30 }
0x1c82   :  { %v2864_v31 = vadd.f32 1e-12, %v2862_v5 }
0x1c84   :  { %3836 = vrsqrt.f32 %v2864_v31 }
0x1c8d   :  { %v3835_v32 = vpop.eup %3834 }
0x1c8e   :  { %v2867_v62 = vmul.f32 %v3835_v32, %v2851_v22 }
0x1c90   :  { %v2875_v55 = vmul.f32 %v3236_v13, %v2867_v62 }
0x1c91   :  { %v3837_v24 = vpop.eup %3836 }
0x1c92   :  { %v2868_v35 = vmul.f32 %v3837_v24, %v2852_v48  ;;  %v2883_v37 = vadd.f32 %v3237_v59, %v2875_v55  ;;  %v3248_v55 = vld [vmem:[%s4092_s6] ss:$0 sm:$0xff] }
0x1c94   :  { %v2876_v36 = vmul.f32 %v3236_v13, %v2868_v35 }
0x1c96   :  { %v2884_v38 = vadd.f32 %v3237_v59, %v2876_v36  ;;  %v3249_v36 = vld [vmem:[%s4097_s20] ss:$0 sm:$0xff] }
0x1c98   :  { %v2885_v39 = vpack.c.bf16 %v2884_v38, %v2883_v37 }
0x1c9a   :  { %3635 = vmatmul.mubr.msk.bf16.vlgmr.msra.gmra.mxu1 %vm156_vm0, %v2885_v39 }
0x1d5a   :  { %v2946_v44 = vpop.f32.mrf.mxu1 }
0x1d5b   :  { %v2947_v26 = vadd.f32 %v3238_v43, %v2946_v44 }
0x1d5c   :  { %v3636_v45 = vpop.f32.mrf.mxu1 }
0x1d5d   :  { %v2955_v46 = vmul.f32 %v2947_v26, %v2947_v26  ;;  %v2953_v11 = vmul.f32 0.5, %v2947_v26 }
0x1d5e   :  { %v2949_v47 = vpop.f32.mrf.mxu1 }
0x1d5f   :  { %v2957_v50 = vmul.f32 %v2955_v46, %v2947_v26  ;;  %v2950_v51 = vadd.f32 %v3238_v43, %v2949_v47 }
0x1d60   :  { %v3637_v52 = vpop.f32.mrf.mxu1 }
0x1d61   :  { %v2959_v54 = vmul.f32 0.044715, %v2957_v50  ;;  %v2956_v56 = vmul.f32 %v2950_v51, %v2950_v51  ;;  %v2954_v14 = vmul.f32 0.5, %v2950_v51 }
0x1d63   :  { %v2961_v57 = vadd.f32 %v2959_v54, %v2947_v26  ;;  %v2958_v63 = vmul.f32 %v2956_v56, %v2950_v51 }
0x1d65   :  { %v2963_v0 = vmul.f32 0.7978846, %v2961_v57  ;;  %v2960_v6 = vmul.f32 0.044715, %v2958_v63 }
0x1d67   :  { %3838 = vtanh.f32 %v2963_v0  ;;  %v2962_v16 = vadd.f32 %v2960_v6, %v2950_v51 }
0x1d69   :  { %v2964_v7 = vmul.f32 0.7978846, %v2962_v16 }
0x1d6b   :  { %3840 = vtanh.f32 %v2964_v7 }
0x1d74   :  { %v3839_v60 = vpop.eup %3838 }
0x1d75   :  { %v2967_v10 = vadd.f32 1.0, %v3839_v60 }
0x1d77   :  { %v2969_v9 = vmul.f32 %v2967_v10, %v2953_v11 }
0x1d78   :  { %v3841_v12 = vpop.eup %3840 }
0x1d79   :  { %v2968_v15 = vadd.f32 1.0, %v3841_v12 }
0x1d7b   :  { %v2970_v17 = vmul.f32 %v2968_v15, %v2954_v14 }
0x1d7d   :  { %v2971_v19 = vpack.c.bf16 %v2970_v17, %v2969_v9 }
0x1d7f   :  { %3647 = vmatmul.mubr.msk.bf16.vlgmr.msra.gmra.mxu0 %vm1572_vm6, %v2971_v19 }
0x1e3f   :  { %v3048_v21 = vpop.f32.mrf.mxu0 }
0x1e40   :  { %v3049_v23 = vadd.f32 %v3242_v20, %v3048_v21 }
0x1e41   :  { %v3648_v33 = vpop.f32.mrf.mxu0 }
0x1e42   :  { %v3055_v3 = vadd.f32 %v3049_v23, %v2883_v37 }
0x1e43   :  { %v3051_v18 = vpop.f32.mrf.mxu0 }
0x1e44   :  { %v3052_v58 = vadd.f32 %v3242_v20, %v3051_v18  ;;  %v3059_v22 = vsel %vm156_vm0, %v3055_v3, 0.0 }
0x1e45   :  { %3060 = vadd.xlane.f32.xlu0 %v3059_v22  ;;  %v3649_v34 = vpop.f32.mrf.mxu0 }
0x1e46   :  { %v3056_v27 = vadd.f32 %v3052_v58, %v2884_v38 }
0x1e48   :  { %v3062_v28 = vsel %vm156_vm0, %v3056_v27, 0.0 }
0x1e49   :  { %3063 = vadd.xlane.f32.xlu1 %v3062_v28 }
0x1ece   :  { %v3061_v48 = vpop.xlane.xlu0 %3060 }
0x1ecf   :  { %v3065_v29 = vmul.f32 0.03125, %v3061_v48 }
0x1ed1   :  { %v3067_v53 = vsub.f32 %v3055_v3, %v3065_v29 }
0x1ed2   :  { %v3064_v61 = vpop.xlane.xlu1 %3063 }
0x1ed3   :  { %v3066_v49 = vmul.f32 0.03125, %v3064_v61  ;;  %v3069_v25 = vmul.f32 %v3067_v53, %v3067_v53 }
0x1ed5   :  { %v3068_v4 = vsub.f32 %v3056_v27, %v3066_v49  ;;  %v3071_v2 = vsel %vm156_vm0, %v3069_v25, 0.0 }
0x1ed6   :  { %3072 = vadd.xlane.f32.xlu0 %v3071_v2 }
0x1ed7   :  { %v3070_v8 = vmul.f32 %v3068_v4, %v3068_v4 }
0x1ed9   :  { %v3074_v30 = vsel %vm156_vm0, %v3070_v8, 0.0 }
0x1eda   :  { %3075 = vadd.xlane.f32.xlu1 %v3074_v30 }
0x1f5f   :  { %v3073_v5 = vpop.xlane.xlu0 %3072 }
0x1f60   :  { %v3077_v31 = vmul.f32 0.03125, %v3073_v5 }
0x1f62   :  { %v3079_v32 = vadd.f32 1e-12, %v3077_v31 }
0x1f63   :  { %v3076_v62 = vpop.xlane.xlu1 %3075 }
0x1f64   :  { %3842 = vrsqrt.f32 %v3079_v32  ;;  %v3078_v13 = vmul.f32 0.03125, %v3076_v62 }
0x1f66   :  { %v3080_v24 = vadd.f32 1e-12, %v3078_v13 }
0x1f68   :  { %3844 = vrsqrt.f32 %v3080_v24 }
0x1f71   :  { %v3843_v35 = vpop.eup %3842 }
0x1f72   :  { %v3083_v59 = vmul.f32 %v3843_v35, %v3067_v53 }
0x1f74   :  { %v3091_v37 = vmul.f32 %v3248_v55, %v3083_v59 }
0x1f75   :  { %v3845_v38 = vpop.eup %3844 }
0x1f76   :  { %v3084_v39 = vmul.f32 %v3845_v38, %v3068_v4  ;;  %v3099_v40 = vadd.f32 %v3249_v36, %v3091_v37 }
0x1f78   :  { %v3092_v41 = vmul.f32 %v3248_v55, %v3084_v39  ;;  %3102 = vst.msk [vmem:[#allocation2] sm:$0x1] %vm3101_vm7, %v3099_v40 }
0x1f7a   :  { %v3100_v42 = vadd.f32 %v3249_v36, %v3092_v41 }
0x1f7c   :  { %3103 = vst.msk [vmem:[#allocation2 + $0x1] sm:$0x1] %vm3101_vm7, %v3100_v42 }
0x1f7d   :  { %3857 = shalt.err (!%p3854_p4)
}
0x1f7e   :  { %s3913_s6 = smov 1  }
0x1f7f   :  { %3115 = dma.vmem_to_hbm [thread:$0]  %s3110_s23, 32, %s4102_s27, [#allocation3], %s3910_s17, %s3910_s17, %s3913_s6  }
0x1f80   :  { %3866 = dma.done.wait [#allocation3], 32  }
0x1f81   :  { %3867 = vsyncadd [#allocation3], 4294967264 }
0x1f82   :  { %3119 = vsyncpa [#allocation3], 1 }

</bundles_post_ra>
